<compile_context>
chip_gen: v6e
topology: v6e:2x2x1
jax: 0.10.0
libtpu: 0.0.40
codegen_flags: <defaults>
</compile_context>

<pallas_src>
import functools

import numpy as np
import jax
import jax.numpy as jnp
from jax import lax
from jax.experimental import pallas as pl
from jax.experimental.pallas import tpu as pltpu

NEG_SLOPE = 0.2  # LeakyReLU(0.2)


def _leaky(x):
    return jnp.where(x >= 0.0, x, NEG_SLOPE * x)


def _fused_kernel(*refs):
    """refs = patches1, w1, b1, (S, W, b) per remaining layer, out_ref.

    One grid step == one batch sample; all intermediates stay in VMEM/vregs.
    """
    out_ref = refs[-1]
    p_ref, w1_ref, b1_ref = refs[0], refs[1], refs[2]

    # Layer 1: im2col GEMM (+ folded-BN bias) + LeakyReLU.  (M1, 32) f32.
    a = jnp.dot(p_ref[0], w1_ref[...], preferred_element_type=jnp.float32)
    a = _leaky(a + b1_ref[...])

    # Layers 2..6: in-VMEM "im2col" via 0/1 tap-selection matmuls.
    idx = 3
    while idx < len(refs) - 1:
        s_ref, w_ref, b_ref = refs[idx], refs[idx + 1], refs[idx + 2]
        idx += 3
        n_taps, m_out, m_in = s_ref.shape
        cout = w_ref.shape[2]
        a_bf = a.astype(jnp.bfloat16)
        acc = jnp.zeros((m_out, cout), jnp.float32)
        for t in range(n_taps):                       # static unroll
            if m_in == 1:
                # (m_out,1) x (1,cin): selection dot degenerates to a
                # broadcast multiply -- keep it off the MXU.
                g = s_ref[t].astype(jnp.float32) * a_bf.astype(jnp.float32)
            else:
                g = jnp.dot(s_ref[t], a_bf,
                            preferred_element_type=jnp.float32)
            acc = acc + jnp.dot(g.astype(jnp.bfloat16), w_ref[t],
                                preferred_element_type=jnp.float32)
        a = _leaky(acc + b_ref[...])

    out_ref[0] = a.astype(out_ref.dtype)


# ----------------------------------------------------------------------------
# Host-side preparation (runs once): BN folding, selection matrices, im2col.
# ----------------------------------------------------------------------------

def _layer_specs(input_dim, output_dim):
    # (cin, cout, has_batchnorm, stride) for the 5 Down blocks + classifier.
    return [
        (input_dim, 32, False, 2),    # Down(input_dim, 32, normalize=False)
        (32, 64, True, 2),            # Down(32, 64)
        (64, 128, True, 2),           # Down(64, 128)
        (128, 256, True, 2),          # Down(128, 256)
        (256, 512, True, 2),          # Down(256, 512)
        (512, output_dim, False, 1),  # classifier Conv2d(512, out, 3, 1, 1)
    ]


def _conv_out_hw(h, w, stride):
    return (h + 2 - 3) // stride + 1, (w + 2 - 3) // stride + 1


def _selection_matrices(hin, win, stride):
    """0/1 row-selection matrices for a 3x3 / pad=1 conv at `stride`.

    For tap t=(kh,kw): (S_t @ x_flat)[ho*Wout+wo] == x_pad[ho*stride+kh,
    wo*stride+kw] (zero when the tap lands in padding).  Taps that are
    entirely padding are dropped.
    """
    hout, wout = _conv_out_hw(hin, win, stride)
    taps, mats = [], []
    for kh in range(3):
        for kw in range(3):
            s = np.zeros((hout * wout, hin * win), np.float32)
            for ho in range(hout):
                hi = ho * stride + kh - 1
                if hi < 0 or hi >= hin:
                    continue
                for wo in range(wout):
                    wi = wo * stride + kw - 1
                    if 0 <= wi < win:
                        s[ho * wout + wo, hi * win + wi] = 1.0
            if s.any():
                taps.append(kh * 3 + kw)
                mats.append(s)
    return taps, np.stack(mats, axis=0)


def init_params(key, input_dim, output_dim):
    """Deterministic synthetic init (PyTorch-like fan-in uniform for convs)."""
    params = []
    for cin, cout, has_bn, _ in _layer_specs(input_dim, output_dim):
        key, kw_, kb_ = jax.random.split(key, 3)
        fan_in = 9 * cin
        bound = 1.0 / (fan_in ** 0.5)
        w = jax.random.uniform(kw_, (3, 3, cin, cout), jnp.float32, -bound, bound)
        b = jax.random.uniform(kb_, (cout,), jnp.float32, -bound, bound)
        if has_bn:
            eps = 0.8  # nn.BatchNorm2d(cout, 0.8): second positional arg = eps
            gamma = jnp.ones((cout,), jnp.float32)
            beta = jnp.zeros((cout,), jnp.float32)
            rmean = jnp.zeros((cout,), jnp.float32)
            rvar = jnp.ones((cout,), jnp.float32)
            scale = gamma / jnp.sqrt(rvar + eps)
            shift = beta - rmean * scale
        else:
            scale = jnp.ones((cout,), jnp.float32)
            shift = jnp.zeros((cout,), jnp.float32)
        params.append((w, b, scale, shift))
    return params


def prepare_fused_inputs(params, input_dim, output_dim, spatial_hw):
    """Fold BN into weights/bias and build per-layer selection matrices."""
    specs = _layer_specs(input_dim, output_dim)
    h, w = spatial_hw

    # Layer 1: folded weight for the host-side im2col GEMM.
    w0, b0, sc0, sh0 = params[0]
    cin0, cout0, _, st0 = specs[0]
    w1mat = ((w0 * sc0).reshape(9 * cin0, cout0)).astype(jnp.bfloat16)
    b1 = (b0 * sc0 + sh0).reshape(1, cout0).astype(jnp.float32)
    h, w = _conv_out_hw(h, w, st0)

    layer_ops = []
    for (wk, bk, sck, shk), (cin, cout, _, st) in zip(params[1:], specs[1:]):
        taps, smat = _selection_matrices(h, w, st)
        wf = ((wk * sck).reshape(9, cin, cout))[np.asarray(taps)]
        bf = (bk * sck + shk).reshape(1, cout)
        layer_ops.append((jnp.asarray(smat, jnp.bfloat16),
                          wf.astype(jnp.bfloat16),
                          bf.astype(jnp.float32)))
        h, w = _conv_out_hw(h, w, st)
    return w1mat, b1, layer_ops, (h, w)


def _im2col_first_layer(x_nhwc, stride):
    """x: (N,H,W,C) -> (N, Ho*Wo, 9*C) patches for a 3x3 / pad=1 conv."""
    n, h, w, c = x_nhwc.shape
    ho, wo = _conv_out_hw(h, w, stride)
    xp = jnp.pad(x_nhwc, ((0, 0), (1, 1), (1, 1), (0, 0)))
    cols = []
    for kh in range(3):
        for kw in range(3):
            win = lax.slice(
                xp, (0, kh, kw, 0),
                (n, kh + stride * (ho - 1) + 1, kw + stride * (wo - 1) + 1, c),
                (1, stride, stride, 1))
            cols.append(win)                           # (N, Ho, Wo, C)
    patches = jnp.concatenate(cols, axis=-1)           # (N, Ho, Wo, 9C)
    return patches.reshape(n, ho * wo, 9 * c)


def _const_index(ndim, *_):
    return (0,) * ndim


# ----------------------------------------------------------------------------
# Fused forward
# ----------------------------------------------------------------------------

def discriminator_forward(x_nchw, fused):
    """x_nchw: (N, Cin, H, W) f32 -> (N, Cout, Hout, Wout) f32."""
    w1mat, b1, layer_ops, out_hw = fused
    x = jnp.transpose(x_nchw, (0, 2, 3, 1))            # NCHW -> NHWC
    p1 = _im2col_first_layer(x, stride=2).astype(jnp.bfloat16)
    n, m1, k1 = p1.shape
    out_dim = layer_ops[-1][1].shape[-1]
    m_last = out_hw[0] * out_hw[1]

    flat_inputs = [p1, w1mat, b1]
    for s, wmat, b in layer_ops:
        flat_inputs += [s, wmat, b]

    in_specs = [pl.BlockSpec((1, m1, k1), lambda i: (i, 0, 0))]
    for arr in flat_inputs[1:]:
        in_specs.append(pl.BlockSpec(
            arr.shape, functools.partial(_const_index, arr.ndim)))

    out = pl.pallas_call(
        _fused_kernel,
        out_shape=jax.ShapeDtypeStruct((n, m_last, out_dim), jnp.float32),
        grid=(n,),
        in_specs=in_specs,
        out_specs=pl.BlockSpec((1, m_last, out_dim), lambda i: (i, 0, 0)),
        compiler_params=pltpu.CompilerParams(
            dimension_semantics=("parallel",),   # v7x: 2 samples -> 2 TCs
            vmem_limit_bytes=32 * 1024 * 1024),
    )(*flat_inputs)

    out = out.reshape(n, out_hw[0], out_hw[1], out_dim)
    return jnp.transpose(out, (0, 3, 1, 2))            # NHWC -> NCHW


def discriminator_reference(x_nchw, params, strides):
    """Pure-JAX f32 reference for a numerical cross-check."""
    x = jnp.transpose(x_nchw, (0, 2, 3, 1))
    for (w, b, s, t), st in zip(params, strides):
        y = lax.conv_general_dilated(
            x, w, window_strides=(st, st), padding=((1, 1), (1, 1)),
            dimension_numbers=("NHWC", "HWIO", "NHWC"),
            precision=lax.Precision.HIGHEST)
        y = (y + b) * s + t
        x = jnp.where(y >= 0.0, y, NEG_SLOPE * y)
    return jnp.transpose(x, (0, 3, 1, 2))


if __name__ == "__main__":
    key = jax.random.PRNGKey(0)
    input_dim, output_dim = 4, 3
    batch, spatial = 2, 32   # five stride-2 downs: 32 -> 16 -> 8 -> 4 -> 2 -> 1
    kx, kp = jax.random.split(key)
    x = jax.random.normal(kx, (batch, input_dim, spatial, spatial), jnp.float32)
    params = init_params(kp, input_dim, output_dim)
    fused = prepare_fused_inputs(params, input_dim, output_dim,
                                 (spatial, spatial))

    fwd = jax.jit(lambda xx: discriminator_forward(xx, fused))
    out = jax.block_until_ready(fwd(x))
    assert out.shape == (batch, output_dim, 1, 1), out.shape

    strides = [spec[-1] for spec in _layer_specs(input_dim, output_dim)]
    ref = jax.block_until_ready(discriminator_reference(x, params, strides))
    if not jnp.allclose(out, ref, rtol=5e-2, atol=5e-2):
        raise AssertionError("Pallas output does not match JAX reference")

    print("KERNEL_OK")
</pallas_src>

<mosaic_0001>
module attributes {stable_mosaic.version = 11 : i64} {
  func.func @_fused_kernel(%arg0: i32, %arg1: memref<1x256x36xbf16, #tpu.memory_space<vmem>>, %arg2: memref<36x32xbf16, #tpu.memory_space<vmem>>, %arg3: memref<1x32xf32, #tpu.memory_space<vmem>>, %arg4: memref<9x64x256xbf16, #tpu.memory_space<vmem>>, %arg5: memref<9x32x64xbf16, #tpu.memory_space<vmem>>, %arg6: memref<1x64xf32, #tpu.memory_space<vmem>>, %arg7: memref<9x16x64xbf16, #tpu.memory_space<vmem>>, %arg8: memref<9x64x128xbf16, #tpu.memory_space<vmem>>, %arg9: memref<1x128xf32, #tpu.memory_space<vmem>>, %arg10: memref<9x4x16xbf16, #tpu.memory_space<vmem>>, %arg11: memref<9x128x256xbf16, #tpu.memory_space<vmem>>, %arg12: memref<1x256xf32, #tpu.memory_space<vmem>>, %arg13: memref<4x1x4xbf16, #tpu.memory_space<vmem>>, %arg14: memref<4x256x512xbf16, #tpu.memory_space<vmem>>, %arg15: memref<1x512xf32, #tpu.memory_space<vmem>>, %arg16: memref<1x1x1xbf16, #tpu.memory_space<vmem>>, %arg17: memref<1x512x3xbf16, #tpu.memory_space<vmem>>, %arg18: memref<1x3xf32, #tpu.memory_space<vmem>>, %arg19: memref<1x1x3xf32, #tpu.memory_space<vmem>>) attributes {dimension_semantics = [#tpu.dimension_semantics<parallel>], iteration_bounds = array<i64: 2>, scalar_prefetch = 0 : i64, scratch_operands = 0 : i64, tpu.core_type = #tpu.core_type<tc>, window_params = [{transform_indices = @transform_0, window_bounds = array<i64: 1, 256, 36>}, {pipeline_mode = #tpu.pipeline_mode<synchronous>, transform_indices = @transform_1, window_bounds = array<i64: 36, 32>}, {pipeline_mode = #tpu.pipeline_mode<synchronous>, transform_indices = @transform_2, window_bounds = array<i64: 1, 32>}, {pipeline_mode = #tpu.pipeline_mode<synchronous>, transform_indices = @transform_3, window_bounds = array<i64: 9, 64, 256>}, {pipeline_mode = #tpu.pipeline_mode<synchronous>, transform_indices = @transform_4, window_bounds = array<i64: 9, 32, 64>}, {pipeline_mode = #tpu.pipeline_mode<synchronous>, transform_indices = @transform_5, window_bounds = array<i64: 1, 64>}, {pipeline_mode = #tpu.pipeline_mode<synchronous>, transform_indices = @transform_6, window_bounds = array<i64: 9, 16, 64>}, {pipeline_mode = #tpu.pipeline_mode<synchronous>, transform_indices = @transform_7, window_bounds = array<i64: 9, 64, 128>}, {pipeline_mode = #tpu.pipeline_mode<synchronous>, transform_indices = @transform_8, window_bounds = array<i64: 1, 128>}, {pipeline_mode = #tpu.pipeline_mode<synchronous>, transform_indices = @transform_9, window_bounds = array<i64: 9, 4, 16>}, {pipeline_mode = #tpu.pipeline_mode<synchronous>, transform_indices = @transform_10, window_bounds = array<i64: 9, 128, 256>}, {pipeline_mode = #tpu.pipeline_mode<synchronous>, transform_indices = @transform_11, window_bounds = array<i64: 1, 256>}, {pipeline_mode = #tpu.pipeline_mode<synchronous>, transform_indices = @transform_12, window_bounds = array<i64: 4, 1, 4>}, {pipeline_mode = #tpu.pipeline_mode<synchronous>, transform_indices = @transform_13, window_bounds = array<i64: 4, 256, 512>}, {pipeline_mode = #tpu.pipeline_mode<synchronous>, transform_indices = @transform_14, window_bounds = array<i64: 1, 512>}, {pipeline_mode = #tpu.pipeline_mode<synchronous>, transform_indices = @transform_15, window_bounds = array<i64: 1, 1, 1>}, {pipeline_mode = #tpu.pipeline_mode<synchronous>, transform_indices = @transform_16, window_bounds = array<i64: 1, 512, 3>}, {pipeline_mode = #tpu.pipeline_mode<synchronous>, transform_indices = @transform_17, window_bounds = array<i64: 1, 3>}, {transform_indices = @transform_18, window_bounds = array<i64: 1, 1, 3>}]} {
    %c0 = arith.constant 0 : index
    %c0_0 = arith.constant 0 : index
    %c0_1 = arith.constant 0 : index
    %0 = vector.load %arg1[%c0, %c0_0, %c0_1] : memref<1x256x36xbf16, #tpu.memory_space<vmem>>, vector<1x256x36xbf16>
    %1 = vector.shape_cast %0 : vector<1x256x36xbf16> to vector<256x36xbf16>
    %c0_2 = arith.constant 0 : index
    %c0_3 = arith.constant 0 : index
    %2 = vector.load %arg2[%c0_2, %c0_3] : memref<36x32xbf16, #tpu.memory_space<vmem>>, vector<36x32xbf16>
    %cst = arith.constant dense<0.000000e+00> : vector<256x32xf32>
    %3 = tpu.matmul %1, %2, %cst {dimension_numbers = #tpu.dot_dimension_numbers<[1], [0], [0], [1], [0, 0, 1, 1], [], []>} : vector<256x36xbf16>, vector<36x32xbf16>, vector<256x32xf32> -> vector<256x32xf32>
    %c0_4 = arith.constant 0 : index
    %c0_5 = arith.constant 0 : index
    %4 = vector.load %arg3[%c0_4, %c0_5] : memref<1x32xf32, #tpu.memory_space<vmem>>, vector<1x32xf32>
    %5 = vector.broadcast %4 : vector<1x32xf32> to vector<256x32xf32>
    %6 = arith.addf %3, %5 : vector<256x32xf32>
    %cst_6 = arith.constant 0.000000e+00 : f32
    %7 = vector.broadcast %cst_6 : f32 to vector<256x32xf32>
    %8 = arith.cmpf oge, %6, %7 : vector<256x32xf32>
    %cst_7 = arith.constant 2.000000e-01 : f32
    %9 = vector.broadcast %cst_7 : f32 to vector<256x32xf32>
    %10 = arith.mulf %9, %6 : vector<256x32xf32>
    %11 = arith.select %8, %6, %10 : vector<256x32xi1>, vector<256x32xf32>
    %12 = arith.truncf %11 : vector<256x32xf32> to vector<256x32xbf16>
    %cst_8 = arith.constant 0.000000e+00 : f32
    %13 = vector.broadcast %cst_8 : f32 to vector<64x64xf32>
    %c0_9 = arith.constant 0 : index
    %c0_10 = arith.constant 0 : index
    %c0_11 = arith.constant 0 : index
    %14 = vector.load %arg4[%c0_9, %c0_10, %c0_11] : memref<9x64x256xbf16, #tpu.memory_space<vmem>>, vector<1x64x256xbf16>
    %15 = vector.shape_cast %14 : vector<1x64x256xbf16> to vector<64x256xbf16>
    %cst_12 = arith.constant dense<0.000000e+00> : vector<64x32xf32>
    %16 = tpu.matmul %15, %12, %cst_12 {dimension_numbers = #tpu.dot_dimension_numbers<[1], [0], [0], [1], [0, 0, 1, 1], [], []>} : vector<64x256xbf16>, vector<256x32xbf16>, vector<64x32xf32> -> vector<64x32xf32>
    %17 = arith.truncf %16 : vector<64x32xf32> to vector<64x32xbf16>
    %c0_13 = arith.constant 0 : index
    %c0_14 = arith.constant 0 : index
    %c0_15 = arith.constant 0 : index
    %18 = vector.load %arg5[%c0_13, %c0_14, %c0_15] : memref<9x32x64xbf16, #tpu.memory_space<vmem>>, vector<1x32x64xbf16>
    %19 = vector.shape_cast %18 : vector<1x32x64xbf16> to vector<32x64xbf16>
    %cst_16 = arith.constant dense<0.000000e+00> : vector<64x64xf32>
    %20 = tpu.matmul %17, %19, %cst_16 {dimension_numbers = #tpu.dot_dimension_numbers<[1], [0], [0], [1], [0, 0, 1, 1], [], []>} : vector<64x32xbf16>, vector<32x64xbf16>, vector<64x64xf32> -> vector<64x64xf32>
    %21 = arith.addf %13, %20 : vector<64x64xf32>
    %c1 = arith.constant 1 : index
    %c0_17 = arith.constant 0 : index
    %c0_18 = arith.constant 0 : index
    %22 = vector.load %arg4[%c1, %c0_17, %c0_18] : memref<9x64x256xbf16, #tpu.memory_space<vmem>>, vector<1x64x256xbf16>
    %23 = vector.shape_cast %22 : vector<1x64x256xbf16> to vector<64x256xbf16>
    %cst_19 = arith.constant dense<0.000000e+00> : vector<64x32xf32>
    %24 = tpu.matmul %23, %12, %cst_19 {dimension_numbers = #tpu.dot_dimension_numbers<[1], [0], [0], [1], [0, 0, 1, 1], [], []>} : vector<64x256xbf16>, vector<256x32xbf16>, vector<64x32xf32> -> vector<64x32xf32>
    %25 = arith.truncf %24 : vector<64x32xf32> to vector<64x32xbf16>
    %c1_20 = arith.constant 1 : index
    %c0_21 = arith.constant 0 : index
    %c0_22 = arith.constant 0 : index
    %26 = vector.load %arg5[%c1_20, %c0_21, %c0_22] : memref<9x32x64xbf16, #tpu.memory_space<vmem>>, vector<1x32x64xbf16>
    %27 = vector.shape_cast %26 : vector<1x32x64xbf16> to vector<32x64xbf16>
    %cst_23 = arith.constant dense<0.000000e+00> : vector<64x64xf32>
    %28 = tpu.matmul %25, %27, %cst_23 {dimension_numbers = #tpu.dot_dimension_numbers<[1], [0], [0], [1], [0, 0, 1, 1], [], []>} : vector<64x32xbf16>, vector<32x64xbf16>, vector<64x64xf32> -> vector<64x64xf32>
    %29 = arith.addf %21, %28 : vector<64x64xf32>
    %c2 = arith.constant 2 : index
    %c0_24 = arith.constant 0 : index
    %c0_25 = arith.constant 0 : index
    %30 = vector.load %arg4[%c2, %c0_24, %c0_25] : memref<9x64x256xbf16, #tpu.memory_space<vmem>>, vector<1x64x256xbf16>
    %31 = vector.shape_cast %30 : vector<1x64x256xbf16> to vector<64x256xbf16>
    %cst_26 = arith.constant dense<0.000000e+00> : vector<64x32xf32>
    %32 = tpu.matmul %31, %12, %cst_26 {dimension_numbers = #tpu.dot_dimension_numbers<[1], [0], [0], [1], [0, 0, 1, 1], [], []>} : vector<64x256xbf16>, vector<256x32xbf16>, vector<64x32xf32> -> vector<64x32xf32>
    %33 = arith.truncf %32 : vector<64x32xf32> to vector<64x32xbf16>
    %c2_27 = arith.constant 2 : index
    %c0_28 = arith.constant 0 : index
    %c0_29 = arith.constant 0 : index
    %34 = vector.load %arg5[%c2_27, %c0_28, %c0_29] : memref<9x32x64xbf16, #tpu.memory_space<vmem>>, vector<1x32x64xbf16>
    %35 = vector.shape_cast %34 : vector<1x32x64xbf16> to vector<32x64xbf16>
    %cst_30 = arith.constant dense<0.000000e+00> : vector<64x64xf32>
    %36 = tpu.matmul %33, %35, %cst_30 {dimension_numbers = #tpu.dot_dimension_numbers<[1], [0], [0], [1], [0, 0, 1, 1], [], []>} : vector<64x32xbf16>, vector<32x64xbf16>, vector<64x64xf32> -> vector<64x64xf32>
    %37 = arith.addf %29, %36 : vector<64x64xf32>
    %c3 = arith.constant 3 : index
    %c0_31 = arith.constant 0 : index
    %c0_32 = arith.constant 0 : index
    %38 = vector.load %arg4[%c3, %c0_31, %c0_32] : memref<9x64x256xbf16, #tpu.memory_space<vmem>>, vector<1x64x256xbf16>
    %39 = vector.shape_cast %38 : vector<1x64x256xbf16> to vector<64x256xbf16>
    %cst_33 = arith.constant dense<0.000000e+00> : vector<64x32xf32>
    %40 = tpu.matmul %39, %12, %cst_33 {dimension_numbers = #tpu.dot_dimension_numbers<[1], [0], [0], [1], [0, 0, 1, 1], [], []>} : vector<64x256xbf16>, vector<256x32xbf16>, vector<64x32xf32> -> vector<64x32xf32>
    %41 = arith.truncf %40 : vector<64x32xf32> to vector<64x32xbf16>
    %c3_34 = arith.constant 3 : index
    %c0_35 = arith.constant 0 : index
    %c0_36 = arith.constant 0 : index
    %42 = vector.load %arg5[%c3_34, %c0_35, %c0_36] : memref<9x32x64xbf16, #tpu.memory_space<vmem>>, vector<1x32x64xbf16>
    %43 = vector.shape_cast %42 : vector<1x32x64xbf16> to vector<32x64xbf16>
    %cst_37 = arith.constant dense<0.000000e+00> : vector<64x64xf32>
    %44 = tpu.matmul %41, %43, %cst_37 {dimension_numbers = #tpu.dot_dimension_numbers<[1], [0], [0], [1], [0, 0, 1, 1], [], []>} : vector<64x32xbf16>, vector<32x64xbf16>, vector<64x64xf32> -> vector<64x64xf32>
    %45 = arith.addf %37, %44 : vector<64x64xf32>
    %c4 = arith.constant 4 : index
    %c0_38 = arith.constant 0 : index
    %c0_39 = arith.constant 0 : index
    %46 = vector.load %arg4[%c4, %c0_38, %c0_39] : memref<9x64x256xbf16, #tpu.memory_space<vmem>>, vector<1x64x256xbf16>
    %47 = vector.shape_cast %46 : vector<1x64x256xbf16> to vector<64x256xbf16>
    %cst_40 = arith.constant dense<0.000000e+00> : vector<64x32xf32>
    %48 = tpu.matmul %47, %12, %cst_40 {dimension_numbers = #tpu.dot_dimension_numbers<[1], [0], [0], [1], [0, 0, 1, 1], [], []>} : vector<64x256xbf16>, vector<256x32xbf16>, vector<64x32xf32> -> vector<64x32xf32>
    %49 = arith.truncf %48 : vector<64x32xf32> to vector<64x32xbf16>
    %c4_41 = arith.constant 4 : index
    %c0_42 = arith.constant 0 : index
    %c0_43 = arith.constant 0 : index
    %50 = vector.load %arg5[%c4_41, %c0_42, %c0_43] : memref<9x32x64xbf16, #tpu.memory_space<vmem>>, vector<1x32x64xbf16>
    %51 = vector.shape_cast %50 : vector<1x32x64xbf16> to vector<32x64xbf16>
    %cst_44 = arith.constant dense<0.000000e+00> : vector<64x64xf32>
    %52 = tpu.matmul %49, %51, %cst_44 {dimension_numbers = #tpu.dot_dimension_numbers<[1], [0], [0], [1], [0, 0, 1, 1], [], []>} : vector<64x32xbf16>, vector<32x64xbf16>, vector<64x64xf32> -> vector<64x64xf32>
    %53 = arith.addf %45, %52 : vector<64x64xf32>
    %c5 = arith.constant 5 : index
    %c0_45 = arith.constant 0 : index
    %c0_46 = arith.constant 0 : index
    %54 = vector.load %arg4[%c5, %c0_45, %c0_46] : memref<9x64x256xbf16, #tpu.memory_space<vmem>>, vector<1x64x256xbf16>
    %55 = vector.shape_cast %54 : vector<1x64x256xbf16> to vector<64x256xbf16>
    %cst_47 = arith.constant dense<0.000000e+00> : vector<64x32xf32>
    %56 = tpu.matmul %55, %12, %cst_47 {dimension_numbers = #tpu.dot_dimension_numbers<[1], [0], [0], [1], [0, 0, 1, 1], [], []>} : vector<64x256xbf16>, vector<256x32xbf16>, vector<64x32xf32> -> vector<64x32xf32>
    %57 = arith.truncf %56 : vector<64x32xf32> to vector<64x32xbf16>
    %c5_48 = arith.constant 5 : index
    %c0_49 = arith.constant 0 : index
    %c0_50 = arith.constant 0 : index
    %58 = vector.load %arg5[%c5_48, %c0_49, %c0_50] : memref<9x32x64xbf16, #tpu.memory_space<vmem>>, vector<1x32x64xbf16>
    %59 = vector.shape_cast %58 : vector<1x32x64xbf16> to vector<32x64xbf16>
    %cst_51 = arith.constant dense<0.000000e+00> : vector<64x64xf32>
    %60 = tpu.matmul %57, %59, %cst_51 {dimension_numbers = #tpu.dot_dimension_numbers<[1], [0], [0], [1], [0, 0, 1, 1], [], []>} : vector<64x32xbf16>, vector<32x64xbf16>, vector<64x64xf32> -> vector<64x64xf32>
    %61 = arith.addf %53, %60 : vector<64x64xf32>
    %c6 = arith.constant 6 : index
    %c0_52 = arith.constant 0 : index
    %c0_53 = arith.constant 0 : index
    %62 = vector.load %arg4[%c6, %c0_52, %c0_53] : memref<9x64x256xbf16, #tpu.memory_space<vmem>>, vector<1x64x256xbf16>
    %63 = vector.shape_cast %62 : vector<1x64x256xbf16> to vector<64x256xbf16>
    %cst_54 = arith.constant dense<0.000000e+00> : vector<64x32xf32>
    %64 = tpu.matmul %63, %12, %cst_54 {dimension_numbers = #tpu.dot_dimension_numbers<[1], [0], [0], [1], [0, 0, 1, 1], [], []>} : vector<64x256xbf16>, vector<256x32xbf16>, vector<64x32xf32> -> vector<64x32xf32>
    %65 = arith.truncf %64 : vector<64x32xf32> to vector<64x32xbf16>
    %c6_55 = arith.constant 6 : index
    %c0_56 = arith.constant 0 : index
    %c0_57 = arith.constant 0 : index
    %66 = vector.load %arg5[%c6_55, %c0_56, %c0_57] : memref<9x32x64xbf16, #tpu.memory_space<vmem>>, vector<1x32x64xbf16>
    %67 = vector.shape_cast %66 : vector<1x32x64xbf16> to vector<32x64xbf16>
    %cst_58 = arith.constant dense<0.000000e+00> : vector<64x64xf32>
    %68 = tpu.matmul %65, %67, %cst_58 {dimension_numbers = #tpu.dot_dimension_numbers<[1], [0], [0], [1], [0, 0, 1, 1], [], []>} : vector<64x32xbf16>, vector<32x64xbf16>, vector<64x64xf32> -> vector<64x64xf32>
    %69 = arith.addf %61, %68 : vector<64x64xf32>
    %c7 = arith.constant 7 : index
    %c0_59 = arith.constant 0 : index
    %c0_60 = arith.constant 0 : index
    %70 = vector.load %arg4[%c7, %c0_59, %c0_60] : memref<9x64x256xbf16, #tpu.memory_space<vmem>>, vector<1x64x256xbf16>
    %71 = vector.shape_cast %70 : vector<1x64x256xbf16> to vector<64x256xbf16>
    %cst_61 = arith.constant dense<0.000000e+00> : vector<64x32xf32>
    %72 = tpu.matmul %71, %12, %cst_61 {dimension_numbers = #tpu.dot_dimension_numbers<[1], [0], [0], [1], [0, 0, 1, 1], [], []>} : vector<64x256xbf16>, vector<256x32xbf16>, vector<64x32xf32> -> vector<64x32xf32>
    %73 = arith.truncf %72 : vector<64x32xf32> to vector<64x32xbf16>
    %c7_62 = arith.constant 7 : index
    %c0_63 = arith.constant 0 : index
    %c0_64 = arith.constant 0 : index
    %74 = vector.load %arg5[%c7_62, %c0_63, %c0_64] : memref<9x32x64xbf16, #tpu.memory_space<vmem>>, vector<1x32x64xbf16>
    %75 = vector.shape_cast %74 : vector<1x32x64xbf16> to vector<32x64xbf16>
    %cst_65 = arith.constant dense<0.000000e+00> : vector<64x64xf32>
    %76 = tpu.matmul %73, %75, %cst_65 {dimension_numbers = #tpu.dot_dimension_numbers<[1], [0], [0], [1], [0, 0, 1, 1], [], []>} : vector<64x32xbf16>, vector<32x64xbf16>, vector<64x64xf32> -> vector<64x64xf32>
    %77 = arith.addf %69, %76 : vector<64x64xf32>
    %c8 = arith.constant 8 : index
    %c0_66 = arith.constant 0 : index
    %c0_67 = arith.constant 0 : index
    %78 = vector.load %arg4[%c8, %c0_66, %c0_67] : memref<9x64x256xbf16, #tpu.memory_space<vmem>>, vector<1x64x256xbf16>
    %79 = vector.shape_cast %78 : vector<1x64x256xbf16> to vector<64x256xbf16>
    %cst_68 = arith.constant dense<0.000000e+00> : vector<64x32xf32>
    %80 = tpu.matmul %79, %12, %cst_68 {dimension_numbers = #tpu.dot_dimension_numbers<[1], [0], [0], [1], [0, 0, 1, 1], [], []>} : vector<64x256xbf16>, vector<256x32xbf16>, vector<64x32xf32> -> vector<64x32xf32>
    %81 = arith.truncf %80 : vector<64x32xf32> to vector<64x32xbf16>
    %c8_69 = arith.constant 8 : index
    %c0_70 = arith.constant 0 : index
    %c0_71 = arith.constant 0 : index
    %82 = vector.load %arg5[%c8_69, %c0_70, %c0_71] : memref<9x32x64xbf16, #tpu.memory_space<vmem>>, vector<1x32x64xbf16>
    %83 = vector.shape_cast %82 : vector<1x32x64xbf16> to vector<32x64xbf16>
    %cst_72 = arith.constant dense<0.000000e+00> : vector<64x64xf32>
    %84 = tpu.matmul %81, %83, %cst_72 {dimension_numbers = #tpu.dot_dimension_numbers<[1], [0], [0], [1], [0, 0, 1, 1], [], []>} : vector<64x32xbf16>, vector<32x64xbf16>, vector<64x64xf32> -> vector<64x64xf32>
    %85 = arith.addf %77, %84 : vector<64x64xf32>
    %c0_73 = arith.constant 0 : index
    %c0_74 = arith.constant 0 : index
    %86 = vector.load %arg6[%c0_73, %c0_74] : memref<1x64xf32, #tpu.memory_space<vmem>>, vector<1x64xf32>
    %87 = vector.broadcast %86 : vector<1x64xf32> to vector<64x64xf32>
    %88 = arith.addf %85, %87 : vector<64x64xf32>
    %cst_75 = arith.constant 0.000000e+00 : f32
    %89 = vector.broadcast %cst_75 : f32 to vector<64x64xf32>
    %90 = arith.cmpf oge, %88, %89 : vector<64x64xf32>
    %cst_76 = arith.constant 2.000000e-01 : f32
    %91 = vector.broadcast %cst_76 : f32 to vector<64x64xf32>
    %92 = arith.mulf %91, %88 : vector<64x64xf32>
    %93 = arith.select %90, %88, %92 : vector<64x64xi1>, vector<64x64xf32>
    %94 = arith.truncf %93 : vector<64x64xf32> to vector<64x64xbf16>
    %cst_77 = arith.constant 0.000000e+00 : f32
    %95 = vector.broadcast %cst_77 : f32 to vector<16x128xf32>
    %c0_78 = arith.constant 0 : index
    %c0_79 = arith.constant 0 : index
    %c0_80 = arith.constant 0 : index
    %96 = vector.load %arg7[%c0_78, %c0_79, %c0_80] : memref<9x16x64xbf16, #tpu.memory_space<vmem>>, vector<1x16x64xbf16>
    %97 = vector.shape_cast %96 : vector<1x16x64xbf16> to vector<16x64xbf16>
    %cst_81 = arith.constant dense<0.000000e+00> : vector<16x64xf32>
    %98 = tpu.matmul %97, %94, %cst_81 {dimension_numbers = #tpu.dot_dimension_numbers<[1], [0], [0], [1], [0, 0, 1, 1], [], []>} : vector<16x64xbf16>, vector<64x64xbf16>, vector<16x64xf32> -> vector<16x64xf32>
    %99 = arith.truncf %98 : vector<16x64xf32> to vector<16x64xbf16>
    %c0_82 = arith.constant 0 : index
    %c0_83 = arith.constant 0 : index
    %c0_84 = arith.constant 0 : index
    %100 = vector.load %arg8[%c0_82, %c0_83, %c0_84] : memref<9x64x128xbf16, #tpu.memory_space<vmem>>, vector<1x64x128xbf16>
    %101 = vector.shape_cast %100 : vector<1x64x128xbf16> to vector<64x128xbf16>
    %cst_85 = arith.constant dense<0.000000e+00> : vector<16x128xf32>
    %102 = tpu.matmul %99, %101, %cst_85 {dimension_numbers = #tpu.dot_dimension_numbers<[1], [0], [0], [1], [0, 0, 1, 1], [], []>} : vector<16x64xbf16>, vector<64x128xbf16>, vector<16x128xf32> -> vector<16x128xf32>
    %103 = arith.addf %95, %102 : vector<16x128xf32>
    %c1_86 = arith.constant 1 : index
    %c0_87 = arith.constant 0 : index
    %c0_88 = arith.constant 0 : index
    %104 = vector.load %arg7[%c1_86, %c0_87, %c0_88] : memref<9x16x64xbf16, #tpu.memory_space<vmem>>, vector<1x16x64xbf16>
    %105 = vector.shape_cast %104 : vector<1x16x64xbf16> to vector<16x64xbf16>
    %cst_89 = arith.constant dense<0.000000e+00> : vector<16x64xf32>
    %106 = tpu.matmul %105, %94, %cst_89 {dimension_numbers = #tpu.dot_dimension_numbers<[1], [0], [0], [1], [0, 0, 1, 1], [], []>} : vector<16x64xbf16>, vector<64x64xbf16>, vector<16x64xf32> -> vector<16x64xf32>
    %107 = arith.truncf %106 : vector<16x64xf32> to vector<16x64xbf16>
    %c1_90 = arith.constant 1 : index
    %c0_91 = arith.constant 0 : index
    %c0_92 = arith.constant 0 : index
    %108 = vector.load %arg8[%c1_90, %c0_91, %c0_92] : memref<9x64x128xbf16, #tpu.memory_space<vmem>>, vector<1x64x128xbf16>
    %109 = vector.shape_cast %108 : vector<1x64x128xbf16> to vector<64x128xbf16>
    %cst_93 = arith.constant dense<0.000000e+00> : vector<16x128xf32>
    %110 = tpu.matmul %107, %109, %cst_93 {dimension_numbers = #tpu.dot_dimension_numbers<[1], [0], [0], [1], [0, 0, 1, 1], [], []>} : vector<16x64xbf16>, vector<64x128xbf16>, vector<16x128xf32> -> vector<16x128xf32>
    %111 = arith.addf %103, %110 : vector<16x128xf32>
    %c2_94 = arith.constant 2 : index
    %c0_95 = arith.constant 0 : index
    %c0_96 = arith.constant 0 : index
    %112 = vector.load %arg7[%c2_94, %c0_95, %c0_96] : memref<9x16x64xbf16, #tpu.memory_space<vmem>>, vector<1x16x64xbf16>
    %113 = vector.shape_cast %112 : vector<1x16x64xbf16> to vector<16x64xbf16>
    %cst_97 = arith.constant dense<0.000000e+00> : vector<16x64xf32>
    %114 = tpu.matmul %113, %94, %cst_97 {dimension_numbers = #tpu.dot_dimension_numbers<[1], [0], [0], [1], [0, 0, 1, 1], [], []>} : vector<16x64xbf16>, vector<64x64xbf16>, vector<16x64xf32> -> vector<16x64xf32>
    %115 = arith.truncf %114 : vector<16x64xf32> to vector<16x64xbf16>
    %c2_98 = arith.constant 2 : index
    %c0_99 = arith.constant 0 : index
    %c0_100 = arith.constant 0 : index
    %116 = vector.load %arg8[%c2_98, %c0_99, %c0_100] : memref<9x64x128xbf16, #tpu.memory_space<vmem>>, vector<1x64x128xbf16>
    %117 = vector.shape_cast %116 : vector<1x64x128xbf16> to vector<64x128xbf16>
    %cst_101 = arith.constant dense<0.000000e+00> : vector<16x128xf32>
    %118 = tpu.matmul %115, %117, %cst_101 {dimension_numbers = #tpu.dot_dimension_numbers<[1], [0], [0], [1], [0, 0, 1, 1], [], []>} : vector<16x64xbf16>, vector<64x128xbf16>, vector<16x128xf32> -> vector<16x128xf32>
    %119 = arith.addf %111, %118 : vector<16x128xf32>
    %c3_102 = arith.constant 3 : index
    %c0_103 = arith.constant 0 : index
    %c0_104 = arith.constant 0 : index
    %120 = vector.load %arg7[%c3_102, %c0_103, %c0_104] : memref<9x16x64xbf16, #tpu.memory_space<vmem>>, vector<1x16x64xbf16>
    %121 = vector.shape_cast %120 : vector<1x16x64xbf16> to vector<16x64xbf16>
    %cst_105 = arith.constant dense<0.000000e+00> : vector<16x64xf32>
    %122 = tpu.matmul %121, %94, %cst_105 {dimension_numbers = #tpu.dot_dimension_numbers<[1], [0], [0], [1], [0, 0, 1, 1], [], []>} : vector<16x64xbf16>, vector<64x64xbf16>, vector<16x64xf32> -> vector<16x64xf32>
    %123 = arith.truncf %122 : vector<16x64xf32> to vector<16x64xbf16>
    %c3_106 = arith.constant 3 : index
    %c0_107 = arith.constant 0 : index
    %c0_108 = arith.constant 0 : index
    %124 = vector.load %arg8[%c3_106, %c0_107, %c0_108] : memref<9x64x128xbf16, #tpu.memory_space<vmem>>, vector<1x64x128xbf16>
    %125 = vector.shape_cast %124 : vector<1x64x128xbf16> to vector<64x128xbf16>
    %cst_109 = arith.constant dense<0.000000e+00> : vector<16x128xf32>
    %126 = tpu.matmul %123, %125, %cst_109 {dimension_numbers = #tpu.dot_dimension_numbers<[1], [0], [0], [1], [0, 0, 1, 1], [], []>} : vector<16x64xbf16>, vector<64x128xbf16>, vector<16x128xf32> -> vector<16x128xf32>
    %127 = arith.addf %119, %126 : vector<16x128xf32>
    %c4_110 = arith.constant 4 : index
    %c0_111 = arith.constant 0 : index
    %c0_112 = arith.constant 0 : index
    %128 = vector.load %arg7[%c4_110, %c0_111, %c0_112] : memref<9x16x64xbf16, #tpu.memory_space<vmem>>, vector<1x16x64xbf16>
    %129 = vector.shape_cast %128 : vector<1x16x64xbf16> to vector<16x64xbf16>
    %cst_113 = arith.constant dense<0.000000e+00> : vector<16x64xf32>
    %130 = tpu.matmul %129, %94, %cst_113 {dimension_numbers = #tpu.dot_dimension_numbers<[1], [0], [0], [1], [0, 0, 1, 1], [], []>} : vector<16x64xbf16>, vector<64x64xbf16>, vector<16x64xf32> -> vector<16x64xf32>
    %131 = arith.truncf %130 : vector<16x64xf32> to vector<16x64xbf16>
    %c4_114 = arith.constant 4 : index
    %c0_115 = arith.constant 0 : index
    %c0_116 = arith.constant 0 : index
    %132 = vector.load %arg8[%c4_114, %c0_115, %c0_116] : memref<9x64x128xbf16, #tpu.memory_space<vmem>>, vector<1x64x128xbf16>
    %133 = vector.shape_cast %132 : vector<1x64x128xbf16> to vector<64x128xbf16>
    %cst_117 = arith.constant dense<0.000000e+00> : vector<16x128xf32>
    %134 = tpu.matmul %131, %133, %cst_117 {dimension_numbers = #tpu.dot_dimension_numbers<[1], [0], [0], [1], [0, 0, 1, 1], [], []>} : vector<16x64xbf16>, vector<64x128xbf16>, vector<16x128xf32> -> vector<16x128xf32>
    %135 = arith.addf %127, %134 : vector<16x128xf32>
    %c5_118 = arith.constant 5 : index
    %c0_119 = arith.constant 0 : index
    %c0_120 = arith.constant 0 : index
    %136 = vector.load %arg7[%c5_118, %c0_119, %c0_120] : memref<9x16x64xbf16, #tpu.memory_space<vmem>>, vector<1x16x64xbf16>
    %137 = vector.shape_cast %136 : vector<1x16x64xbf16> to vector<16x64xbf16>
    %cst_121 = arith.constant dense<0.000000e+00> : vector<16x64xf32>
    %138 = tpu.matmul %137, %94, %cst_121 {dimension_numbers = #tpu.dot_dimension_numbers<[1], [0], [0], [1], [0, 0, 1, 1], [], []>} : vector<16x64xbf16>, vector<64x64xbf16>, vector<16x64xf32> -> vector<16x64xf32>
    %139 = arith.truncf %138 : vector<16x64xf32> to vector<16x64xbf16>
    %c5_122 = arith.constant 5 : index
    %c0_123 = arith.constant 0 : index
    %c0_124 = arith.constant 0 : index
    %140 = vector.load %arg8[%c5_122, %c0_123, %c0_124] : memref<9x64x128xbf16, #tpu.memory_space<vmem>>, vector<1x64x128xbf16>
    %141 = vector.shape_cast %140 : vector<1x64x128xbf16> to vector<64x128xbf16>
    %cst_125 = arith.constant dense<0.000000e+00> : vector<16x128xf32>
    %142 = tpu.matmul %139, %141, %cst_125 {dimension_numbers = #tpu.dot_dimension_numbers<[1], [0], [0], [1], [0, 0, 1, 1], [], []>} : vector<16x64xbf16>, vector<64x128xbf16>, vector<16x128xf32> -> vector<16x128xf32>
    %143 = arith.addf %135, %142 : vector<16x128xf32>
    %c6_126 = arith.constant 6 : index
    %c0_127 = arith.constant 0 : index
    %c0_128 = arith.constant 0 : index
    %144 = vector.load %arg7[%c6_126, %c0_127, %c0_128] : memref<9x16x64xbf16, #tpu.memory_space<vmem>>, vector<1x16x64xbf16>
    %145 = vector.shape_cast %144 : vector<1x16x64xbf16> to vector<16x64xbf16>
    %cst_129 = arith.constant dense<0.000000e+00> : vector<16x64xf32>
    %146 = tpu.matmul %145, %94, %cst_129 {dimension_numbers = #tpu.dot_dimension_numbers<[1], [0], [0], [1], [0, 0, 1, 1], [], []>} : vector<16x64xbf16>, vector<64x64xbf16>, vector<16x64xf32> -> vector<16x64xf32>
    %147 = arith.truncf %146 : vector<16x64xf32> to vector<16x64xbf16>
    %c6_130 = arith.constant 6 : index
    %c0_131 = arith.constant 0 : index
    %c0_132 = arith.constant 0 : index
    %148 = vector.load %arg8[%c6_130, %c0_131, %c0_132] : memref<9x64x128xbf16, #tpu.memory_space<vmem>>, vector<1x64x128xbf16>
    %149 = vector.shape_cast %148 : vector<1x64x128xbf16> to vector<64x128xbf16>
    %cst_133 = arith.constant dense<0.000000e+00> : vector<16x128xf32>
    %150 = tpu.matmul %147, %149, %cst_133 {dimension_numbers = #tpu.dot_dimension_numbers<[1], [0], [0], [1], [0, 0, 1, 1], [], []>} : vector<16x64xbf16>, vector<64x128xbf16>, vector<16x128xf32> -> vector<16x128xf32>
    %151 = arith.addf %143, %150 : vector<16x128xf32>
    %c7_134 = arith.constant 7 : index
    %c0_135 = arith.constant 0 : index
    %c0_136 = arith.constant 0 : index
    %152 = vector.load %arg7[%c7_134, %c0_135, %c0_136] : memref<9x16x64xbf16, #tpu.memory_space<vmem>>, vector<1x16x64xbf16>
    %153 = vector.shape_cast %152 : vector<1x16x64xbf16> to vector<16x64xbf16>
    %cst_137 = arith.constant dense<0.000000e+00> : vector<16x64xf32>
    %154 = tpu.matmul %153, %94, %cst_137 {dimension_numbers = #tpu.dot_dimension_numbers<[1], [0], [0], [1], [0, 0, 1, 1], [], []>} : vector<16x64xbf16>, vector<64x64xbf16>, vector<16x64xf32> -> vector<16x64xf32>
    %155 = arith.truncf %154 : vector<16x64xf32> to vector<16x64xbf16>
    %c7_138 = arith.constant 7 : index
    %c0_139 = arith.constant 0 : index
    %c0_140 = arith.constant 0 : index
    %156 = vector.load %arg8[%c7_138, %c0_139, %c0_140] : memref<9x64x128xbf16, #tpu.memory_space<vmem>>, vector<1x64x128xbf16>
    %157 = vector.shape_cast %156 : vector<1x64x128xbf16> to vector<64x128xbf16>
    %cst_141 = arith.constant dense<0.000000e+00> : vector<16x128xf32>
    %158 = tpu.matmul %155, %157, %cst_141 {dimension_numbers = #tpu.dot_dimension_numbers<[1], [0], [0], [1], [0, 0, 1, 1], [], []>} : vector<16x64xbf16>, vector<64x128xbf16>, vector<16x128xf32> -> vector<16x128xf32>
    %159 = arith.addf %151, %158 : vector<16x128xf32>
    %c8_142 = arith.constant 8 : index
    %c0_143 = arith.constant 0 : index
    %c0_144 = arith.constant 0 : index
    %160 = vector.load %arg7[%c8_142, %c0_143, %c0_144] : memref<9x16x64xbf16, #tpu.memory_space<vmem>>, vector<1x16x64xbf16>
    %161 = vector.shape_cast %160 : vector<1x16x64xbf16> to vector<16x64xbf16>
    %cst_145 = arith.constant dense<0.000000e+00> : vector<16x64xf32>
    %162 = tpu.matmul %161, %94, %cst_145 {dimension_numbers = #tpu.dot_dimension_numbers<[1], [0], [0], [1], [0, 0, 1, 1], [], []>} : vector<16x64xbf16>, vector<64x64xbf16>, vector<16x64xf32> -> vector<16x64xf32>
    %163 = arith.truncf %162 : vector<16x64xf32> to vector<16x64xbf16>
    %c8_146 = arith.constant 8 : index
    %c0_147 = arith.constant 0 : index
    %c0_148 = arith.constant 0 : index
    %164 = vector.load %arg8[%c8_146, %c0_147, %c0_148] : memref<9x64x128xbf16, #tpu.memory_space<vmem>>, vector<1x64x128xbf16>
    %165 = vector.shape_cast %164 : vector<1x64x128xbf16> to vector<64x128xbf16>
    %cst_149 = arith.constant dense<0.000000e+00> : vector<16x128xf32>
    %166 = tpu.matmul %163, %165, %cst_149 {dimension_numbers = #tpu.dot_dimension_numbers<[1], [0], [0], [1], [0, 0, 1, 1], [], []>} : vector<16x64xbf16>, vector<64x128xbf16>, vector<16x128xf32> -> vector<16x128xf32>
    %167 = arith.addf %159, %166 : vector<16x128xf32>
    %c0_150 = arith.constant 0 : index
    %c0_151 = arith.constant 0 : index
    %168 = vector.load %arg9[%c0_150, %c0_151] : memref<1x128xf32, #tpu.memory_space<vmem>>, vector<1x128xf32>
    %169 = vector.broadcast %168 : vector<1x128xf32> to vector<16x128xf32>
    %170 = arith.addf %167, %169 : vector<16x128xf32>
    %cst_152 = arith.constant 0.000000e+00 : f32
    %171 = vector.broadcast %cst_152 : f32 to vector<16x128xf32>
    %172 = arith.cmpf oge, %170, %171 : vector<16x128xf32>
    %cst_153 = arith.constant 2.000000e-01 : f32
    %173 = vector.broadcast %cst_153 : f32 to vector<16x128xf32>
    %174 = arith.mulf %173, %170 : vector<16x128xf32>
    %175 = arith.select %172, %170, %174 : vector<16x128xi1>, vector<16x128xf32>
    %176 = arith.truncf %175 : vector<16x128xf32> to vector<16x128xbf16>
    %cst_154 = arith.constant 0.000000e+00 : f32
    %177 = vector.broadcast %cst_154 : f32 to vector<4x256xf32>
    %c0_155 = arith.constant 0 : index
    %c0_156 = arith.constant 0 : index
    %c0_157 = arith.constant 0 : index
    %178 = vector.load %arg10[%c0_155, %c0_156, %c0_157] : memref<9x4x16xbf16, #tpu.memory_space<vmem>>, vector<1x4x16xbf16>
    %179 = vector.shape_cast %178 : vector<1x4x16xbf16> to vector<4x16xbf16>
    %cst_158 = arith.constant dense<0.000000e+00> : vector<4x128xf32>
    %180 = tpu.matmul %179, %176, %cst_158 {dimension_numbers = #tpu.dot_dimension_numbers<[1], [0], [0], [1], [0, 0, 1, 1], [], []>} : vector<4x16xbf16>, vector<16x128xbf16>, vector<4x128xf32> -> vector<4x128xf32>
    %181 = arith.truncf %180 : vector<4x128xf32> to vector<4x128xbf16>
    %c0_159 = arith.constant 0 : index
    %c0_160 = arith.constant 0 : index
    %c0_161 = arith.constant 0 : index
    %182 = vector.load %arg11[%c0_159, %c0_160, %c0_161] : memref<9x128x256xbf16, #tpu.memory_space<vmem>>, vector<1x128x256xbf16>
    %183 = vector.shape_cast %182 : vector<1x128x256xbf16> to vector<128x256xbf16>
    %cst_162 = arith.constant dense<0.000000e+00> : vector<4x256xf32>
    %184 = tpu.matmul %181, %183, %cst_162 {dimension_numbers = #tpu.dot_dimension_numbers<[1], [0], [0], [1], [0, 0, 1, 1], [], []>} : vector<4x128xbf16>, vector<128x256xbf16>, vector<4x256xf32> -> vector<4x256xf32>
    %185 = arith.addf %177, %184 : vector<4x256xf32>
    %c1_163 = arith.constant 1 : index
    %c0_164 = arith.constant 0 : index
    %c0_165 = arith.constant 0 : index
    %186 = vector.load %arg10[%c1_163, %c0_164, %c0_165] : memref<9x4x16xbf16, #tpu.memory_space<vmem>>, vector<1x4x16xbf16>
    %187 = vector.shape_cast %186 : vector<1x4x16xbf16> to vector<4x16xbf16>
    %cst_166 = arith.constant dense<0.000000e+00> : vector<4x128xf32>
    %188 = tpu.matmul %187, %176, %cst_166 {dimension_numbers = #tpu.dot_dimension_numbers<[1], [0], [0], [1], [0, 0, 1, 1], [], []>} : vector<4x16xbf16>, vector<16x128xbf16>, vector<4x128xf32> -> vector<4x128xf32>
    %189 = arith.truncf %188 : vector<4x128xf32> to vector<4x128xbf16>
    %c1_167 = arith.constant 1 : index
    %c0_168 = arith.constant 0 : index
    %c0_169 = arith.constant 0 : index
    %190 = vector.load %arg11[%c1_167, %c0_168, %c0_169] : memref<9x128x256xbf16, #tpu.memory_space<vmem>>, vector<1x128x256xbf16>
    %191 = vector.shape_cast %190 : vector<1x128x256xbf16> to vector<128x256xbf16>
    %cst_170 = arith.constant dense<0.000000e+00> : vector<4x256xf32>
    %192 = tpu.matmul %189, %191, %cst_170 {dimension_numbers = #tpu.dot_dimension_numbers<[1], [0], [0], [1], [0, 0, 1, 1], [], []>} : vector<4x128xbf16>, vector<128x256xbf16>, vector<4x256xf32> -> vector<4x256xf32>
    %193 = arith.addf %185, %192 : vector<4x256xf32>
    %c2_171 = arith.constant 2 : index
    %c0_172 = arith.constant 0 : index
    %c0_173 = arith.constant 0 : index
    %194 = vector.load %arg10[%c2_171, %c0_172, %c0_173] : memref<9x4x16xbf16, #tpu.memory_space<vmem>>, vector<1x4x16xbf16>
    %195 = vector.shape_cast %194 : vector<1x4x16xbf16> to vector<4x16xbf16>
    %cst_174 = arith.constant dense<0.000000e+00> : vector<4x128xf32>
    %196 = tpu.matmul %195, %176, %cst_174 {dimension_numbers = #tpu.dot_dimension_numbers<[1], [0], [0], [1], [0, 0, 1, 1], [], []>} : vector<4x16xbf16>, vector<16x128xbf16>, vector<4x128xf32> -> vector<4x128xf32>
    %197 = arith.truncf %196 : vector<4x128xf32> to vector<4x128xbf16>
    %c2_175 = arith.constant 2 : index
    %c0_176 = arith.constant 0 : index
    %c0_177 = arith.constant 0 : index
    %198 = vector.load %arg11[%c2_175, %c0_176, %c0_177] : memref<9x128x256xbf16, #tpu.memory_space<vmem>>, vector<1x128x256xbf16>
    %199 = vector.shape_cast %198 : vector<1x128x256xbf16> to vector<128x256xbf16>
    %cst_178 = arith.constant dense<0.000000e+00> : vector<4x256xf32>
    %200 = tpu.matmul %197, %199, %cst_178 {dimension_numbers = #tpu.dot_dimension_numbers<[1], [0], [0], [1], [0, 0, 1, 1], [], []>} : vector<4x128xbf16>, vector<128x256xbf16>, vector<4x256xf32> -> vector<4x256xf32>
    %201 = arith.addf %193, %200 : vector<4x256xf32>
    %c3_179 = arith.constant 3 : index
    %c0_180 = arith.constant 0 : index
    %c0_181 = arith.constant 0 : index
    %202 = vector.load %arg10[%c3_179, %c0_180, %c0_181] : memref<9x4x16xbf16, #tpu.memory_space<vmem>>, vector<1x4x16xbf16>
    %203 = vector.shape_cast %202 : vector<1x4x16xbf16> to vector<4x16xbf16>
    %cst_182 = arith.constant dense<0.000000e+00> : vector<4x128xf32>
    %204 = tpu.matmul %203, %176, %cst_182 {dimension_numbers = #tpu.dot_dimension_numbers<[1], [0], [0], [1], [0, 0, 1, 1], [], []>} : vector<4x16xbf16>, vector<16x128xbf16>, vector<4x128xf32> -> vector<4x128xf32>
    %205 = arith.truncf %204 : vector<4x128xf32> to vector<4x128xbf16>
    %c3_183 = arith.constant 3 : index
    %c0_184 = arith.constant 0 : index
    %c0_185 = arith.constant 0 : index
    %206 = vector.load %arg11[%c3_183, %c0_184, %c0_185] : memref<9x128x256xbf16, #tpu.memory_space<vmem>>, vector<1x128x256xbf16>
    %207 = vector.shape_cast %206 : vector<1x128x256xbf16> to vector<128x256xbf16>
    %cst_186 = arith.constant dense<0.000000e+00> : vector<4x256xf32>
    %208 = tpu.matmul %205, %207, %cst_186 {dimension_numbers = #tpu.dot_dimension_numbers<[1], [0], [0], [1], [0, 0, 1, 1], [], []>} : vector<4x128xbf16>, vector<128x256xbf16>, vector<4x256xf32> -> vector<4x256xf32>
    %209 = arith.addf %201, %208 : vector<4x256xf32>
    %c4_187 = arith.constant 4 : index
    %c0_188 = arith.constant 0 : index
    %c0_189 = arith.constant 0 : index
    %210 = vector.load %arg10[%c4_187, %c0_188, %c0_189] : memref<9x4x16xbf16, #tpu.memory_space<vmem>>, vector<1x4x16xbf16>
    %211 = vector.shape_cast %210 : vector<1x4x16xbf16> to vector<4x16xbf16>
    %cst_190 = arith.constant dense<0.000000e+00> : vector<4x128xf32>
    %212 = tpu.matmul %211, %176, %cst_190 {dimension_numbers = #tpu.dot_dimension_numbers<[1], [0], [0], [1], [0, 0, 1, 1], [], []>} : vector<4x16xbf16>, vector<16x128xbf16>, vector<4x128xf32> -> vector<4x128xf32>
    %213 = arith.truncf %212 : vector<4x128xf32> to vector<4x128xbf16>
    %c4_191 = arith.constant 4 : index
    %c0_192 = arith.constant 0 : index
    %c0_193 = arith.constant 0 : index
    %214 = vector.load %arg11[%c4_191, %c0_192, %c0_193] : memref<9x128x256xbf16, #tpu.memory_space<vmem>>, vector<1x128x256xbf16>
    %215 = vector.shape_cast %214 : vector<1x128x256xbf16> to vector<128x256xbf16>
    %cst_194 = arith.constant dense<0.000000e+00> : vector<4x256xf32>
    %216 = tpu.matmul %213, %215, %cst_194 {dimension_numbers = #tpu.dot_dimension_numbers<[1], [0], [0], [1], [0, 0, 1, 1], [], []>} : vector<4x128xbf16>, vector<128x256xbf16>, vector<4x256xf32> -> vector<4x256xf32>
    %217 = arith.addf %209, %216 : vector<4x256xf32>
    %c5_195 = arith.constant 5 : index
    %c0_196 = arith.constant 0 : index
    %c0_197 = arith.constant 0 : index
    %218 = vector.load %arg10[%c5_195, %c0_196, %c0_197] : memref<9x4x16xbf16, #tpu.memory_space<vmem>>, vector<1x4x16xbf16>
    %219 = vector.shape_cast %218 : vector<1x4x16xbf16> to vector<4x16xbf16>
    %cst_198 = arith.constant dense<0.000000e+00> : vector<4x128xf32>
    %220 = tpu.matmul %219, %176, %cst_198 {dimension_numbers = #tpu.dot_dimension_numbers<[1], [0], [0], [1], [0, 0, 1, 1], [], []>} : vector<4x16xbf16>, vector<16x128xbf16>, vector<4x128xf32> -> vector<4x128xf32>
    %221 = arith.truncf %220 : vector<4x128xf32> to vector<4x128xbf16>
    %c5_199 = arith.constant 5 : index
    %c0_200 = arith.constant 0 : index
    %c0_201 = arith.constant 0 : index
    %222 = vector.load %arg11[%c5_199, %c0_200, %c0_201] : memref<9x128x256xbf16, #tpu.memory_space<vmem>>, vector<1x128x256xbf16>
    %223 = vector.shape_cast %222 : vector<1x128x256xbf16> to vector<128x256xbf16>
    %cst_202 = arith.constant dense<0.000000e+00> : vector<4x256xf32>
    %224 = tpu.matmul %221, %223, %cst_202 {dimension_numbers = #tpu.dot_dimension_numbers<[1], [0], [0], [1], [0, 0, 1, 1], [], []>} : vector<4x128xbf16>, vector<128x256xbf16>, vector<4x256xf32> -> vector<4x256xf32>
    %225 = arith.addf %217, %224 : vector<4x256xf32>
    %c6_203 = arith.constant 6 : index
    %c0_204 = arith.constant 0 : index
    %c0_205 = arith.constant 0 : index
    %226 = vector.load %arg10[%c6_203, %c0_204, %c0_205] : memref<9x4x16xbf16, #tpu.memory_space<vmem>>, vector<1x4x16xbf16>
    %227 = vector.shape_cast %226 : vector<1x4x16xbf16> to vector<4x16xbf16>
    %cst_206 = arith.constant dense<0.000000e+00> : vector<4x128xf32>
    %228 = tpu.matmul %227, %176, %cst_206 {dimension_numbers = #tpu.dot_dimension_numbers<[1], [0], [0], [1], [0, 0, 1, 1], [], []>} : vector<4x16xbf16>, vector<16x128xbf16>, vector<4x128xf32> -> vector<4x128xf32>
    %229 = arith.truncf %228 : vector<4x128xf32> to vector<4x128xbf16>
    %c6_207 = arith.constant 6 : index
    %c0_208 = arith.constant 0 : index
    %c0_209 = arith.constant 0 : index
    %230 = vector.load %arg11[%c6_207, %c0_208, %c0_209] : memref<9x128x256xbf16, #tpu.memory_space<vmem>>, vector<1x128x256xbf16>
    %231 = vector.shape_cast %230 : vector<1x128x256xbf16> to vector<128x256xbf16>
    %cst_210 = arith.constant dense<0.000000e+00> : vector<4x256xf32>
    %232 = tpu.matmul %229, %231, %cst_210 {dimension_numbers = #tpu.dot_dimension_numbers<[1], [0], [0], [1], [0, 0, 1, 1], [], []>} : vector<4x128xbf16>, vector<128x256xbf16>, vector<4x256xf32> -> vector<4x256xf32>
    %233 = arith.addf %225, %232 : vector<4x256xf32>
    %c7_211 = arith.constant 7 : index
    %c0_212 = arith.constant 0 : index
    %c0_213 = arith.constant 0 : index
    %234 = vector.load %arg10[%c7_211, %c0_212, %c0_213] : memref<9x4x16xbf16, #tpu.memory_space<vmem>>, vector<1x4x16xbf16>
    %235 = vector.shape_cast %234 : vector<1x4x16xbf16> to vector<4x16xbf16>
    %cst_214 = arith.constant dense<0.000000e+00> : vector<4x128xf32>
    %236 = tpu.matmul %235, %176, %cst_214 {dimension_numbers = #tpu.dot_dimension_numbers<[1], [0], [0], [1], [0, 0, 1, 1], [], []>} : vector<4x16xbf16>, vector<16x128xbf16>, vector<4x128xf32> -> vector<4x128xf32>
    %237 = arith.truncf %236 : vector<4x128xf32> to vector<4x128xbf16>
    %c7_215 = arith.constant 7 : index
    %c0_216 = arith.constant 0 : index
    %c0_217 = arith.constant 0 : index
    %238 = vector.load %arg11[%c7_215, %c0_216, %c0_217] : memref<9x128x256xbf16, #tpu.memory_space<vmem>>, vector<1x128x256xbf16>
    %239 = vector.shape_cast %238 : vector<1x128x256xbf16> to vector<128x256xbf16>
    %cst_218 = arith.constant dense<0.000000e+00> : vector<4x256xf32>
    %240 = tpu.matmul %237, %239, %cst_218 {dimension_numbers = #tpu.dot_dimension_numbers<[1], [0], [0], [1], [0, 0, 1, 1], [], []>} : vector<4x128xbf16>, vector<128x256xbf16>, vector<4x256xf32> -> vector<4x256xf32>
    %241 = arith.addf %233, %240 : vector<4x256xf32>
    %c8_219 = arith.constant 8 : index
    %c0_220 = arith.constant 0 : index
    %c0_221 = arith.constant 0 : index
    %242 = vector.load %arg10[%c8_219, %c0_220, %c0_221] : memref<9x4x16xbf16, #tpu.memory_space<vmem>>, vector<1x4x16xbf16>
    %243 = vector.shape_cast %242 : vector<1x4x16xbf16> to vector<4x16xbf16>
    %cst_222 = arith.constant dense<0.000000e+00> : vector<4x128xf32>
    %244 = tpu.matmul %243, %176, %cst_222 {dimension_numbers = #tpu.dot_dimension_numbers<[1], [0], [0], [1], [0, 0, 1, 1], [], []>} : vector<4x16xbf16>, vector<16x128xbf16>, vector<4x128xf32> -> vector<4x128xf32>
    %245 = arith.truncf %244 : vector<4x128xf32> to vector<4x128xbf16>
    %c8_223 = arith.constant 8 : index
    %c0_224 = arith.constant 0 : index
    %c0_225 = arith.constant 0 : index
    %246 = vector.load %arg11[%c8_223, %c0_224, %c0_225] : memref<9x128x256xbf16, #tpu.memory_space<vmem>>, vector<1x128x256xbf16>
    %247 = vector.shape_cast %246 : vector<1x128x256xbf16> to vector<128x256xbf16>
    %cst_226 = arith.constant dense<0.000000e+00> : vector<4x256xf32>
    %248 = tpu.matmul %245, %247, %cst_226 {dimension_numbers = #tpu.dot_dimension_numbers<[1], [0], [0], [1], [0, 0, 1, 1], [], []>} : vector<4x128xbf16>, vector<128x256xbf16>, vector<4x256xf32> -> vector<4x256xf32>
    %249 = arith.addf %241, %248 : vector<4x256xf32>
    %c0_227 = arith.constant 0 : index
    %c0_228 = arith.constant 0 : index
    %250 = vector.load %arg12[%c0_227, %c0_228] : memref<1x256xf32, #tpu.memory_space<vmem>>, vector<1x256xf32>
    %251 = vector.broadcast %250 : vector<1x256xf32> to vector<4x256xf32>
    %252 = arith.addf %249, %251 : vector<4x256xf32>
    %cst_229 = arith.constant 0.000000e+00 : f32
    %253 = vector.broadcast %cst_229 : f32 to vector<4x256xf32>
    %254 = arith.cmpf oge, %252, %253 : vector<4x256xf32>
    %cst_230 = arith.constant 2.000000e-01 : f32
    %255 = vector.broadcast %cst_230 : f32 to vector<4x256xf32>
    %256 = arith.mulf %255, %252 : vector<4x256xf32>
    %257 = arith.select %254, %252, %256 : vector<4x256xi1>, vector<4x256xf32>
    %258 = arith.truncf %257 : vector<4x256xf32> to vector<4x256xbf16>
    %cst_231 = arith.constant 0.000000e+00 : f32
    %259 = vector.broadcast %cst_231 : f32 to vector<1x512xf32>
    %c0_232 = arith.constant 0 : index
    %c0_233 = arith.constant 0 : index
    %c0_234 = arith.constant 0 : index
    %260 = vector.load %arg13[%c0_232, %c0_233, %c0_234] : memref<4x1x4xbf16, #tpu.memory_space<vmem>>, vector<1x1x4xbf16>
    %261 = vector.shape_cast %260 : vector<1x1x4xbf16> to vector<1x4xbf16>
    %cst_235 = arith.constant dense<0.000000e+00> : vector<1x256xf32>
    %262 = tpu.matmul %261, %258, %cst_235 {dimension_numbers = #tpu.dot_dimension_numbers<[1], [0], [0], [1], [0, 0, 1, 1], [], []>} : vector<1x4xbf16>, vector<4x256xbf16>, vector<1x256xf32> -> vector<1x256xf32>
    %263 = arith.truncf %262 : vector<1x256xf32> to vector<1x256xbf16>
    %c0_236 = arith.constant 0 : index
    %c0_237 = arith.constant 0 : index
    %c0_238 = arith.constant 0 : index
    %264 = vector.load %arg14[%c0_236, %c0_237, %c0_238] : memref<4x256x512xbf16, #tpu.memory_space<vmem>>, vector<1x256x512xbf16>
    %265 = vector.shape_cast %264 : vector<1x256x512xbf16> to vector<256x512xbf16>
    %cst_239 = arith.constant dense<0.000000e+00> : vector<1x512xf32>
    %266 = tpu.matmul %263, %265, %cst_239 {dimension_numbers = #tpu.dot_dimension_numbers<[1], [0], [0], [1], [0, 0, 1, 1], [], []>} : vector<1x256xbf16>, vector<256x512xbf16>, vector<1x512xf32> -> vector<1x512xf32>
    %267 = arith.addf %259, %266 : vector<1x512xf32>
    %c1_240 = arith.constant 1 : index
    %c0_241 = arith.constant 0 : index
    %c0_242 = arith.constant 0 : index
    %268 = vector.load %arg13[%c1_240, %c0_241, %c0_242] : memref<4x1x4xbf16, #tpu.memory_space<vmem>>, vector<1x1x4xbf16>
    %269 = vector.shape_cast %268 : vector<1x1x4xbf16> to vector<1x4xbf16>
    %cst_243 = arith.constant dense<0.000000e+00> : vector<1x256xf32>
    %270 = tpu.matmul %269, %258, %cst_243 {dimension_numbers = #tpu.dot_dimension_numbers<[1], [0], [0], [1], [0, 0, 1, 1], [], []>} : vector<1x4xbf16>, vector<4x256xbf16>, vector<1x256xf32> -> vector<1x256xf32>
    %271 = arith.truncf %270 : vector<1x256xf32> to vector<1x256xbf16>
    %c1_244 = arith.constant 1 : index
    %c0_245 = arith.constant 0 : index
    %c0_246 = arith.constant 0 : index
    %272 = vector.load %arg14[%c1_244, %c0_245, %c0_246] : memref<4x256x512xbf16, #tpu.memory_space<vmem>>, vector<1x256x512xbf16>
    %273 = vector.shape_cast %272 : vector<1x256x512xbf16> to vector<256x512xbf16>
    %cst_247 = arith.constant dense<0.000000e+00> : vector<1x512xf32>
    %274 = tpu.matmul %271, %273, %cst_247 {dimension_numbers = #tpu.dot_dimension_numbers<[1], [0], [0], [1], [0, 0, 1, 1], [], []>} : vector<1x256xbf16>, vector<256x512xbf16>, vector<1x512xf32> -> vector<1x512xf32>
    %275 = arith.addf %267, %274 : vector<1x512xf32>
    %c2_248 = arith.constant 2 : index
    %c0_249 = arith.constant 0 : index
    %c0_250 = arith.constant 0 : index
    %276 = vector.load %arg13[%c2_248, %c0_249, %c0_250] : memref<4x1x4xbf16, #tpu.memory_space<vmem>>, vector<1x1x4xbf16>
    %277 = vector.shape_cast %276 : vector<1x1x4xbf16> to vector<1x4xbf16>
    %cst_251 = arith.constant dense<0.000000e+00> : vector<1x256xf32>
    %278 = tpu.matmul %277, %258, %cst_251 {dimension_numbers = #tpu.dot_dimension_numbers<[1], [0], [0], [1], [0, 0, 1, 1], [], []>} : vector<1x4xbf16>, vector<4x256xbf16>, vector<1x256xf32> -> vector<1x256xf32>
    %279 = arith.truncf %278 : vector<1x256xf32> to vector<1x256xbf16>
    %c2_252 = arith.constant 2 : index
    %c0_253 = arith.constant 0 : index
    %c0_254 = arith.constant 0 : index
    %280 = vector.load %arg14[%c2_252, %c0_253, %c0_254] : memref<4x256x512xbf16, #tpu.memory_space<vmem>>, vector<1x256x512xbf16>
    %281 = vector.shape_cast %280 : vector<1x256x512xbf16> to vector<256x512xbf16>
    %cst_255 = arith.constant dense<0.000000e+00> : vector<1x512xf32>
    %282 = tpu.matmul %279, %281, %cst_255 {dimension_numbers = #tpu.dot_dimension_numbers<[1], [0], [0], [1], [0, 0, 1, 1], [], []>} : vector<1x256xbf16>, vector<256x512xbf16>, vector<1x512xf32> -> vector<1x512xf32>
    %283 = arith.addf %275, %282 : vector<1x512xf32>
    %c3_256 = arith.constant 3 : index
    %c0_257 = arith.constant 0 : index
    %c0_258 = arith.constant 0 : index
    %284 = vector.load %arg13[%c3_256, %c0_257, %c0_258] : memref<4x1x4xbf16, #tpu.memory_space<vmem>>, vector<1x1x4xbf16>
    %285 = vector.shape_cast %284 : vector<1x1x4xbf16> to vector<1x4xbf16>
    %cst_259 = arith.constant dense<0.000000e+00> : vector<1x256xf32>
    %286 = tpu.matmul %285, %258, %cst_259 {dimension_numbers = #tpu.dot_dimension_numbers<[1], [0], [0], [1], [0, 0, 1, 1], [], []>} : vector<1x4xbf16>, vector<4x256xbf16>, vector<1x256xf32> -> vector<1x256xf32>
    %287 = arith.truncf %286 : vector<1x256xf32> to vector<1x256xbf16>
    %c3_260 = arith.constant 3 : index
    %c0_261 = arith.constant 0 : index
    %c0_262 = arith.constant 0 : index
    %288 = vector.load %arg14[%c3_260, %c0_261, %c0_262] : memref<4x256x512xbf16, #tpu.memory_space<vmem>>, vector<1x256x512xbf16>
    %289 = vector.shape_cast %288 : vector<1x256x512xbf16> to vector<256x512xbf16>
    %cst_263 = arith.constant dense<0.000000e+00> : vector<1x512xf32>
    %290 = tpu.matmul %287, %289, %cst_263 {dimension_numbers = #tpu.dot_dimension_numbers<[1], [0], [0], [1], [0, 0, 1, 1], [], []>} : vector<1x256xbf16>, vector<256x512xbf16>, vector<1x512xf32> -> vector<1x512xf32>
    %291 = arith.addf %283, %290 : vector<1x512xf32>
    %c0_264 = arith.constant 0 : index
    %c0_265 = arith.constant 0 : index
    %292 = vector.load %arg15[%c0_264, %c0_265] : memref<1x512xf32, #tpu.memory_space<vmem>>, vector<1x512xf32>
    %293 = arith.addf %291, %292 : vector<1x512xf32>
    %cst_266 = arith.constant 0.000000e+00 : f32
    %294 = vector.broadcast %cst_266 : f32 to vector<1x512xf32>
    %295 = arith.cmpf oge, %293, %294 : vector<1x512xf32>
    %cst_267 = arith.constant 2.000000e-01 : f32
    %296 = vector.broadcast %cst_267 : f32 to vector<1x512xf32>
    %297 = arith.mulf %296, %293 : vector<1x512xf32>
    %298 = arith.select %295, %293, %297 : vector<1x512xi1>, vector<1x512xf32>
    %299 = arith.truncf %298 : vector<1x512xf32> to vector<1x512xbf16>
    %cst_268 = arith.constant 0.000000e+00 : f32
    %300 = vector.broadcast %cst_268 : f32 to vector<1x3xf32>
    %c0_269 = arith.constant 0 : index
    %c0_270 = arith.constant 0 : index
    %c0_271 = arith.constant 0 : index
    %301 = vector.load %arg16[%c0_269, %c0_270, %c0_271] : memref<1x1x1xbf16, #tpu.memory_space<vmem>>, vector<1x1x1xbf16>
    %302 = vector.shape_cast %301 : vector<1x1x1xbf16> to vector<1x1xbf16>
    %303 = arith.extf %302 : vector<1x1xbf16> to vector<1x1xf32>
    %304 = arith.extf %299 : vector<1x512xbf16> to vector<1x512xf32>
    %305 = vector.broadcast %303 : vector<1x1xf32> to vector<1x512xf32>
    %306 = arith.mulf %305, %304 : vector<1x512xf32>
    %307 = arith.truncf %306 : vector<1x512xf32> to vector<1x512xbf16>
    %c0_272 = arith.constant 0 : index
    %c0_273 = arith.constant 0 : index
    %c0_274 = arith.constant 0 : index
    %308 = vector.load %arg17[%c0_272, %c0_273, %c0_274] : memref<1x512x3xbf16, #tpu.memory_space<vmem>>, vector<1x512x3xbf16>
    %309 = vector.shape_cast %308 : vector<1x512x3xbf16> to vector<512x3xbf16>
    %cst_275 = arith.constant dense<0.000000e+00> : vector<1x3xf32>
    %310 = tpu.matmul %307, %309, %cst_275 {dimension_numbers = #tpu.dot_dimension_numbers<[1], [0], [0], [1], [0, 0, 1, 1], [], []>} : vector<1x512xbf16>, vector<512x3xbf16>, vector<1x3xf32> -> vector<1x3xf32>
    %311 = arith.addf %300, %310 : vector<1x3xf32>
    %c0_276 = arith.constant 0 : index
    %c0_277 = arith.constant 0 : index
    %312 = vector.load %arg18[%c0_276, %c0_277] : memref<1x3xf32, #tpu.memory_space<vmem>>, vector<1x3xf32>
    %313 = arith.addf %311, %312 : vector<1x3xf32>
    %cst_278 = arith.constant 0.000000e+00 : f32
    %314 = vector.broadcast %cst_278 : f32 to vector<1x3xf32>
    %315 = arith.cmpf oge, %313, %314 : vector<1x3xf32>
    %cst_279 = arith.constant 2.000000e-01 : f32
    %316 = vector.broadcast %cst_279 : f32 to vector<1x3xf32>
    %317 = arith.mulf %316, %313 : vector<1x3xf32>
    %318 = arith.select %315, %313, %317 : vector<1x3xi1>, vector<1x3xf32>
    %c0_280 = arith.constant 0 : index
    %c0_281 = arith.constant 0 : index
    %c0_282 = arith.constant 0 : index
    %319 = vector.load %arg19[%c0_280, %c0_281, %c0_282] : memref<1x1x3xf32, #tpu.memory_space<vmem>>, vector<1x1x3xf32>
    %320 = vector.shape_cast %319 : vector<1x1x3xf32> to vector<1x3xf32>
    %321 = vector.shape_cast %318 : vector<1x3xf32> to vector<1x1x3xf32>
    tpu.vector_store %arg19[%c0_280, %c0_281, %c0_282], %321 {strides = array<i32>} : memref<1x1x3xf32, #tpu.memory_space<vmem>>, vector<1x1x3xf32>,
    return
  }
  func.func @transform_0(%arg0: i32) -> (i32, i32, i32) {
    %c0_i32 = arith.constant 0 : i32
    %c0_i32_0 = arith.constant 0 : i32
    %c0_i32_1 = arith.constant 0 : i32
    return %arg0, %c0_i32, %c0_i32_0 : i32, i32, i32
  }
  func.func @transform_1(%arg0: i32) -> (i32, i32) {
    %c0_i32 = arith.constant 0 : i32
    %c0_i32_0 = arith.constant 0 : i32
    %c0_i32_1 = arith.constant 0 : i32
    return %c0_i32, %c0_i32_0 : i32, i32
  }
  func.func @transform_2(%arg0: i32) -> (i32, i32) {
    %c0_i32 = arith.constant 0 : i32
    %c0_i32_0 = arith.constant 0 : i32
    %c0_i32_1 = arith.constant 0 : i32
    return %c0_i32, %c0_i32_0 : i32, i32
  }
  func.func @transform_3(%arg0: i32) -> (i32, i32, i32) {
    %c0_i32 = arith.constant 0 : i32
    %c0_i32_0 = arith.constant 0 : i32
    %c0_i32_1 = arith.constant 0 : i32
    %c0_i32_2 = arith.constant 0 : i32
    return %c0_i32, %c0_i32_0, %c0_i32_1 : i32, i32, i32
  }
  func.func @transform_4(%arg0: i32) -> (i32, i32, i32) {
    %c0_i32 = arith.constant 0 : i32
    %c0_i32_0 = arith.constant 0 : i32
    %c0_i32_1 = arith.constant 0 : i32
    %c0_i32_2 = arith.constant 0 : i32
    return %c0_i32, %c0_i32_0, %c0_i32_1 : i32, i32, i32
  }
  func.func @transform_5(%arg0: i32) -> (i32, i32) {
    %c0_i32 = arith.constant 0 : i32
    %c0_i32_0 = arith.constant 0 : i32
    %c0_i32_1 = arith.constant 0 : i32
    return %c0_i32, %c0_i32_0 : i32, i32
  }
  func.func @transform_6(%arg0: i32) -> (i32, i32, i32) {
    %c0_i32 = arith.constant 0 : i32
    %c0_i32_0 = arith.constant 0 : i32
    %c0_i32_1 = arith.constant 0 : i32
    %c0_i32_2 = arith.constant 0 : i32
    return %c0_i32, %c0_i32_0, %c0_i32_1 : i32, i32, i32
  }
  func.func @transform_7(%arg0: i32) -> (i32, i32, i32) {
    %c0_i32 = arith.constant 0 : i32
    %c0_i32_0 = arith.constant 0 : i32
    %c0_i32_1 = arith.constant 0 : i32
    %c0_i32_2 = arith.constant 0 : i32
    return %c0_i32, %c0_i32_0, %c0_i32_1 : i32, i32, i32
  }
  func.func @transform_8(%arg0: i32) -> (i32, i32) {
    %c0_i32 = arith.constant 0 : i32
    %c0_i32_0 = arith.constant 0 : i32
    %c0_i32_1 = arith.constant 0 : i32
    return %c0_i32, %c0_i32_0 : i32, i32
  }
  func.func @transform_9(%arg0: i32) -> (i32, i32, i32) {
    %c0_i32 = arith.constant 0 : i32
    %c0_i32_0 = arith.constant 0 : i32
    %c0_i32_1 = arith.constant 0 : i32
    %c0_i32_2 = arith.constant 0 : i32
    return %c0_i32, %c0_i32_0, %c0_i32_1 : i32, i32, i32
  }
  func.func @transform_10(%arg0: i32) -> (i32, i32, i32) {
    %c0_i32 = arith.constant 0 : i32
    %c0_i32_0 = arith.constant 0 : i32
    %c0_i32_1 = arith.constant 0 : i32
    %c0_i32_2 = arith.constant 0 : i32
    return %c0_i32, %c0_i32_0, %c0_i32_1 : i32, i32, i32
  }
  func.func @transform_11(%arg0: i32) -> (i32, i32) {
    %c0_i32 = arith.constant 0 : i32
    %c0_i32_0 = arith.constant 0 : i32
    %c0_i32_1 = arith.constant 0 : i32
    return %c0_i32, %c0_i32_0 : i32, i32
  }
  func.func @transform_12(%arg0: i32) -> (i32, i32, i32) {
    %c0_i32 = arith.constant 0 : i32
    %c0_i32_0 = arith.constant 0 : i32
    %c0_i32_1 = arith.constant 0 : i32
    %c0_i32_2 = arith.constant 0 : i32
    return %c0_i32, %c0_i32_0, %c0_i32_1 : i32, i32, i32
  }
  func.func @transform_13(%arg0: i32) -> (i32, i32, i32) {
    %c0_i32 = arith.constant 0 : i32
    %c0_i32_0 = arith.constant 0 : i32
    %c0_i32_1 = arith.constant 0 : i32
    %c0_i32_2 = arith.constant 0 : i32
    return %c0_i32, %c0_i32_0, %c0_i32_1 : i32, i32, i32
  }
  func.func @transform_14(%arg0: i32) -> (i32, i32) {
    %c0_i32 = arith.constant 0 : i32
    %c0_i32_0 = arith.constant 0 : i32
    %c0_i32_1 = arith.constant 0 : i32
    return %c0_i32, %c0_i32_0 : i32, i32
  }
  func.func @transform_15(%arg0: i32) -> (i32, i32, i32) {
    %c0_i32 = arith.constant 0 : i32
    %c0_i32_0 = arith.constant 0 : i32
    %c0_i32_1 = arith.constant 0 : i32
    %c0_i32_2 = arith.constant 0 : i32
    return %c0_i32, %c0_i32_0, %c0_i32_1 : i32, i32, i32
  }
  func.func @transform_16(%arg0: i32) -> (i32, i32, i32) {
    %c0_i32 = arith.constant 0 : i32
    %c0_i32_0 = arith.constant 0 : i32
    %c0_i32_1 = arith.constant 0 : i32
    %c0_i32_2 = arith.constant 0 : i32
    return %c0_i32, %c0_i32_0, %c0_i32_1 : i32, i32, i32
  }
  func.func @transform_17(%arg0: i32) -> (i32, i32) {
    %c0_i32 = arith.constant 0 : i32
    %c0_i32_0 = arith.constant 0 : i32
    %c0_i32_1 = arith.constant 0 : i32
    return %c0_i32, %c0_i32_0 : i32, i32
  }
  func.func @transform_18(%arg0: i32) -> (i32, i32, i32) {
    %c0_i32 = arith.constant 0 : i32
    %c0_i32_0 = arith.constant 0 : i32
    %c0_i32_1 = arith.constant 0 : i32
    return %arg0, %c0_i32, %c0_i32_0 : i32, i32, i32
  }
}

</mosaic_0001>

<bundles_post_ra>
// kernel: _lambda_.1
= control target key start
LH: loop header
LB: loop body
LE: loop exit
PB: predicated region body
PF: predicated region fallthrough
CT: control target
= control target key end

     0   :  { %s14385_s0 = inlined_call_operand.vmem [shape: bf16[2,256,36], index: 0, kind: input, shape index: {}]   ;;  %s14386_s1 = inlined_call_operand.vmem [shape: bf16[36,32], index: 1, kind: input, shape index: {}]   ;;  %s14387_s2 = inlined_call_operand.vmem [shape: f32[1,32], index: 2, kind: input, shape index: {}]   ;;  %s14388_s3 = inlined_call_operand.vmem [shape: bf16[9,64,256], index: 3, kind: input, shape index: {}]   ;;  %s14389_s4 = inlined_call_operand.vmem [shape: bf16[9,32,64], index: 4, kind: input, shape index: {}]   ;;  %s14390_s5 = inlined_call_operand.vmem [shape: f32[1,64], index: 5, kind: input, shape index: {}]   ;;  %s14391_s6 = inlined_call_operand.vmem [shape: bf16[9,16,64], index: 6, kind: input, shape index: {}]   ;;  %s14392_s7 = inlined_call_operand.vmem [shape: bf16[9,64,128], index: 7, kind: input, shape index: {}]   ;;  %s14393_s8 = inlined_call_operand.vmem [shape: f32[1,128], index: 8, kind: input, shape index: {}]   ;;  %s14394_s9 = inlined_call_operand.vmem [shape: bf16[9,4,16], index: 9, kind: input, shape index: {}]   ;;  %s14395_s10 = inlined_call_operand.vmem [shape: bf16[9,128,256], index: 10, kind: input, shape index: {}]   ;;  %s14396_s11 = inlined_call_operand.vmem [shape: f32[1,256], index: 11, kind: input, shape index: {}]   ;;  %s14397_s12 = inlined_call_operand.vmem [shape: bf16[4,1,4], index: 12, kind: input, shape index: {}]   ;;  %s14398_s13 = inlined_call_operand.vmem [shape: bf16[4,256,512], index: 13, kind: input, shape index: {}]   ;;  %s14399_s14 = inlined_call_operand.vmem [shape: f32[1,512], index: 14, kind: input, shape index: {}]   ;;  %s14400_s15 = inlined_call_operand.<no memory space> [shape: bf16[1,1,1], index: 15, kind: input, shape index: {}]   ;;  %s14401_s16 = inlined_call_operand.vmem [shape: bf16[1,512,3], index: 16, kind: input, shape index: {}]   ;;  %s14402_s17 = inlined_call_operand.vmem [shape: f32[1,3], index: 17, kind: input, shape index: {}]   ;;  %s14403_s18 = inlined_call_operand.hbm [shape: f32[2,1,3], index: 18, kind: output, shape index: {}]  }
   0x1   :  { %14409 = sst [smem:[#allocation10_spill]] %s14385_s0  ;;  %v23_v0 = vstv %s14400_s15 }
   0x2   :  { %14410 = sst [smem:[#allocation11_spill]] %s14386_s1  ;;  %24 = vst [vmem:[#allocation2] sm:$0x1] %v23_v0 }
   0x3   :  { %14411 = sst [smem:[#allocation12_spill]] %s14387_s2 }
   0x4   :  { %14412 = sst [smem:[#allocation13_spill]] %s14388_s3 }
   0x5   :  { %14413 = sst [smem:[#allocation14_spill]] %s14389_s4 }
   0x6   :  { %25 = vsyncpa [#allocation4], 0 }
   0x7   :  { %27 = vsyncpa [#allocation4 + $0x1], 0  ;;  %s11756_s29 = smov 0   ;;  %s11758_s30 = smov 0  }
   0x8   :  { %s11760_s0 = smov 0   ;;  %s11762_s19 = smov 0  }
   0x9 LB: > { %14414 = sst [smem:[#allocation6_spill]] %s11646_s0  ;;  %s11777_s15 = sadd.s32 4294967295, %s11650_s19   ;;  %s11650_s19 = sphi %s11762_s19, %s14426_s19   ;;  %s11646_s0 = sphi %s11760_s0, %s14428_s0   ;;  %s11642_s30 = sphi %s11758_s30, %s14430_s30   ;;  %s11638_s29 = sphi %s11756_s29, %s14429_s29  }
   0xa   : > { %s8528_s1 = sadd.s32 4294967294, %s11650_s19   ;;  %s11781_s20 = sadd.s32 1, %s11650_s19  }
   0xb   : > { %14415 = sst [smem:[#allocation7_spill]] %s11781_s20  ;;  %s423_s21 = sadd.s32 1, %s11646_s0 }
   0xc   : > { %s420_s22 = ssub.s32 %s11650_s19, %s11781_s20  ;;  %p433_p0 = scmp.ne.s32.totalorder %s11646_s0, %s11642_s30 }
   0xd   : > { %p421_p1 = scmp.eq.s32.totalorder %s420_s22, 0  ;;  %p434_p2 = scmp.eq.s32.totalorder %s11777_s15, 1 }
   0xe   : > { %p439_p3 = scmp.ne.s32.totalorder %s11642_s30, %s11638_s29  ;;  %p440_p4 = scmp.eq.s32.totalorder %s8528_s1, 1 }
   0xf   : > { %s11792_s2 = scalar_select %p421_p1, %s11646_s0, %s423_s21  }
  0x10   : > { %p11794_p5 = por %p434_p2, %p433_p0  ;;  %p11798_p6 = por %p440_p4, %p439_p3 }
  0x11   : > { %14416 = sst [smem:[#allocation8_spill]] %s11792_s2  ;;  %p8531_p7 = scmp.ge.s32.totalorder %s11650_s19, 1 }
  0x12   : > { %s14418_s24 = scalar_select %p11798_p6, 1, 0 }
  0x13   : > { %p517_p8 = scmp.lt.s32.totalorder %s11650_s19, 3 }
  0x14   : > { %14419 = sst [smem:[#allocation9_spill]] %s14418_s24 }
  0x15   : > { %p518_p9 = pnand %p8531_p7, %p517_p8 }
  0x16   : > { %s14420_s27 = sld [smem:[#allocation11_spill]] (!%p518_p9)  ;;  %p570_p10 = scmp.lt.s32.totalorder (!%p518_p9), %s11777_s15, 1 }
  0x17   : > { %521 = sbr.rel (%p518_p9) target bundleno = 4732 (0x127c), region = 92  ;;  %s14421_s20 = sld [smem:[#allocation10_spill]] (!%p518_p9) }
  0x18   : > { %s14422_s3 = sld [smem:[#allocation13_spill]] (!%p518_p9)  ;;  %s568_s22 = sand.u32 (!%p518_p9), 1, %s11642_s30  }
  0x19   : > { %s14423_s1 = sld [smem:[#allocation12_spill]] (!%p518_p9)  ;;  %s9717_s0 = sshll.u32 (!%p518_p9), %s11777_s15, 4 }
  0x1a   : > { %s14424_s4 = sld [smem:[#allocation14_spill]] (!%p518_p9)  ;;  %s14350_s28 = scalar_lea.hbm (!%p518_p9), %s14403_s18, %s9717_s0 }
  0x1c   : > { %v10768_v1 = vld [vmem:[%s14420_s27 + $0x10] ss:$0 sps:$4 sm:$0x33]   ;;  %vm764_vm0 = vcmask 1041408   ;;  %v10769_v2 = vld [vmem:[%s14420_s27 + $0x8] sm:$0xff]   ;;  %v10770_v4 = vld [vmem:[%s14420_s27] sm:$0xff]  }
  0x1d   : > { %10722 = vmatprep.subr.msk.bf16.mxu0 %vm764_vm0, %v10768_v1  ;;  %v766_v3 = vsel %vm764_vm0, %v10768_v1, 0  ;;  %s571_s2 = scalar_select %p570_p10, %s11777_s15, 1  ;;  %vm715_vm1 = vcmask 293888  }
  0x1e   : > { %10307 = vmatpush3.bf16.msra.mxu0 %v766_v3  ;;  %v10789_v21 = vld [vmem:[%s14422_s3 + $0x4] ss:$8 sps:$4 sm:$0xff]   ;;  %s11657_s15 = smov [#allocation3]  }
  0x1f   : > { %10308 = vmatprep.subr.bf16.mxu0 %v10769_v2  ;;  %s9720_s25 = sshll.u32 %s571_s2, 7  ;;  %1121 = vmatprep.mubr.bf16.mxu1 %v10789_v21  ;;  %v11860_v22 = vld [vmem:[%s14423_s1] ss:$0 sm:$0xff]  ;;  %s8461_s1 = scalar_lea.sflag [#allocation4], %s568_s22 }
  0x20   : > { %s11820_s24 = scalar_lea.vmem %s14421_s20, %s9720_s25  ;;  %s569_s20 = scalar_lea.vmem [#allocation3], %s568_s22 }
  0x21   : > { %v10771_v5 = vld [vmem:[%s11820_s24] sm:$0xff]   ;;  %v10772_v6 = vld [vmem:[%s11820_s24 + $0x8] sm:$0xff]   ;;  %v10773_v7 = vld [vmem:[%s11820_s24 + $0x10] sm:$0xff]   ;;  %s8473_s2 = sshll.u32 %s569_s20, 4  ;;  %s11594_s21 = sshll.u32 %s11657_s15, 4  ;;  %s8474_s2 = int_to_ptr.vmem [resolvable:$true] %s8473_s2  ;;  %s11595_s21 = int_to_ptr.vmem [resolvable:$false] %s11594_s21 }
  0x22   : > { %10309 = vmatpush3.bf16.msra.mxu0 %v10769_v2  ;;  %10312 = vmatprep.mubr.msk.bf16.mxu0 %vm715_vm1, %v10771_v5  ;;  %v10774_v8 = vld [vmem:[%s11820_s24 + $0x18] sm:$0xff]   ;;  %v10775_v9 = vld [vmem:[%s11820_s24 + $0x20] sm:$0xff]   ;;  %v10776_v10 = vld [vmem:[%s11820_s24 + $0x28] sm:$0xff]   ;;  %s11596_s25 = scalar_lea.vmem %s11595_s21, 32  ;;  %p11597_p0 = scmp.lt.s32.totalorder %s8474_s2, %s11595_s21 }
  0x23   : > { %10310 = vmatprep.subr.bf16.mxu0 %v10770_v4  ;;  %v10777_v11 = vld [vmem:[%s11820_s24 + $0x30] sm:$0xff]   ;;  %v10778_v12 = vld [vmem:[%s11820_s24 + $0x38] sm:$0xff]   ;;  %v10779_v13 = vld [vmem:[%s11820_s24 + $0x40] sm:$0xff]  }
  0x24   : > { %v10780_v14 = vld [vmem:[%s11820_s24 + $0x48] sm:$0xff]   ;;  %v10781_v15 = vld [vmem:[%s11820_s24 + $0x50] sm:$0xff]   ;;  %v10782_v16 = vld [vmem:[%s11820_s24 + $0x58] sm:$0xff]  }
  0x25   : > { %v10783_v17 = vld [vmem:[%s11820_s24 + $0x60] sm:$0xff]   ;;  %v10784_v18 = vld [vmem:[%s11820_s24 + $0x68] sm:$0xff]   ;;  %v10785_v19 = vld [vmem:[%s11820_s24 + $0x70] sm:$0xff]  }
  0x26   : > { %10311 = vmatpush3.bf16.msra.mxu0 %v10770_v4  ;;  %v10786_v20 = vld [vmem:[%s11820_s24 + $0x78] sm:$0xff]   ;;  %s11590_s24 = scalar_lea.vmem %s8474_s2, 16 }
  0x27   : > { %p11591_p11 = scmp.ne.s32.totalorder %s8474_s2, %s11590_s24  ;;  %p11598_p1 = scmp.lt.s32.totalorder %s11596_s25, %s11590_s24 }
  0x29   : > { %10313 = vmatmul.mubr.msk.bf16.vlgmr.msra.gmra.mxu0 %vm715_vm1, %v10772_v6  ;;  %p11592_p12 = pnand %p11591_p11, %p11794_p5  ;;  %p11599_p2 = por %p11598_p1, %p11597_p0 }
  0x2a   : > { %10316 = vmatprep.mubr.msk.bf16.mxu0 %vm715_vm1, %v10773_v7 }
  0x2b   : > { %p11593_p13 = pneg %p11592_p12 }
  0x2d   : > { %p11600_p3 = pnand %p11599_p2, %p11593_p13 }
  0x31   : > { %10317 = vmatmul.mubr.msk.bf16.gmra.mxu0 %vm715_vm1, %v10774_v8 }
  0x32   : > { %10320 = vmatprep.mubr.msk.bf16.mxu0 %vm715_vm1, %v10775_v9 }
  0x39   : > { %10321 = vmatmul.mubr.msk.bf16.gmra.mxu0 %vm715_vm1, %v10776_v10 }
  0x3a   : > { %10324 = vmatprep.mubr.msk.bf16.mxu0 %vm715_vm1, %v10777_v11 }
  0x41   : > { %10325 = vmatmul.mubr.msk.bf16.gmra.mxu0 %vm715_vm1, %v10778_v12 }
  0x42   : > { %10328 = vmatprep.mubr.msk.bf16.mxu0 %vm715_vm1, %v10779_v13 }
  0x49   : > { %10329 = vmatmul.mubr.msk.bf16.gmra.mxu0 %vm715_vm1, %v10780_v14 }
  0x4a   : > { %10332 = vmatprep.mubr.msk.bf16.mxu0 %vm715_vm1, %v10781_v15 }
  0x51   : > { %10333 = vmatmul.mubr.msk.bf16.gmra.mxu0 %vm715_vm1, %v10782_v16 }
  0x52   : > { %10336 = vmatprep.mubr.msk.bf16.mxu0 %vm715_vm1, %v10783_v17 }
  0x59   : > { %10337 = vmatmul.mubr.msk.bf16.gmra.mxu0 %vm715_vm1, %v10784_v18 }
  0x5a   : > { %10340 = vmatprep.mubr.msk.bf16.mxu0 %vm715_vm1, %v10785_v19 }
  0x61   : > { %10341 = vmatmul.mubr.msk.bf16.gmra.mxu0 %vm715_vm1, %v10786_v20 }
  0xe9   : > { %v10314_v23 = vpop.f32.mrf.mxu0 }
  0xea   : > { %v811_v24 = vadd.f32 %v10314_v23, %v11860_v22 }
  0xeb   : > { %v11863_v25 = vpop.f32.mrf.mxu0 }
  0xec   : > { %v963_v27 = vmul.f32 0.2, %v811_v24  ;;  %vm931_vm2 = vcmp.ge.f32.partialorder %v811_v24, 0.0 }
  0xed   : > { %v10315_v26 = vpop.f32.mrf.mxu0 }
  0xee   : > { %v814_v28 = vadd.f32 %v10315_v26, %v11860_v22  ;;  %v995_v32 = vsel %vm931_vm2, %v811_v24, %v963_v27 }
  0xef   : > { %v11866_v29 = vpop.f32.mrf.mxu0 }
  0xf0   : > { %vm932_vm3 = vcmp.ge.f32.partialorder %v814_v28, 0.0  ;;  %v964_v30 = vmul.f32 0.2, %v814_v28 }
  0xf1   : > { %v10318_v31 = vpop.f32.mrf.mxu0 }
  0xf2   : > { %v996_v33 = vsel %vm932_vm3, %v814_v28, %v964_v30  ;;  %v827_v34 = vadd.f32 %v10318_v31, %v11860_v22 }
  0xf3   : > { %v11869_v35 = vpack.c.bf16 %v996_v33, %v995_v32  ;;  %v11871_v36 = vpop.f32.mrf.mxu0 }
  0xf4   : > { %v967_v38 = vmul.f32 0.2, %v827_v34  ;;  %vm935_vm4 = vcmp.ge.f32.partialorder %v827_v34, 0.0 }
  0xf5   : > { %v10319_v37 = vpop.f32.mrf.mxu0 }
  0xf6   : > { %v830_v39 = vadd.f32 %v10319_v37, %v11860_v22  ;;  %v999_v43 = vsel %vm935_vm4, %v827_v34, %v967_v38 }
  0xf7   : > { %v11874_v40 = vpop.f32.mrf.mxu0 }
  0xf8   : > { %vm936_vm5 = vcmp.ge.f32.partialorder %v830_v39, 0.0  ;;  %v968_v41 = vmul.f32 0.2, %v830_v39 }
  0xf9   : > { %v10322_v42 = vpop.f32.mrf.mxu0 }
  0xfa   : > { %v1000_v44 = vsel %vm936_vm5, %v830_v39, %v968_v41  ;;  %v11905_v11 = vadd.f32 %v10322_v42, %v11860_v22 }
  0xfb   : > { %v11876_v45 = vpack.c.bf16 %v1000_v44, %v999_v43  ;;  %v11878_v46 = vpop.f32.mrf.mxu0 }
  0xfc   : > { %vm939_vm11 = vcmp.ge.f32.partialorder %v11905_v11, 0.0 }
  0xfd   : > { %v10323_v47 = vpop.f32.mrf.mxu0 }
  0xfe   : > { %v11899_v3 = vadd.f32 %v10323_v47, %v11860_v22 }
  0xff   : > { %v11880_v48 = vpop.f32.mrf.mxu0 }
 0x100   : > { %v972_v13 = vmul.f32 0.2, %v11899_v3  ;;  %v838_v44 = vadd.f32 %v11860_v22, %v11880_v48  ;;  %vm940_vm2 = vcmp.ge.f32.partialorder %v11899_v3, 0.0  ;;  %v835_v48 = vadd.f32 %v11860_v22, %v11878_v46 }
 0x101   : > { %v10326_v49 = vpop.f32.mrf.mxu0 }
 0x102   : > { %v859_v0 = vadd.f32 %v10326_v49, %v11860_v22  ;;  %vm938_vm5 = vcmp.ge.f32.partialorder %v838_v44, 0.0 }
 0x103   : > { %v850_v50 = vpop.f32.mrf.mxu0 }
 0x104   : > { %v975_v5 = vmul.f32 0.2, %v859_v0  ;;  %v851_v6 = vadd.f32 %v11860_v22, %v850_v50  ;;  %vm943_vm6 = vcmp.ge.f32.partialorder %v859_v0, 0.0 }
 0x105   : > { %v10327_v51 = vpop.f32.mrf.mxu0 }
 0x106   : > { %v862_v1 = vadd.f32 %v10327_v51, %v11860_v22  ;;  %v1007_v16 = vsel %vm943_vm6, %v859_v0, %v975_v5  ;;  %vm941_vm8 = vcmp.ge.f32.partialorder %v851_v6, 0.0  ;;  %v973_v34 = vmul.f32 0.2, %v851_v6 }
 0x107   : > { %v853_v52 = vpop.f32.mrf.mxu0  ;;  %vm937_vm6 = vcmp.ge.f32.partialorder %v835_v48, 0.0 }
 0x108   : > { %v976_v8 = vmul.f32 0.2, %v862_v1  ;;  %v854_v9 = vadd.f32 %v11860_v22, %v853_v52  ;;  %vm944_vm7 = vcmp.ge.f32.partialorder %v862_v1, 0.0 }
 0x109   : > { %v11882_v53 = vpop.f32.mrf.mxu0 }
 0x10a   : > { %v1008_v19 = vsel %vm944_vm7, %v862_v1, %v976_v8  ;;  %vm942_vm9 = vcmp.ge.f32.partialorder %v854_v9, 0.0  ;;  %v974_v27 = vmul.f32 0.2, %v854_v9  ;;  %v969_v8 = vmul.f32 0.2, %v835_v48 }
 0x10b   : > { %v11884_v54 = vpop.f32.mrf.mxu0  ;;  %v11915_v37 = vpack.c.bf16 %v1008_v19, %v1007_v16 }
 0x10c   : > { %v1006_v47 = vsel %vm942_vm9, %v854_v9, %v974_v27  ;;  %v867_v27 = vadd.f32 %v11860_v22, %v11884_v54 }
 0x10d   : > { %v11886_v55 = vpop.f32.mrf.mxu0 }
 0x10f   : > { %v11888_v56 = vpop.f32.mrf.mxu0 }
 0x111   : > { %v11890_v57 = vpop.f32.mrf.mxu0 }
 0x112   : > { %v891_v0 = vadd.f32 %v11890_v57, %v11860_v22 }
 0x113   : > { %v11892_v58 = vpop.f32.mrf.mxu0 }
 0x114   : > { %v983_v9 = vmul.f32 0.2, %v891_v0 }
 0x115   : > { %v10335_v59 = vpop.f32.mrf.mxu0 }
 0x116   : > { %v894_v50 = vadd.f32 %v10335_v59, %v11860_v22 }
 0x117   : > { %v11894_v60 = vpop.f32.mrf.mxu0 }
 0x118   : > { %v984_v46 = vmul.f32 0.2, %v894_v50  ;;  %vm952_vm7 = vcmp.ge.f32.partialorder %v894_v50, 0.0 }
 0x119   : > { %v10338_v61 = vpop.f32.mrf.mxu0 }
 0x11a   : > { %v907_v20 = vadd.f32 %v10338_v61, %v11860_v22  ;;  %v971_v61 = vmul.f32 0.2, %v11905_v11 }
 0x11b   : > { %v898_v62 = vpop.f32.mrf.mxu0 }
 0x11c   : > { %v987_v39 = vmul.f32 0.2, %v907_v20  ;;  %v899_v41 = vadd.f32 %v11860_v22, %v898_v62  ;;  %vm955_vm1 = vcmp.ge.f32.partialorder %v907_v20, 0.0  ;;  %v1005_v62 = vsel %vm941_vm8, %v851_v6, %v973_v34 }
 0x11d   : > { %v10339_v63 = vpop.f32.mrf.mxu0  ;;  %v886_v6 = vadd.f32 %v11860_v22, %v11894_v60  ;;  %v1003_v57 = vsel %vm939_vm11, %v11905_v11, %v971_v61  ;;  %v822_v60 = vadd.f32 %v11860_v22, %v11874_v40  ;;  %vm951_vm8 = vcmp.ge.f32.partialorder %v891_v0, 0.0  ;;  %v10787_v61 = vld [vmem:[%s14422_s3] ss:$8 sps:$4 sm:$0xff]  }
 0x11e   : > { %v910_v14 = vadd.f32 %v10339_v63, %v11860_v22  ;;  %v11934_v63 = vpack.c.bf16 %v1006_v47, %v1005_v62  ;;  %v1019_v59 = vsel %vm955_vm1, %v907_v20, %v987_v39  ;;  %v985_v1 = vmul.f32 0.2, %v899_v41  ;;  %v10792_v62 = vld [vmem:[%s14422_s3 + $0x10] ss:$8 sps:$4 sm:$0xff]  }
 0x11f   : > { %v901_v2 = vpop.f32.mrf.mxu0  ;;  %vm953_vm4 = vcmp.ge.f32.partialorder %v899_v41, 0.0  ;;  %v878_v11 = vadd.f32 %v11886_v55, %v11860_v22  ;;  %v982_v16 = vmul.f32 0.2, %v886_v6  ;;  %vm950_vm9 = vcmp.ge.f32.partialorder %v886_v6, 0.0 }
 0x120   : > { %v988_v28 = vmul.f32 0.2, %v910_v14  ;;  %v902_v30 = vadd.f32 %v11860_v22, %v901_v2  ;;  %vm956_vm15 = vcmp.ge.f32.partialorder %v910_v14, 0.0  ;;  %v1004_v2 = vsel %vm940_vm2, %v11899_v3, %v972_v13 }
 0x121   : > { %v10342_v4 = vpop.f32.mrf.mxu0  ;;  %v11948_v3 = vpack.c.bf16 %v1004_v2, %v1003_v57  ;;  %v1015_v19 = vsel %vm951_vm8, %v891_v0, %v983_v9  ;;  %v966_v55 = vmul.f32 0.2, %v822_v60  ;;  %vm934_vm11 = vcmp.ge.f32.partialorder %v822_v60, 0.0  ;;  %v10793_v0 = vld [vmem:[%s14422_s3 + $0x24] ss:$8 sps:$4 sm:$0xff]  }
 0x122   : > { %v923_v7 = vadd.f32 %v10342_v4, %v11860_v22  ;;  %v1020_v51 = vsel %vm956_vm15, %v910_v14, %v988_v28  ;;  %v986_v52 = vmul.f32 0.2, %v902_v30  ;;  %vm954_vm3 = vcmp.ge.f32.partialorder %v902_v30, 0.0  ;;  %v10798_v2 = vld [vmem:[%s14422_s3 + $0x30] ss:$8 sps:$4 sm:$0xff]  }
 0x123   : > { %v914_v10 = vpop.f32.mrf.mxu0  ;;  %v970_v4 = vmul.f32 0.2, %v838_v44  ;;  %v11939_v5 = vpack.c.bf16 %v1020_v51, %v1019_v59  ;;  %v803_v34 = vadd.f32 %v11860_v22, %v11863_v25  ;;  %vm945_vm1 = vcmp.ge.f32.partialorder %v867_v27, 0.0  ;;  %v10795_v59 = vld [vmem:[%s14422_s3 + $0x20] ss:$8 sps:$4 sm:$0xff]  }
 0x124   : > { %v915_v12 = vadd.f32 %v11860_v22, %v914_v10  ;;  %v991_v17 = vmul.f32 0.2, %v923_v7  ;;  %vm959_vm10 = vcmp.ge.f32.partialorder %v923_v7, 0.0  ;;  %v883_v10 = vadd.f32 %v11860_v22, %v11892_v58  ;;  %v10805_v57 = vld [vmem:[%s14422_s3 + $0x64] ss:$8 sps:$4 sm:$0xff]  }
 0x125   : > { %v10343_v15 = vpop.f32.mrf.mxu0  ;;  %v1002_v13 = vsel %vm938_vm5, %v838_v44, %v970_v4  ;;  %v1001_v58 = vsel %vm937_vm6, %v835_v48, %v969_v8  ;;  %v961_v47 = vmul.f32 0.2, %v803_v34  ;;  %v10790_v48 = vld [vmem:[%s14422_s3 + $0x14] ss:$8 sps:$4 sm:$0xff]   ;;  %v10801_v4 = vld [vmem:[%s14422_s3 + $0x44] ss:$8 sps:$4 sm:$0xff]  }
 0x126   : > { %v926_v18 = vadd.f32 %v10343_v15, %v11860_v22  ;;  %v989_v23 = vmul.f32 0.2, %v915_v12  ;;  %vm957_vm13 = vcmp.ge.f32.partialorder %v915_v12, 0.0  ;;  %v1023_v31 = vsel %vm959_vm10, %v923_v7, %v991_v17  ;;  %v10807_v8 = vld [vmem:[%s14422_s3 + $0x60] ss:$8 sps:$4 sm:$0xff]  }
 0x127   : > { %v917_v21 = vpop.f32.mrf.mxu0  ;;  %v1018_v7 = vsel %vm954_vm3, %v902_v30, %v986_v52  ;;  %v1016_v15 = vsel %vm952_vm7, %v894_v50, %v984_v46  ;;  %v819_v17 = vadd.f32 %v11860_v22, %v11871_v36  ;;  %v11963_v40 = vpack.c.bf16 %v1002_v13, %v1001_v58  ;;  %v10799_v46 = vld [vmem:[%s14422_s3 + $0x40] ss:$8 sps:$4 sm:$0xff]   ;;  %v10808_v9 = vld [vmem:[%s14422_s3 + $0x74] ss:$8 sps:$4 sm:$0xff]  }
 0x128   : > { %vm960_vm12 = vcmp.ge.f32.partialorder %v926_v18, 0.0  ;;  %v992_v24 = vmul.f32 0.2, %v926_v18  ;;  %v918_v26 = vadd.f32 %v11860_v22, %v917_v21  ;;  %v1021_v42 = vsel %vm957_vm13, %v915_v12, %v989_v23  ;;  %v10814_v13 = vld [vmem:[%s14422_s3 + $0x94] ss:$8 sps:$4 sm:$0xff]  }
 0x129   : > { %v1017_v12 = vsel %vm953_vm4, %v899_v41, %v985_v1  ;;  %v981_v20 = vmul.f32 0.2, %v883_v10  ;;  %vm949_vm10 = vcmp.ge.f32.partialorder %v883_v10, 0.0  ;;  %v11967_v21 = vpack.c.bf16 %v1016_v15, %v1015_v19  ;;  %v10796_v1 = vld [vmem:[%s14422_s3 + $0x34] ss:$8 sps:$4 sm:$0xff]  }
 0x12a   : > { %v1024_v32 = vsel %vm960_vm12, %v926_v18, %v992_v24  ;;  %vm958_vm14 = vcmp.ge.f32.partialorder %v918_v26, 0.0  ;;  %v990_v33 = vmul.f32 0.2, %v918_v26  ;;  %v11954_v14 = vpack.c.bf16 %v1018_v7, %v1017_v12  ;;  %v10804_v7 = vld [vmem:[%s14422_s3 + $0x50] ss:$8 sps:$4 sm:$0xff]  }
 0x12b   : > { %v11917_v38 = vpack.c.bf16 %v1024_v32, %v1023_v31  ;;  %v875_v18 = vadd.f32 %v11882_v53, %v11860_v22  ;;  %v980_v23 = vmul.f32 0.2, %v878_v11  ;;  %v870_v36 = vadd.f32 %v11860_v22, %v11888_v56  ;;  %v10813_v12 = vld [vmem:[%s14422_s3 + $0x84] ss:$8 sps:$4 sm:$0xff]   ;;  %v10835_v58 = vld [vmem:[%s14424_s4 + $0x18] sm:$0xff]  }
 0x12c   : > { %v1022_v43 = vsel %vm958_vm14, %v918_v26, %v990_v33  ;;  %v1014_v24 = vsel %vm950_vm9, %v886_v6, %v982_v16  ;;  %v965_v26 = vmul.f32 0.2, %v819_v17  ;;  %vm948_vm12 = vcmp.ge.f32.partialorder %v878_v11, 0.0  ;;  %v10802_v6 = vld [vmem:[%s14422_s3 + $0x54] ss:$8 sps:$4 sm:$0xff]   ;;  %10344 = vmatprep.subr.bf16.mxu0 %v10835_v58 }
 0x12d   : > { %v11923_v49 = vpack.c.bf16 %v1022_v43, %v1021_v42  ;;  %9740 = vmatprep.subr.bf16.mxu1 %v11917_v38  ;;  %vm933_vm13 = vcmp.ge.f32.partialorder %v819_v17, 0.0  ;;  %v979_v53 = vmul.f32 0.2, %v875_v18  ;;  %v1013_v28 = vsel %vm949_vm10, %v883_v10, %v981_v20  ;;  %v10810_v10 = vld [vmem:[%s14422_s3 + $0x70] ss:$8 sps:$4 sm:$0xff]   ;;  %10345 = vmatpush3.bf16.msra.mxu0 %v10835_v58 }
 0x12e   : > { %9741 = vmatpush3.bf16.msra.mxu1 %v11915_v37  ;;  %v806_v30 = vadd.f32 %v11860_v22, %v11866_v29  ;;  %v998_v31 = vsel %vm934_vm11, %v822_v60, %v966_v55  ;;  %vm947_vm14 = vcmp.ge.f32.partialorder %v875_v18, 0.0  ;;  %v11977_v32 = vpack.c.bf16 %v1014_v24, %v1013_v28  ;;  %v10811_v60 = vld [vmem:[%s14422_s3 + $0x80] ss:$8 sps:$4 sm:$0xff]   ;;  %v10817_v15 = vld [vmem:[%s14422_s3 + $0xa4] ss:$8 sps:$4 sm:$0xff]  }
 0x12f   : > { %9742 = vmatprep.subr.bf16.mxu1 %v11923_v49  ;;  %v1012_v56 = vsel %vm948_vm12, %v878_v11, %v980_v23  ;;  %v978_v33 = vmul.f32 0.2, %v870_v36  ;;  %v997_v39 = vsel %vm933_vm13, %v819_v17, %v965_v26  ;;  %vm946_vm15 = vcmp.ge.f32.partialorder %v870_v36, 0.0  ;;  %v10816_v11 = vld [vmem:[%s14422_s3 + $0x90] ss:$8 sps:$4 sm:$0xff]   ;;  %v10837_v28 = vld [vmem:[%s14424_s4 + $0x8] sm:$0xff]  }
 0x130   : > { %v11983_v54 = vpack.c.bf16 %v998_v31, %v997_v39  ;;  %v1011_v41 = vsel %vm947_vm14, %v875_v18, %v979_v53  ;;  %v977_v42 = vmul.f32 0.2, %v867_v27  ;;  %v962_v29 = vmul.f32 0.2, %v806_v30  ;;  %v10819_v16 = vld [vmem:[%s14422_s3 + $0xa0] ss:$8 sps:$4 sm:$0xff]  }
 0x131   : > { %v11985_v43 = vpack.c.bf16 %v1012_v56, %v1011_v41  ;;  %vm930_vm2 = vcmp.ge.f32.partialorder %v806_v30, 0.0  ;;  %v1010_v44 = vsel %vm946_vm15, %v870_v36, %v978_v33  ;;  %vm929_vm3 = vcmp.ge.f32.partialorder %v803_v34, 0.0  ;;  %v10820_v17 = vld [vmem:[%s14422_s3 + $0xb4] ss:$8 sps:$4 sm:$0xff]   ;;  %v10822_v18 = vld [vmem:[%s14422_s3 + $0xb0] ss:$8 sps:$4 sm:$0xff]  }
 0x132   : > { %9743 = vmatpush3.bf16.msra.mxu1 %v11934_v63  ;;  %v1009_v22 = vsel %vm945_vm1, %v867_v27, %v977_v42  ;;  %v994_v25 = vsel %vm930_vm2, %v806_v30, %v962_v29  ;;  %v993_v51 = vsel %vm929_vm3, %v803_v34, %v961_v47  ;;  %v10825_v19 = vld [vmem:[%s14422_s3 + $0xc4] ss:$8 sps:$4 sm:$0xff]   ;;  %v10823_v20 = vld [vmem:[%s14422_s3 + $0xc0] ss:$8 sps:$4 sm:$0xff]   ;;  %v10826_v55 = vld [vmem:[%s14422_s3 + $0xd4] ss:$8 sps:$4 sm:$0xff]  }
 0x133   : > { %9744 = vmatprep.subr.bf16.mxu1 %v11939_v5  ;;  %v11989_v50 = vpack.c.bf16 %v1010_v44, %v1009_v22  ;;  %v11993_v52 = vpack.c.bf16 %v994_v25, %v993_v51  ;;  %v10828_v23 = vld [vmem:[%s14422_s3 + $0xd0] ss:$8 sps:$4 sm:$0xff]   ;;  %v10829_v36 = vld [vmem:[%s14422_s3 + $0xe4] ss:$8 sps:$4 sm:$0xff]   ;;  %v10831_v24 = vld [vmem:[%s14422_s3 + $0xe0] ss:$8 sps:$4 sm:$0xff]  }
 0x134   : > { %v10832_v26 = vld [vmem:[%s14422_s3 + $0xf4] ss:$8 sps:$4 sm:$0xff]   ;;  %v10834_v27 = vld [vmem:[%s14422_s3 + $0xf0] ss:$8 sps:$4 sm:$0xff]   ;;  %vm1297_vm4 = vcmask 261120   ;;  %vm11653_vm5 = vmmov 0  }
 0x135   : > { %v10836_v53 = vld [vmem:[%s14424_s4 + $0x10] sm:$0xff]   ;;  %vm3054_vm14 = vcmask 523264   ;;  %vm4247_vm2 = vcmask 130048  }
 0x136   : > { %9745 = vmatpush3.bf16.msra.mxu1 %v11948_v3  ;;  %10346 = vmatprep.subr.bf16.mxu0 %v10836_v53 }
 0x137   : > { %9746 = vmatprep.subr.bf16.mxu1 %v11954_v14  ;;  %10347 = vmatpush3.bf16.msra.mxu0 %v10836_v53 }
 0x138   : > { %10356 = vmatprep.subr.bf16.mxu0 %v10837_v28 }
 0x13a   : > { %9747 = vmatpush3.bf16.msra.mxu1 %v11963_v40 }
 0x13b   : > { %9748 = vmatprep.subr.bf16.mxu1 %v11967_v21 }
 0x13e   : > { %9749 = vmatpush3.bf16.msra.mxu1 %v11876_v45 }
 0x13f   : > { %9750 = vmatprep.subr.bf16.mxu1 %v11977_v32 }
 0x142   : > { %9751 = vmatpush3.bf16.msra.mxu1 %v11983_v54 }
 0x143   : > { %9752 = vmatprep.subr.bf16.mxu1 %v11985_v43 }
 0x146   : > { %9753 = vmatpush3.bf16.msra.mxu1 %v11869_v35 }
 0x147   : > { %9754 = vmatprep.subr.bf16.mxu1 %v11989_v50 }
 0x14a   : > { %9755 = vmatpush3.bf16.msra.mxu1 %v11993_v52 }
 0x14b   : > { %9780 = vmatprep.subr.bf16.mxu1 %v11917_v38 }
 0x14d   : > { %1122 = vmatmul.mubr.bf16.vlgmr.msra.gmra.mxu1 %v10787_v61 }
 0x14e   : > { %9781 = vmatpush3.bf16.msra.mxu1 %v11915_v37  ;;  %1129 = vmatprep.mubr.bf16.mxu1 %v10790_v48 }
 0x14f   : > { %9782 = vmatprep.subr.bf16.mxu1 %v11923_v49 }
 0x152   : > { %9783 = vmatpush3.bf16.msra.mxu1 %v11934_v63 }
 0x153   : > { %9784 = vmatprep.subr.bf16.mxu1 %v11939_v5 }
 0x155   : > { %1130 = vmatmul.mubr.bf16.gmra.mxu1 %v10792_v62 }
 0x156   : > { %9785 = vmatpush3.bf16.msra.mxu1 %v11948_v3  ;;  %1137 = vmatprep.mubr.bf16.mxu1 %v10793_v0 }
 0x157   : > { %9786 = vmatprep.subr.bf16.mxu1 %v11954_v14 }
 0x15a   : > { %9787 = vmatpush3.bf16.msra.mxu1 %v11963_v40 }
 0x15b   : > { %9788 = vmatprep.subr.bf16.mxu1 %v11967_v21 }
 0x15d   : > { %1138 = vmatmul.mubr.bf16.gmra.mxu1 %v10795_v59 }
 0x15e   : > { %9789 = vmatpush3.bf16.msra.mxu1 %v11876_v45  ;;  %1145 = vmatprep.mubr.bf16.mxu1 %v10796_v1 }
 0x15f   : > { %9790 = vmatprep.subr.bf16.mxu1 %v11977_v32 }
 0x162   : > { %9791 = vmatpush3.bf16.msra.mxu1 %v11983_v54 }
 0x163   : > { %9792 = vmatprep.subr.bf16.mxu1 %v11985_v43 }
 0x165   : > { %1146 = vmatmul.mubr.bf16.gmra.mxu1 %v10798_v2 }
 0x166   : > { %9793 = vmatpush3.bf16.msra.mxu1 %v11869_v35  ;;  %1243 = vmatprep.mubr.bf16.mxu1 %v10801_v4 }
 0x167   : > { %9794 = vmatprep.subr.bf16.mxu1 %v11989_v50 }
 0x16a   : > { %9795 = vmatpush3.bf16.msra.mxu1 %v11993_v52 }
 0x16b   : > { %9832 = vmatprep.subr.bf16.mxu1 %v11917_v38 }
 0x16d   : > { %1244 = vmatmul.mubr.bf16.vlgmr.msra.gmra.mxu1 %v10799_v46 }
 0x16e   : > { %9833 = vmatpush3.bf16.msra.mxu1 %v11915_v37  ;;  %1251 = vmatprep.mubr.bf16.mxu1 %v10802_v6 }
 0x16f   : > { %9834 = vmatprep.subr.bf16.mxu1 %v11923_v49 }
 0x172   : > { %9835 = vmatpush3.bf16.msra.mxu1 %v11934_v63 }
 0x173   : > { %9836 = vmatprep.subr.bf16.mxu1 %v11939_v5 }
 0x175   : > { %1252 = vmatmul.mubr.bf16.gmra.mxu1 %v10804_v7 }
 0x176   : > { %9837 = vmatpush3.bf16.msra.mxu1 %v11948_v3  ;;  %1259 = vmatprep.mubr.bf16.mxu1 %v10805_v57 }
 0x177   : > { %9838 = vmatprep.subr.bf16.mxu1 %v11954_v14 }
 0x17a   : > { %9839 = vmatpush3.bf16.msra.mxu1 %v11963_v40 }
 0x17b   : > { %9840 = vmatprep.subr.bf16.mxu1 %v11967_v21 }
 0x17d   : > { %1260 = vmatmul.mubr.bf16.gmra.mxu1 %v10807_v8 }
 0x17e   : > { %9841 = vmatpush3.bf16.msra.mxu1 %v11876_v45  ;;  %1267 = vmatprep.mubr.bf16.mxu1 %v10808_v9 }
 0x17f   : > { %9842 = vmatprep.subr.bf16.mxu1 %v11977_v32 }
 0x182   : > { %9843 = vmatpush3.bf16.msra.mxu1 %v11983_v54 }
 0x183   : > { %9844 = vmatprep.subr.bf16.mxu1 %v11985_v43 }
 0x185   : > { %1268 = vmatmul.mubr.bf16.gmra.mxu1 %v10810_v10 }
 0x186   : > { %9845 = vmatpush3.bf16.msra.mxu1 %v11869_v35  ;;  %1545 = vmatprep.mubr.bf16.mxu1 %v10813_v12 }
 0x187   : > { %9846 = vmatprep.subr.bf16.mxu1 %v11989_v50 }
 0x18a   : > { %9847 = vmatpush3.bf16.msra.mxu1 %v11993_v52 }
 0x18b   : > { %9878 = vmatprep.subr.bf16.mxu1 %v11917_v38 }
 0x18d   : > { %1546 = vmatmul.mubr.bf16.vlgmr.msra.gmra.mxu1 %v10811_v60 }
 0x18e   : > { %9879 = vmatpush3.bf16.msra.mxu1 %v11915_v37  ;;  %1553 = vmatprep.mubr.bf16.mxu1 %v10814_v13  ;;  %v10838_v13 = vld [vmem:[%s14424_s4] sm:$0xff]  }
 0x18f   : > { %9880 = vmatprep.subr.bf16.mxu1 %v11923_v49 }
 0x192   : > { %9881 = vmatpush3.bf16.msra.mxu1 %v11934_v63 }
 0x193   : > { %9882 = vmatprep.subr.bf16.mxu1 %v11939_v5 }
 0x195   : > { %1554 = vmatmul.mubr.bf16.gmra.mxu1 %v10816_v11 }
 0x196   : > { %9883 = vmatpush3.bf16.msra.mxu1 %v11948_v3  ;;  %1561 = vmatprep.mubr.bf16.mxu1 %v10817_v15 }
 0x197   : > { %9884 = vmatprep.subr.bf16.mxu1 %v11954_v14 }
 0x19a   : > { %9885 = vmatpush3.bf16.msra.mxu1 %v11963_v40 }
 0x19b   : > { %9886 = vmatprep.subr.bf16.mxu1 %v11967_v21 }
 0x19d   : > { %1562 = vmatmul.mubr.bf16.gmra.mxu1 %v10819_v16  ;;  %v10839_v16 = vld [vmem:[%s14424_s4 + $0x28] sm:$0xff]  }
 0x19e   : > { %9887 = vmatpush3.bf16.msra.mxu1 %v11876_v45  ;;  %1569 = vmatprep.mubr.bf16.mxu1 %v10820_v17 }
 0x19f   : > { %9888 = vmatprep.subr.bf16.mxu1 %v11977_v32 }
 0x1a2   : > { %9889 = vmatpush3.bf16.msra.mxu1 %v11983_v54 }
 0x1a3   : > { %9890 = vmatprep.subr.bf16.mxu1 %v11985_v43 }
 0x1a5   : > { %1570 = vmatmul.mubr.bf16.gmra.mxu1 %v10822_v18 }
 0x1a6   : > { %9891 = vmatpush3.bf16.msra.mxu1 %v11869_v35  ;;  %1765 = vmatprep.mubr.bf16.mxu1 %v10825_v19 }
 0x1a7   : > { %9892 = vmatprep.subr.bf16.mxu1 %v11989_v50 }
 0x1aa   : > { %9893 = vmatpush3.bf16.msra.mxu1 %v11993_v52 }
 0x1ad   : > { %1766 = vmatmul.mubr.bf16.vlgmr.msra.gmra.mxu1 %v10823_v20 }
 0x1ae   : > { %1773 = vmatprep.mubr.bf16.mxu1 %v10826_v55 }
 0x1b5   : > { %1774 = vmatmul.mubr.bf16.gmra.mxu1 %v10828_v23 }
 0x1b6   : > { %1781 = vmatprep.mubr.bf16.mxu1 %v10829_v36 }
 0x1bd   : > { %1782 = vmatmul.mubr.bf16.gmra.mxu1 %v10831_v24 }
 0x1be   : > { %1789 = vmatprep.mubr.bf16.mxu1 %v10832_v26 }
 0x1c5   : > { %1790 = vmatmul.mubr.bf16.gmra.mxu1 %v10834_v27 }
 0x20d   : > { %v9756_v30 = vpop.f32.mrf.mxu1 }
 0x20f   : > { %v9757_v31 = vpop.f32.mrf.mxu1 }
 0x210   : > { %v9758_v27 = vadd.f32 %v9757_v31, %v9756_v30  ;;  %v10840_v30 = vld [vmem:[%s14424_s4 + $0x20] sm:$0xff]  }
 0x211   : > { %v9759_v56 = vpop.f32.mrf.mxu1 }
 0x213   : > { %v9760_v33 = vpop.f32.mrf.mxu1 }
 0x214   : > { %v9761_v36 = vadd.f32 %v9760_v33, %v9759_v56 }
 0x215   : > { %v9762_v34 = vpop.f32.mrf.mxu1 }
 0x217   : > { %v9763_v39 = vpop.f32.mrf.mxu1 }
 0x219   : > { %v9765_v41 = vpop.f32.mrf.mxu1 }
 0x21b   : > { %v9766_v42 = vpop.f32.mrf.mxu1 }
 0x21d   : > { %v9768_v29 = vpop.f32.mrf.mxu1 }
 0x21f   : > { %v9769_v44 = vpop.f32.mrf.mxu1 }
 0x221   : > { %v9771_v47 = vpop.f32.mrf.mxu1 }
 0x223   : > { %v9772_v22 = vpop.f32.mrf.mxu1 }
 0x225   : > { %v12146_v25 = vpop.f32.mrf.mxu1 }
 0x227   : > { %v12148_v51 = vpop.f32.mrf.mxu1 }
 0x229   : > { %v9777_v61 = vpop.f32.mrf.mxu1 }
 0x22b   : > { %v9778_v48 = vpop.f32.mrf.mxu1 }
 0x22d   : > { %v9796_v62 = vpop.f32.mrf.mxu1 }
 0x22f   : > { %v9797_v0 = vpop.f32.mrf.mxu1 }
 0x230   : > { %v9798_v2 = vadd.f32 %v9797_v0, %v9796_v62  ;;  %v1154_v0 = vpack.c.bf16 %v9761_v36, %v9758_v27 }
 0x231   : > { %v9799_v59 = vpop.f32.mrf.mxu1 }
 0x233   : > { %v9800_v1 = vpop.f32.mrf.mxu1 }
 0x234   : > { %v9801_v4 = vadd.f32 %v9800_v1, %v9799_v59 }
 0x235   : > { %v9802_v46 = vpop.f32.mrf.mxu1 }
 0x236   : > { %v1276_v6 = vpack.c.bf16 %v9801_v4, %v9798_v2  ;;  %v9767_v2 = vadd.f32 %v9766_v42, %v9765_v41  ;;  %v9773_v4 = vadd.f32 %v9772_v22, %v9771_v47  ;;  %v9776_v42 = vadd.f32 %v12148_v51, %v12146_v25  ;;  %v10842_v51 = vld [vmem:[%s14424_s4 + $0x30] sm:$0xff]  }
 0x237   : > { %v9803_v7 = vpop.f32.mrf.mxu1 }
 0x238   : > { %10348 = vmatprep.mubr.msk.bf16.mxu0 %vm1297_vm4, %v1276_v6  ;;  %v9804_v9 = vadd.f32 %v9803_v7, %v9802_v46  ;;  %v9764_v6 = vadd.f32 %v9763_v39, %v9762_v34  ;;  %v9770_v7 = vadd.f32 %v9769_v44, %v9768_v29  ;;  %v10841_v34 = vld [vmem:[%s14424_s4 + $0x38] sm:$0xff]  }
 0x239   : > { %v9805_v57 = vpop.f32.mrf.mxu1 }
 0x23a   : > { %v1155_v56 = vpack.c.bf16 %v9767_v2, %v9764_v6  ;;  %v1156_v31 = vpack.c.bf16 %v9773_v4, %v9770_v7 }
 0x23b   : > { %v9806_v8 = vpop.f32.mrf.mxu1 }
 0x23c   : > { %v9807_v10 = vadd.f32 %v9806_v8, %v9805_v57 }
 0x23d   : > { %v9808_v12 = vpop.f32.mrf.mxu1 }
 0x23e   : > { %v1277_v60 = vpack.c.bf16 %v9807_v10, %v9804_v9  ;;  %v9779_v9 = vadd.f32 %v9778_v48, %v9777_v61 }
 0x23f   : > { %v9809_v11 = vpop.f32.mrf.mxu1 }
 0x240   : > { %10349 = vmatmul.mubr.msk.bf16.vlgmr.msra.gmra.mxu0 %vm1297_vm4, %v1277_v60  ;;  %v9810_v58 = vadd.f32 %v9809_v11, %v9808_v12  ;;  %v1157_v47 = vpack.c.bf16 %v9779_v9, %v9776_v42 }
 0x241   : > { %v9811_v15 = vpop.f32.mrf.mxu1  ;;  %10357 = vmatpush3.bf16.msra.mxu0 %v10837_v28 }
 0x242   : > { %10358 = vmatprep.subr.bf16.mxu0 %v10838_v13 }
 0x243   : > { %v9812_v17 = vpop.f32.mrf.mxu1 }
 0x244   : > { %v9813_v18 = vadd.f32 %v9812_v17, %v9811_v15 }
 0x245   : > { %v9814_v19 = vpop.f32.mrf.mxu1  ;;  %10359 = vmatpush3.bf16.msra.mxu0 %v10838_v13 }
 0x246   : > { %v1278_v20 = vpack.c.bf16 %v9813_v18, %v9810_v58  ;;  %10368 = vmatprep.subr.bf16.mxu0 %v10839_v16 }
 0x247   : > { %v9815_v55 = vpop.f32.mrf.mxu1 }
 0x248   : > { %10352 = vmatprep.mubr.msk.bf16.mxu0 %vm1297_vm4, %v1278_v20  ;;  %v9816_v26 = vadd.f32 %v9815_v55, %v9814_v19 }
 0x249   : > { %v9817_v23 = vpop.f32.mrf.mxu1 }
 0x24b   : > { %v9818_v24 = vpop.f32.mrf.mxu1 }
 0x24c   : > { %v9819_v53 = vadd.f32 %v9818_v24, %v9817_v23 }
 0x24d   : > { %v9848_v28 = vpop.f32.mrf.mxu1 }
 0x24e   : > { %v1279_v62 = vpack.c.bf16 %v9819_v53, %v9816_v26 }
 0x24f   : > { %v9849_v59 = vpop.f32.mrf.mxu1 }
 0x250   : > { %10353 = vmatmul.mubr.msk.bf16.gmra.mxu0 %vm1297_vm4, %v1279_v62  ;;  %v9850_v29 = vadd.f32 %v9849_v59, %v9848_v28 }
 0x251   : > { %10360 = vmatprep.mubr.msk.bf16.mxu0 %vm1297_vm4, %v1154_v0  ;;  %v9851_v1 = vpop.f32.mrf.mxu1 }
 0x253   : > { %v9852_v46 = vpop.f32.mrf.mxu1 }
 0x254   : > { %v9853_v39 = vadd.f32 %v9852_v46, %v9851_v1 }
 0x255   : > { %v9854_v57 = vpop.f32.mrf.mxu1 }
 0x256   : > { %v1578_v22 = vpack.c.bf16 %v9853_v39, %v9850_v29  ;;  %v10845_v29 = vld [vmem:[%s14422_s3 + $0x104] ss:$8 sps:$4 sm:$0xff]  }
 0x257   : > { %v9855_v33 = vpop.f32.mrf.mxu1 }
 0x258   : > { %10361 = vmatmul.mubr.msk.bf16.vlgmr.msra.gmra.mxu0 %vm1297_vm4, %v1155_v56  ;;  %v9856_v60 = vadd.f32 %v9855_v33, %v9854_v57 }
 0x259   : > { %10364 = vmatprep.mubr.msk.bf16.mxu0 %vm1297_vm4, %v1156_v31  ;;  %v9857_v8 = vpop.f32.mrf.mxu1  ;;  %10369 = vmatpush3.bf16.msra.mxu0 %v10839_v16 }
 0x25a   : > { %10370 = vmatprep.subr.bf16.mxu0 %v10840_v30 }
 0x25b   : > { %v9858_v41 = vpop.f32.mrf.mxu1 }
 0x25c   : > { %v9859_v48 = vadd.f32 %v9858_v41, %v9857_v8 }
 0x25d   : > { %v9860_v44 = vpop.f32.mrf.mxu1  ;;  %10371 = vmatpush3.bf16.msra.mxu0 %v10840_v30 }
 0x25e   : > { %10380 = vmatprep.subr.bf16.mxu0 %v10841_v34  ;;  %v1579_v16 = vpack.c.bf16 %v9859_v48, %v9856_v60  ;;  %v10851_v48 = vld [vmem:[%s14422_s3 + $0x120] ss:$8 sps:$4 sm:$0xff]   ;;  %v10854_v60 = vld [vmem:[%s14422_s3 + $0x130] ss:$8 sps:$4 sm:$0xff]  }
 0x25f   : > { %v9861_v10 = vpop.f32.mrf.mxu1 }
 0x260   : > { %10365 = vmatmul.mubr.msk.bf16.gmra.mxu0 %vm1297_vm4, %v1157_v47  ;;  %v9862_v13 = vadd.f32 %v9861_v10, %v9860_v44  ;;  %v10843_v47 = vld [vmem:[%s14422_s3 + $0x100] ss:$8 sps:$4 sm:$0xff]   ;;  %v10848_v10 = vld [vmem:[%s14422_s3 + $0x110] ss:$8 sps:$4 sm:$0xff]  }
 0x261   : > { %v9863_v61 = vpop.f32.mrf.mxu1  ;;  %10372 = vmatprep.mubr.msk.bf16.mxu0 %vm1297_vm4, %v1578_v22  ;;  %v10846_v22 = vld [vmem:[%s14422_s3 + $0x114] ss:$8 sps:$4 sm:$0xff]  }
 0x263   : > { %v9864_v12 = vpop.f32.mrf.mxu1 }
 0x264   : > { %v9865_v11 = vadd.f32 %v9864_v12, %v9863_v61  ;;  %v10849_v61 = vld [vmem:[%s14422_s3 + $0x124] ss:$8 sps:$4 sm:$0xff]   ;;  %v10852_v12 = vld [vmem:[%s14422_s3 + $0x134] ss:$8 sps:$4 sm:$0xff]  }
 0x265   : > { %v9866_v15 = vpop.f32.mrf.mxu1 }
 0x266   : > { %v1580_v25 = vpack.c.bf16 %v9865_v11, %v9862_v13  ;;  %v10857_v13 = vld [vmem:[%s14422_s3 + $0x144] ss:$8 sps:$4 sm:$0xff]   ;;  %v10855_v11 = vld [vmem:[%s14422_s3 + $0x140] ss:$8 sps:$4 sm:$0xff]  }
 0x267   : > { %v9867_v17 = vpop.f32.mrf.mxu1 }
 0x268   : > { %10373 = vmatmul.mubr.msk.bf16.vlgmr.msra.gmra.mxu0 %vm1297_vm4, %v1579_v16  ;;  %v9868_v19 = vadd.f32 %v9867_v17, %v9866_v15  ;;  %v10858_v15 = vld [vmem:[%s14422_s3 + $0x154] ss:$8 sps:$4 sm:$0xff]   ;;  %v10860_v16 = vld [vmem:[%s14422_s3 + $0x150] ss:$8 sps:$4 sm:$0xff]  }
 0x269   : > { %10381 = vmatpush3.bf16.msra.mxu0 %v10841_v34  ;;  %v9869_v58 = vpop.f32.mrf.mxu1  ;;  %10376 = vmatprep.mubr.msk.bf16.mxu0 %vm1297_vm4, %v1580_v25  ;;  %v10861_v25 = vld [vmem:[%s14422_s3 + $0x164] ss:$8 sps:$4 sm:$0xff]   ;;  %v10864_v17 = vld [vmem:[%s14422_s3 + $0x174] ss:$8 sps:$4 sm:$0xff]  }
 0x26a   : > { %10382 = vmatprep.subr.bf16.mxu0 %v10842_v51 }
 0x26b   : > { %v9870_v18 = vpop.f32.mrf.mxu1 }
 0x26c   : > { %v9871_v20 = vadd.f32 %v9870_v18, %v9869_v58  ;;  %v10866_v58 = vld [vmem:[%s14422_s3 + $0x170] ss:$8 sps:$4 sm:$0xff]   ;;  %v10867_v18 = vld [vmem:[%s14424_s4 + $0x48] sm:$0xff]  }
 0x26d   : > { %10383 = vmatpush3.bf16.msra.mxu0 %v10842_v51  ;;  %v9894_v55 = vpop.f32.mrf.mxu1  ;;  %v10863_v51 = vld [vmem:[%s14422_s3 + $0x160] ss:$8 sps:$4 sm:$0xff]   ;;  %10392 = vmatprep.subr.bf16.mxu1 %v10867_v18 }
 0x26e   : > { %v1581_v23 = vpack.c.bf16 %v9871_v20, %v9868_v19  ;;  %9924 = vmatprep.subr.bf16.mxu0 %v11917_v38  ;;  %10393 = vmatpush3.bf16.msra.mxu1 %v10867_v18  ;;  %v10868_v19 = vld [vmem:[%s14424_s4 + $0x40] sm:$0xff]   ;;  %v12272_v20 = vld [vmem:[%s14424_s4 + $0x58] sm:$0xff]  }
 0x26f   : > { %v9895_v36 = vpop.f32.mrf.mxu1  ;;  %10394 = vmatprep.subr.bf16.mxu1 %v10868_v19 }
 0x270   : > { %10377 = vmatmul.mubr.msk.bf16.gmra.mxu0 %vm1297_vm4, %v1581_v23  ;;  %v9896_v53 = vadd.f32 %v9895_v36, %v9894_v55 }
 0x271   : > { %v9897_v24 = vpop.f32.mrf.mxu1 }
 0x272   : > { %10395 = vmatpush3.bf16.msra.mxu1 %v10868_v19 }
 0x273   : > { %v9898_v26 = vpop.f32.mrf.mxu1  ;;  %10404 = vmatprep.subr.bf16.mxu1 %v12272_v20 }
 0x274   : > { %v9899_v27 = vadd.f32 %v9898_v26, %v9897_v24 }
 0x275   : > { %v9900_v28 = vpop.f32.mrf.mxu1 }
 0x276   : > { %v1798_v62 = vpack.c.bf16 %v9899_v27, %v9896_v53 }
 0x277   : > { %v9901_v0 = vpop.f32.mrf.mxu1 }
 0x278   : > { %10384 = vmatprep.mubr.msk.bf16.mxu0 %vm1297_vm4, %v1798_v62  ;;  %v9902_v2 = vadd.f32 %v9901_v0, %v9900_v28 }
 0x279   : > { %v9903_v59 = vpop.f32.mrf.mxu1 }
 0x27b   : > { %v9904_v1 = vpop.f32.mrf.mxu1 }
 0x27c   : > { %v9905_v4 = vadd.f32 %v9904_v1, %v9903_v59 }
 0x27d   : > { %v9906_v46 = vpop.f32.mrf.mxu1 }
 0x27e   : > { %v1799_v6 = vpack.c.bf16 %v9905_v4, %v9902_v2 }
 0x27f   : > { %v9907_v7 = vpop.f32.mrf.mxu1 }
 0x280   : > { %10385 = vmatmul.mubr.msk.bf16.vlgmr.msra.gmra.mxu0 %vm1297_vm4, %v1799_v6  ;;  %v9908_v56 = vadd.f32 %v9907_v7, %v9906_v46 }
 0x281   : > { %9925 = vmatpush3.bf16.msra.mxu0 %v11915_v37  ;;  %v9909_v57 = vpop.f32.mrf.mxu1 }
 0x282   : > { %9926 = vmatprep.subr.bf16.mxu0 %v11923_v49 }
 0x283   : > { %v9910_v30 = vpop.f32.mrf.mxu1 }
 0x284   : > { %v9911_v31 = vadd.f32 %v9910_v30, %v9909_v57 }
 0x285   : > { %9927 = vmatpush3.bf16.msra.mxu0 %v11934_v63  ;;  %v9912_v33 = vpop.f32.mrf.mxu1 }
 0x286   : > { %v1800_v8 = vpack.c.bf16 %v9911_v31, %v9908_v56  ;;  %9928 = vmatprep.subr.bf16.mxu0 %v11939_v5 }
 0x287   : > { %v9913_v9 = vpop.f32.mrf.mxu1 }
 0x288   : > { %10388 = vmatprep.mubr.msk.bf16.mxu0 %vm1297_vm4, %v1800_v8  ;;  %v9914_v39 = vadd.f32 %v9913_v9, %v9912_v33 }
 0x289   : > { %9929 = vmatpush3.bf16.msra.mxu0 %v11948_v3  ;;  %v9915_v34 = vpop.f32.mrf.mxu1 }
 0x28a   : > { %9930 = vmatprep.subr.bf16.mxu0 %v11954_v14 }
 0x28b   : > { %v9916_v41 = vpop.f32.mrf.mxu1 }
 0x28c   : > { %v9917_v42 = vadd.f32 %v9916_v41, %v9915_v34 }
 0x28d   : > { %9931 = vmatpush3.bf16.msra.mxu0 %v11963_v40 }
 0x28e   : > { %v1801_v44 = vpack.c.bf16 %v9917_v42, %v9914_v39  ;;  %9932 = vmatprep.subr.bf16.mxu0 %v11967_v21 }
 0x290   : > { %10389 = vmatmul.mubr.msk.bf16.gmra.mxu0 %vm1297_vm4, %v1801_v44 }
 0x291   : > { %9933 = vmatpush3.bf16.msra.mxu0 %v11876_v45  ;;  %1985 = vmatprep.mubr.bf16.mxu0 %v10845_v29 }
 0x292   : > { %9934 = vmatprep.subr.bf16.mxu0 %v11977_v32 }
 0x295   : > { %9935 = vmatpush3.bf16.msra.mxu0 %v11983_v54 }
 0x296   : > { %9936 = vmatprep.subr.bf16.mxu0 %v11985_v43 }
 0x299   : > { %9937 = vmatpush3.bf16.msra.mxu0 %v11869_v35 }
 0x29a   : > { %9938 = vmatprep.subr.bf16.mxu0 %v11989_v50 }
 0x29d   : > { %9939 = vmatpush3.bf16.msra.mxu0 %v11993_v52 }
 0x29e   : > { %9970 = vmatprep.subr.bf16.mxu0 %v11917_v38 }
 0x2a0   : > { %1986 = vmatmul.mubr.bf16.vlgmr.msra.gmra.mxu0 %v10843_v47 }
 0x2a1   : > { %9971 = vmatpush3.bf16.msra.mxu0 %v11915_v37  ;;  %1993 = vmatprep.mubr.bf16.mxu0 %v10846_v22 }
 0x2a2   : > { %9972 = vmatprep.subr.bf16.mxu0 %v11923_v49 }
 0x2a5   : > { %9973 = vmatpush3.bf16.msra.mxu0 %v11934_v63 }
 0x2a6   : > { %9974 = vmatprep.subr.bf16.mxu0 %v11939_v5 }
 0x2a8   : > { %1994 = vmatmul.mubr.bf16.gmra.mxu0 %v10848_v10 }
 0x2a9   : > { %9975 = vmatpush3.bf16.msra.mxu0 %v11948_v3  ;;  %2001 = vmatprep.mubr.bf16.mxu0 %v10849_v61 }
 0x2aa   : > { %9976 = vmatprep.subr.bf16.mxu0 %v11954_v14 }
 0x2ad   : > { %9977 = vmatpush3.bf16.msra.mxu0 %v11963_v40 }
 0x2ae   : > { %9978 = vmatprep.subr.bf16.mxu0 %v11967_v21 }
 0x2b0   : > { %2002 = vmatmul.mubr.bf16.gmra.mxu0 %v10851_v48 }
 0x2b1   : > { %9979 = vmatpush3.bf16.msra.mxu0 %v11876_v45  ;;  %2009 = vmatprep.mubr.bf16.mxu0 %v10852_v12 }
 0x2b2   : > { %9980 = vmatprep.subr.bf16.mxu0 %v11977_v32 }
 0x2b5   : > { %9981 = vmatpush3.bf16.msra.mxu0 %v11983_v54 }
 0x2b6   : > { %9982 = vmatprep.subr.bf16.mxu0 %v11985_v43 }
 0x2b8   : > { %2010 = vmatmul.mubr.bf16.gmra.mxu0 %v10854_v60 }
 0x2b9   : > { %9983 = vmatpush3.bf16.msra.mxu0 %v11869_v35  ;;  %2205 = vmatprep.mubr.bf16.mxu0 %v10857_v13 }
 0x2ba   : > { %9984 = vmatprep.subr.bf16.mxu0 %v11989_v50 }
 0x2bd   : > { %9985 = vmatpush3.bf16.msra.mxu0 %v11993_v52 }
 0x2c0   : > { %2206 = vmatmul.mubr.bf16.vlgmr.msra.gmra.mxu0 %v10855_v11 }
 0x2c1   : > { %2213 = vmatprep.mubr.bf16.mxu0 %v10858_v15 }
 0x2c8   : > { %2214 = vmatmul.mubr.bf16.gmra.mxu0 %v10860_v16 }
 0x2c9   : > { %2221 = vmatprep.mubr.bf16.mxu0 %v10861_v25 }
 0x2d0   : > { %2222 = vmatmul.mubr.bf16.gmra.mxu0 %v10863_v51 }
 0x2d1   : > { %2229 = vmatprep.mubr.bf16.mxu0 %v10864_v17 }
 0x2d8   : > { %2230 = vmatmul.mubr.bf16.gmra.mxu0 %v10866_v58 }
 0x300   : > { %v10350_v55 = vpop.f32.mrf.mxu0 }
 0x302   : > { %v1344_v23 = vpop.f32.mrf.mxu0 }
 0x304   : > { %v10351_v36 = vpop.f32.mrf.mxu0 }
 0x306   : > { %v12275_v24 = vpop.f32.mrf.mxu0 }
 0x310   : > { %v10354_v26 = vpop.f32.mrf.mxu0 }
 0x312   : > { %v1360_v53 = vpop.f32.mrf.mxu0 }
 0x314   : > { %v10355_v27 = vpop.f32.mrf.mxu0 }
 0x316   : > { %v12277_v28 = vpop.f32.mrf.mxu0 }
 0x318   : > { %v10362_v62 = vpop.f32.mrf.mxu0 }
 0x319   : > { %v1442_v0 = vadd.f32 %v10362_v62, %v10350_v55 }
 0x31a   : > { %v1433_v59 = vpop.f32.mrf.mxu0 }
 0x31b   : > { %v1434_v1 = vadd.f32 %v1433_v59, %v1344_v23 }
 0x31c   : > { %v10363_v2 = vpop.f32.mrf.mxu0 }
 0x31d   : > { %v1445_v4 = vadd.f32 %v10363_v2, %v10351_v36 }
 0x31e   : > { %v12279_v46 = vpop.f32.mrf.mxu0 }
 0x320   : > { %v10366_v6 = vpop.f32.mrf.mxu0 }
 0x321   : > { %v1458_v7 = vadd.f32 %v10366_v6, %v10354_v26 }
 0x322   : > { %v1449_v57 = vpop.f32.mrf.mxu0 }
 0x323   : > { %v1450_v56 = vadd.f32 %v1449_v57, %v1360_v53 }
 0x324   : > { %v10367_v30 = vpop.f32.mrf.mxu0 }
 0x325   : > { %v1461_v31 = vadd.f32 %v10367_v30, %v10355_v27 }
 0x326   : > { %v12281_v33 = vpop.f32.mrf.mxu0 }
 0x328   : > { %v10374_v8 = vpop.f32.mrf.mxu0 }
 0x329   : > { %v1678_v9 = vadd.f32 %v10374_v8, %v1442_v0  ;;  %v10870_v8 = vld [vmem:[%s14424_s4 + $0x50] sm:$0xff]  }
 0x32a   : > { %v1645_v34 = vpop.f32.mrf.mxu0 }
 0x32b   : > { %v1676_v39 = vadd.f32 %v1645_v34, %v1434_v1 }
 0x32c   : > { %v10375_v41 = vpop.f32.mrf.mxu0 }
 0x32d   : > { %v1679_v42 = vadd.f32 %v10375_v41, %v1445_v4 }
 0x32e   : > { %v12283_v29 = vpop.f32.mrf.mxu0 }
 0x330   : > { %v10378_v44 = vpop.f32.mrf.mxu0 }
 0x331   : > { %v1682_v47 = vadd.f32 %v10378_v44, %v1458_v7 }
 0x332   : > { %v1661_v22 = vpop.f32.mrf.mxu0 }
 0x333   : > { %v1680_v10 = vadd.f32 %v1661_v22, %v1450_v56 }
 0x334   : > { %v10379_v61 = vpop.f32.mrf.mxu0 }
 0x335   : > { %v1683_v48 = vadd.f32 %v10379_v61, %v1461_v31 }
 0x336   : > { %v12285_v12 = vpop.f32.mrf.mxu0 }
 0x340   : > { %v10386_v60 = vpop.f32.mrf.mxu0 }
 0x341   : > { %v12287_v13 = vadd.f32 %v10386_v60, %v1678_v9 }
 0x342   : > { %v1865_v11 = vpop.f32.mrf.mxu0 }
 0x343   : > { %v12289_v15 = vadd.f32 %v1865_v11, %v1676_v39 }
 0x344   : > { %v10387_v16 = vpop.f32.mrf.mxu0 }
 0x345   : > { %v12291_v25 = vadd.f32 %v10387_v16, %v1679_v42 }
 0x346   : > { %v12293_v51 = vpop.f32.mrf.mxu0 }
 0x350   : > { %v10390_v17 = vpop.f32.mrf.mxu0 }
 0x351   : > { %v12295_v58 = vadd.f32 %v10390_v17, %v1682_v47 }
 0x352   : > { %v1881_v18 = vpop.f32.mrf.mxu0 }
 0x353   : > { %v12297_v19 = vadd.f32 %v1881_v18, %v1680_v10 }
 0x354   : > { %v10391_v55 = vpop.f32.mrf.mxu0 }
 0x355   : > { %v12299_v23 = vadd.f32 %v10391_v55, %v1683_v48 }
 0x356   : > { %v12301_v36 = vpop.f32.mrf.mxu0 }
 0x360   : > { %v9940_v26 = vpop.f32.mrf.mxu0 }
 0x362   : > { %v9941_v53 = vpop.f32.mrf.mxu0 }
 0x363   : > { %v9942_v0 = vadd.f32 %v9941_v53, %v9940_v26 }
 0x364   : > { %v9943_v27 = vpop.f32.mrf.mxu0 }
 0x366   : > { %v9944_v62 = vpop.f32.mrf.mxu0 }
 0x367   : > { %v9945_v59 = vadd.f32 %v9944_v62, %v9943_v27 }
 0x368   : > { %v9946_v1 = vpop.f32.mrf.mxu0 }
 0x369   : > { %v2018_v2 = vpack.c.bf16 %v9945_v59, %v9942_v0 }
 0x36a   : > { %v9947_v4 = vpop.f32.mrf.mxu0 }
 0x36b   : > { %10396 = vmatprep.mubr.msk.bf16.mxu1 %vm1297_vm4, %v2018_v2  ;;  %v9948_v57 = vadd.f32 %v9947_v4, %v9946_v1 }
 0x36c   : > { %v9949_v6 = vpop.f32.mrf.mxu0 }
 0x36e   : > { %v9950_v7 = vpop.f32.mrf.mxu0 }
 0x36f   : > { %v9951_v56 = vadd.f32 %v9950_v7, %v9949_v6 }
 0x370   : > { %v9952_v30 = vpop.f32.mrf.mxu0 }
 0x371   : > { %v2019_v31 = vpack.c.bf16 %v9951_v56, %v9948_v57 }
 0x372   : > { %v9953_v9 = vpop.f32.mrf.mxu0 }
 0x373   : > { %10397 = vmatmul.mubr.msk.bf16.vlgmr.msra.gmra.mxu1 %vm1297_vm4, %v2019_v31  ;;  %v9954_v41 = vadd.f32 %v9953_v9, %v9952_v30 }
 0x374   : > { %10405 = vmatpush3.bf16.msra.mxu1 %v12272_v20  ;;  %v9955_v34 = vpop.f32.mrf.mxu0 }
 0x375   : > { %10406 = vmatprep.subr.bf16.mxu1 %v10870_v8 }
 0x376   : > { %v9956_v39 = vpop.f32.mrf.mxu0 }
 0x377   : > { %v9957_v42 = vadd.f32 %v9956_v39, %v9955_v34 }
 0x378   : > { %10407 = vmatpush3.bf16.msra.mxu1 %v10870_v8  ;;  %v9958_v44 = vpop.f32.mrf.mxu0 }
 0x379   : > { %v2020_v47 = vpack.c.bf16 %v9957_v42, %v9954_v41  ;;  %10016 = vmatprep.subr.bf16.mxu1 %v11917_v38 }
 0x37a   : > { %v9959_v22 = vpop.f32.mrf.mxu0 }
 0x37b   : > { %10400 = vmatprep.mubr.msk.bf16.mxu1 %vm1297_vm4, %v2020_v47  ;;  %v9960_v48 = vadd.f32 %v9959_v22, %v9958_v44  ;;  %v10873_v47 = vld [vmem:[%s14422_s3 + $0x184] ss:$8 sps:$4 sm:$0xff]  }
 0x37c   : > { %v9961_v10 = vpop.f32.mrf.mxu0 }
 0x37e   : > { %v9962_v61 = vpop.f32.mrf.mxu0 }
 0x37f   : > { %v9963_v60 = vadd.f32 %v9962_v61, %v9961_v10  ;;  %v10871_v10 = vld [vmem:[%s14422_s3 + $0x180] ss:$8 sps:$4 sm:$0xff]   ;;  %v10874_v61 = vld [vmem:[%s14422_s3 + $0x194] ss:$8 sps:$4 sm:$0xff]  }
 0x380   : > { %v9986_v11 = vpop.f32.mrf.mxu0 }
 0x381   : > { %v2021_v16 = vpack.c.bf16 %v9963_v60, %v9960_v48  ;;  %v10876_v48 = vld [vmem:[%s14422_s3 + $0x190] ss:$8 sps:$4 sm:$0xff]   ;;  %v10877_v60 = vld [vmem:[%s14422_s3 + $0x1a4] ss:$8 sps:$4 sm:$0xff]  }
 0x382   : > { %v9987_v20 = vpop.f32.mrf.mxu0 }
 0x383   : > { %10401 = vmatmul.mubr.msk.bf16.gmra.mxu1 %vm1297_vm4, %v2021_v16  ;;  %v9988_v55 = vadd.f32 %v9987_v20, %v9986_v11  ;;  %v10879_v11 = vld [vmem:[%s14422_s3 + $0x1a0] ss:$8 sps:$4 sm:$0xff]   ;;  %v10880_v16 = vld [vmem:[%s14422_s3 + $0x1b4] ss:$8 sps:$4 sm:$0xff]   ;;  %v10882_v20 = vld [vmem:[%s14422_s3 + $0x1b0] ss:$8 sps:$4 sm:$0xff]  }
 0x384   : > { %v9989_v17 = vpop.f32.mrf.mxu0 }
 0x386   : > { %v9990_v18 = vpop.f32.mrf.mxu0 }
 0x387   : > { %v9991_v26 = vadd.f32 %v9990_v18, %v9989_v17  ;;  %v10885_v17 = vld [vmem:[%s14422_s3 + $0x1c4] ss:$8 sps:$4 sm:$0xff]   ;;  %v10883_v18 = vld [vmem:[%s14422_s3 + $0x1c0] ss:$8 sps:$4 sm:$0xff]  }
 0x388   : > { %v9992_v53 = vpop.f32.mrf.mxu0 }
 0x389   : > { %v2238_v27 = vpack.c.bf16 %v9991_v26, %v9988_v55  ;;  %v10886_v55 = vld [vmem:[%s14422_s3 + $0x1d4] ss:$8 sps:$4 sm:$0xff]   ;;  %v10888_v26 = vld [vmem:[%s14422_s3 + $0x1d0] ss:$8 sps:$4 sm:$0xff]  }
 0x38a   : > { %v9993_v62 = vpop.f32.mrf.mxu0 }
 0x38b   : > { %10408 = vmatprep.mubr.msk.bf16.mxu1 %vm1297_vm4, %v2238_v27  ;;  %v9994_v1 = vadd.f32 %v9993_v62, %v9992_v53  ;;  %v10889_v53 = vld [vmem:[%s14422_s3 + $0x1e4] ss:$8 sps:$4 sm:$0xff]   ;;  %v10891_v27 = vld [vmem:[%s14422_s3 + $0x1e0] ss:$8 sps:$4 sm:$0xff]   ;;  %v10892_v62 = vld [vmem:[%s14422_s3 + $0x1f4] ss:$8 sps:$4 sm:$0xff]  }
 0x38c   : > { %v9995_v0 = vpop.f32.mrf.mxu0 }
 0x38e   : > { %v9996_v59 = vpop.f32.mrf.mxu0 }
 0x38f   : > { %v9997_v2 = vadd.f32 %v9996_v59, %v9995_v0  ;;  %v10894_v0 = vld [vmem:[%s14422_s3 + $0x1f0] ss:$8 sps:$4 sm:$0xff]   ;;  %v10895_v59 = vld [vmem:[%s14424_s4 + $0x68] sm:$0xff]  }
 0x390   : > { %v9998_v4 = vpop.f32.mrf.mxu0  ;;  %10416 = vmatprep.subr.bf16.mxu0 %v10895_v59 }
 0x391   : > { %v2239_v6 = vpack.c.bf16 %v9997_v2, %v9994_v1  ;;  %10417 = vmatpush3.bf16.msra.mxu0 %v10895_v59  ;;  %v10896_v1 = vld [vmem:[%s14424_s4 + $0x60] sm:$0xff]   ;;  %v10897_v2 = vld [vmem:[%s14424_s4 + $0x78] sm:$0xff]  }
 0x392   : > { %v9999_v7 = vpop.f32.mrf.mxu0  ;;  %10418 = vmatprep.subr.bf16.mxu0 %v10896_v1 }
 0x393   : > { %10409 = vmatmul.mubr.msk.bf16.vlgmr.msra.gmra.mxu1 %vm1297_vm4, %v2239_v6  ;;  %v10000_v56 = vadd.f32 %v9999_v7, %v9998_v4 }
 0x394   : > { %10017 = vmatpush3.bf16.msra.mxu1 %v11915_v37  ;;  %v10001_v57 = vpop.f32.mrf.mxu0 }
 0x395   : > { %10018 = vmatprep.subr.bf16.mxu1 %v11923_v49  ;;  %10419 = vmatpush3.bf16.msra.mxu0 %v10896_v1 }
 0x396   : > { %v10002_v30 = vpop.f32.mrf.mxu0  ;;  %10428 = vmatprep.subr.bf16.mxu0 %v10897_v2 }
 0x397   : > { %v10003_v31 = vadd.f32 %v10002_v30, %v10001_v57 }
 0x398   : > { %10019 = vmatpush3.bf16.msra.mxu1 %v11934_v63  ;;  %v10004_v8 = vpop.f32.mrf.mxu0 }
 0x399   : > { %v2240_v9 = vpack.c.bf16 %v10003_v31, %v10000_v56  ;;  %10020 = vmatprep.subr.bf16.mxu1 %v11939_v5 }
 0x39a   : > { %v10005_v34 = vpop.f32.mrf.mxu0 }
 0x39b   : > { %10412 = vmatprep.mubr.msk.bf16.mxu1 %vm1297_vm4, %v2240_v9  ;;  %v10006_v41 = vadd.f32 %v10005_v34, %v10004_v8 }
 0x39c   : > { %10021 = vmatpush3.bf16.msra.mxu1 %v11948_v3  ;;  %v10007_v39 = vpop.f32.mrf.mxu0 }
 0x39d   : > { %10022 = vmatprep.subr.bf16.mxu1 %v11954_v14 }
 0x39e   : > { %v10008_v42 = vpop.f32.mrf.mxu0 }
 0x39f   : > { %v10009_v44 = vadd.f32 %v10008_v42, %v10007_v39 }
 0x3a0   : > { %10023 = vmatpush3.bf16.msra.mxu1 %v11963_v40 }
 0x3a1   : > { %v2241_v22 = vpack.c.bf16 %v10009_v44, %v10006_v41  ;;  %10024 = vmatprep.subr.bf16.mxu1 %v11967_v21 }
 0x3a3   : > { %10413 = vmatmul.mubr.msk.bf16.gmra.mxu1 %vm1297_vm4, %v2241_v22 }
 0x3a4   : > { %10025 = vmatpush3.bf16.msra.mxu1 %v11876_v45  ;;  %2425 = vmatprep.mubr.bf16.mxu1 %v10873_v47 }
 0x3a5   : > { %10026 = vmatprep.subr.bf16.mxu1 %v11977_v32 }
 0x3a8   : > { %10027 = vmatpush3.bf16.msra.mxu1 %v11983_v54 }
 0x3a9   : > { %10028 = vmatprep.subr.bf16.mxu1 %v11985_v43 }
 0x3ac   : > { %10029 = vmatpush3.bf16.msra.mxu1 %v11869_v35 }
 0x3ad   : > { %10030 = vmatprep.subr.bf16.mxu1 %v11989_v50 }
 0x3b0   : > { %10031 = vmatpush3.bf16.msra.mxu1 %v11993_v52 }
 0x3b1   : > { %10062 = vmatprep.subr.bf16.mxu1 %v11917_v38 }
 0x3b3   : > { %2426 = vmatmul.mubr.bf16.vlgmr.msra.gmra.mxu1 %v10871_v10 }
 0x3b4   : > { %10063 = vmatpush3.bf16.msra.mxu1 %v11915_v37  ;;  %2433 = vmatprep.mubr.bf16.mxu1 %v10874_v61 }
 0x3b5   : > { %10064 = vmatprep.subr.bf16.mxu1 %v11923_v49 }
 0x3b8   : > { %10065 = vmatpush3.bf16.msra.mxu1 %v11934_v63 }
 0x3b9   : > { %10066 = vmatprep.subr.bf16.mxu1 %v11939_v5 }
 0x3bb   : > { %2434 = vmatmul.mubr.bf16.gmra.mxu1 %v10876_v48 }
 0x3bc   : > { %10067 = vmatpush3.bf16.msra.mxu1 %v11948_v3  ;;  %2441 = vmatprep.mubr.bf16.mxu1 %v10877_v60 }
 0x3bd   : > { %10068 = vmatprep.subr.bf16.mxu1 %v11954_v14 }
 0x3c0   : > { %10069 = vmatpush3.bf16.msra.mxu1 %v11963_v40 }
 0x3c1   : > { %10070 = vmatprep.subr.bf16.mxu1 %v11967_v21 }
 0x3c3   : > { %2442 = vmatmul.mubr.bf16.gmra.mxu1 %v10879_v11 }
 0x3c4   : > { %10071 = vmatpush3.bf16.msra.mxu1 %v11876_v45  ;;  %2449 = vmatprep.mubr.bf16.mxu1 %v10880_v16 }
 0x3c5   : > { %10072 = vmatprep.subr.bf16.mxu1 %v11977_v32 }
 0x3c8   : > { %10073 = vmatpush3.bf16.msra.mxu1 %v11983_v54 }
 0x3c9   : > { %10074 = vmatprep.subr.bf16.mxu1 %v11985_v43 }
 0x3cb   : > { %2450 = vmatmul.mubr.bf16.gmra.mxu1 %v10882_v20 }
 0x3cc   : > { %10075 = vmatpush3.bf16.msra.mxu1 %v11869_v35  ;;  %2645 = vmatprep.mubr.bf16.mxu1 %v10885_v17 }
 0x3cd   : > { %10076 = vmatprep.subr.bf16.mxu1 %v11989_v50 }
 0x3d0   : > { %10077 = vmatpush3.bf16.msra.mxu1 %v11993_v52 }
 0x3d3   : > { %2646 = vmatmul.mubr.bf16.vlgmr.msra.gmra.mxu1 %v10883_v18 }
 0x3d4   : > { %2653 = vmatprep.mubr.bf16.mxu1 %v10886_v55 }
 0x3db   : > { %2654 = vmatmul.mubr.bf16.gmra.mxu1 %v10888_v26 }
 0x3dc   : > { %2661 = vmatprep.mubr.bf16.mxu1 %v10889_v53 }
 0x3e3   : > { %2662 = vmatmul.mubr.bf16.gmra.mxu1 %v10891_v27 }
 0x3e4   : > { %2669 = vmatprep.mubr.bf16.mxu1 %v10892_v62 }
 0x3eb   : > { %2670 = vmatmul.mubr.bf16.gmra.mxu1 %v10894_v0 }
 0x433   : > { %v10398_v4 = vpop.f32.mrf.mxu1 }
 0x434   : > { %v2118_v6 = vadd.f32 %v10398_v4, %v12287_v13 }
 0x435   : > { %v2085_v7 = vpop.f32.mrf.mxu1 }
 0x436   : > { %v2116_v57 = vadd.f32 %v2085_v7, %v12289_v15 }
 0x437   : > { %v10399_v56 = vpop.f32.mrf.mxu1 }
 0x438   : > { %v2119_v30 = vadd.f32 %v10399_v56, %v12291_v25  ;;  %v10898_v56 = vld [vmem:[%s14424_s4 + $0x70] sm:$0xff]  }
 0x439   : > { %v12407_v31 = vpop.f32.mrf.mxu1 }
 0x443   : > { %v10402_v8 = vpop.f32.mrf.mxu1 }
 0x444   : > { %v2122_v9 = vadd.f32 %v10402_v8, %v12295_v58 }
 0x445   : > { %v2101_v34 = vpop.f32.mrf.mxu1 }
 0x446   : > { %v2120_v39 = vadd.f32 %v2101_v34, %v12297_v19 }
 0x447   : > { %v10403_v41 = vpop.f32.mrf.mxu1 }
 0x448   : > { %v2123_v42 = vadd.f32 %v10403_v41, %v12299_v23 }
 0x449   : > { %v12412_v44 = vpop.f32.mrf.mxu1 }
 0x453   : > { %v10410_v13 = vpop.f32.mrf.mxu1 }
 0x454   : > { %v12414_v47 = vadd.f32 %v10410_v13, %v2118_v6 }
 0x455   : > { %v2305_v15 = vpop.f32.mrf.mxu1 }
 0x456   : > { %v12416_v22 = vadd.f32 %v2305_v15, %v2116_v57 }
 0x457   : > { %v10411_v25 = vpop.f32.mrf.mxu1 }
 0x458   : > { %v12418_v10 = vadd.f32 %v10411_v25, %v2119_v30 }
 0x459   : > { %v12420_v61 = vpop.f32.mrf.mxu1 }
 0x463   : > { %v10414_v58 = vpop.f32.mrf.mxu1 }
 0x464   : > { %v12422_v48 = vadd.f32 %v10414_v58, %v2122_v9 }
 0x465   : > { %v2321_v19 = vpop.f32.mrf.mxu1 }
 0x466   : > { %v12424_v60 = vadd.f32 %v2321_v19, %v2120_v39 }
 0x467   : > { %v10415_v23 = vpop.f32.mrf.mxu1 }
 0x468   : > { %v12426_v11 = vadd.f32 %v10415_v23, %v2123_v42 }
 0x469   : > { %v12428_v16 = vpop.f32.mrf.mxu1 }
 0x473   : > { %v10032_v20 = vpop.f32.mrf.mxu1 }
 0x475   : > { %v10033_v17 = vpop.f32.mrf.mxu1 }
 0x476   : > { %v10034_v26 = vadd.f32 %v10033_v17, %v10032_v20 }
 0x477   : > { %v10035_v18 = vpop.f32.mrf.mxu1 }
 0x479   : > { %v10036_v55 = vpop.f32.mrf.mxu1 }
 0x47a   : > { %v10037_v53 = vadd.f32 %v10036_v55, %v10035_v18 }
 0x47b   : > { %v10038_v27 = vpop.f32.mrf.mxu1 }
 0x47c   : > { %v2458_v62 = vpack.c.bf16 %v10037_v53, %v10034_v26 }
 0x47d   : > { %v10039_v0 = vpop.f32.mrf.mxu1 }
 0x47e   : > { %10420 = vmatprep.mubr.msk.bf16.mxu0 %vm1297_vm4, %v2458_v62  ;;  %v10040_v4 = vadd.f32 %v10039_v0, %v10038_v27 }
 0x47f   : > { %v10041_v59 = vpop.f32.mrf.mxu1 }
 0x481   : > { %v10042_v1 = vpop.f32.mrf.mxu1 }
 0x482   : > { %v10043_v6 = vadd.f32 %v10042_v1, %v10041_v59 }
 0x483   : > { %v10044_v7 = vpop.f32.mrf.mxu1 }
 0x484   : > { %v2459_v57 = vpack.c.bf16 %v10043_v6, %v10040_v4 }
 0x485   : > { %v10045_v30 = vpop.f32.mrf.mxu1 }
 0x486   : > { %10421 = vmatmul.mubr.msk.bf16.vlgmr.msra.gmra.mxu0 %vm1297_vm4, %v2459_v57  ;;  %v10046_v34 = vadd.f32 %v10045_v30, %v10044_v7 }
 0x487   : > { %10429 = vmatpush3.bf16.msra.mxu0 %v10897_v2  ;;  %v10047_v8 = vpop.f32.mrf.mxu1 }
 0x488   : > { %10430 = vmatprep.subr.bf16.mxu0 %v10898_v56 }
 0x489   : > { %v10048_v9 = vpop.f32.mrf.mxu1 }
 0x48a   : > { %v10049_v39 = vadd.f32 %v10048_v9, %v10047_v8 }
 0x48b   : > { %10431 = vmatpush3.bf16.msra.mxu0 %v10898_v56  ;;  %v10050_v41 = vpop.f32.mrf.mxu1 }
 0x48c   : > { %v2460_v42 = vpack.c.bf16 %v10049_v39, %v10046_v34  ;;  %10108 = vmatprep.subr.bf16.mxu0 %v11917_v38 }
 0x48d   : > { %v10051_v13 = vpop.f32.mrf.mxu1 }
 0x48e   : > { %10424 = vmatprep.mubr.msk.bf16.mxu0 %vm1297_vm4, %v2460_v42  ;;  %v10052_v58 = vadd.f32 %v10051_v13, %v10050_v41 }
 0x48f   : > { %v10053_v15 = vpop.f32.mrf.mxu1 }
 0x491   : > { %v10054_v25 = vpop.f32.mrf.mxu1 }
 0x492   : > { %v10055_v19 = vadd.f32 %v10054_v25, %v10053_v15 }
 0x493   : > { %v10078_v23 = vpop.f32.mrf.mxu1 }
 0x494   : > { %v2461_v20 = vpack.c.bf16 %v10055_v19, %v10052_v58 }
 0x495   : > { %v10079_v2 = vpop.f32.mrf.mxu1 }
 0x496   : > { %10425 = vmatmul.mubr.msk.bf16.gmra.mxu0 %vm1297_vm4, %v2461_v20  ;;  %v10080_v55 = vadd.f32 %v10079_v2, %v10078_v23 }
 0x497   : > { %v10081_v17 = vpop.f32.mrf.mxu1 }
 0x499   : > { %v10082_v18 = vpop.f32.mrf.mxu1 }
 0x49a   : > { %v10083_v26 = vadd.f32 %v10082_v18, %v10081_v17 }
 0x49b   : > { %v10084_v53 = vpop.f32.mrf.mxu1 }
 0x49c   : > { %v2678_v27 = vpack.c.bf16 %v10083_v26, %v10080_v55 }
 0x49d   : > { %v10085_v62 = vpop.f32.mrf.mxu1 }
 0x49e   : > { %10432 = vmatprep.mubr.msk.bf16.mxu0 %vm1297_vm4, %v2678_v27  ;;  %v10086_v59 = vadd.f32 %v10085_v62, %v10084_v53 }
 0x49f   : > { %v10087_v38 = vpop.f32.mrf.mxu1 }
 0x4a1   : > { %v10088_v0 = vpop.f32.mrf.mxu1 }
 0x4a2   : > { %v10089_v1 = vadd.f32 %v10088_v0, %v10087_v38 }
 0x4a3   : > { %v10090_v4 = vpop.f32.mrf.mxu1 }
 0x4a4   : > { %v2679_v6 = vpack.c.bf16 %v10089_v1, %v10086_v59 }
 0x4a5   : > { %v10091_v7 = vpop.f32.mrf.mxu1 }
 0x4a6   : > { %10433 = vmatmul.mubr.msk.bf16.vlgmr.msra.gmra.mxu0 %vm1297_vm4, %v2679_v6  ;;  %v10092_v56 = vadd.f32 %v10091_v7, %v10090_v4 }
 0x4a7   : > { %10109 = vmatpush3.bf16.msra.mxu0 %v11915_v37  ;;  %v10093_v57 = vpop.f32.mrf.mxu1 }
 0x4a8   : > { %10110 = vmatprep.subr.bf16.mxu0 %v11923_v49  ;;  %v10901_v49 = vld [vmem:[%s14422_s3 + $0x204] ss:$8 sps:$4 sm:$0xff]  }
 0x4a9   : > { %v10094_v30 = vpop.f32.mrf.mxu1 }
 0x4aa   : > { %v10095_v8 = vadd.f32 %v10094_v30, %v10093_v57 }
 0x4ab   : > { %10111 = vmatpush3.bf16.msra.mxu0 %v11934_v63  ;;  %v10096_v9 = vpop.f32.mrf.mxu1 }
 0x4ac   : > { %v2680_v34 = vpack.c.bf16 %v10095_v8, %v10092_v56  ;;  %10112 = vmatprep.subr.bf16.mxu0 %v11939_v5  ;;  %v10899_v5 = vld [vmem:[%s14422_s3 + $0x200] ss:$8 sps:$4 sm:$0xff]  }
 0x4ad   : > { %v10097_v39 = vpop.f32.mrf.mxu1 }
 0x4ae   : > { %10436 = vmatprep.mubr.msk.bf16.mxu0 %vm1297_vm4, %v2680_v34  ;;  %v10098_v42 = vadd.f32 %v10097_v39, %v10096_v9 }
 0x4af   : > { %10113 = vmatpush3.bf16.msra.mxu0 %v11948_v3  ;;  %v10099_v41 = vpop.f32.mrf.mxu1  ;;  %v10902_v3 = vld [vmem:[%s14422_s3 + $0x210] ss:$8 sps:$4 sm:$0xff]  }
 0x4b0   : > { %10114 = vmatprep.subr.bf16.mxu0 %v11954_v14  ;;  %v10905_v14 = vld [vmem:[%s14422_s3 + $0x220] ss:$8 sps:$4 sm:$0xff]  }
 0x4b1   : > { %v10100_v37 = vpop.f32.mrf.mxu1 }
 0x4b2   : > { %v10101_v13 = vadd.f32 %v10100_v37, %v10099_v41 }
 0x4b3   : > { %10115 = vmatpush3.bf16.msra.mxu0 %v11963_v40  ;;  %v10910_v40 = vld [vmem:[%s14422_s3 + $0x234] ss:$8 sps:$4 sm:$0xff]  }
 0x4b4   : > { %v2681_v63 = vpack.c.bf16 %v10101_v13, %v10098_v42  ;;  %10116 = vmatprep.subr.bf16.mxu0 %v11967_v21  ;;  %v10908_v21 = vld [vmem:[%s14422_s3 + $0x230] ss:$8 sps:$4 sm:$0xff]  }
 0x4b6   : > { %10437 = vmatmul.mubr.msk.bf16.gmra.mxu0 %vm1297_vm4, %v2681_v63 }
 0x4b7   : > { %10117 = vmatpush3.bf16.msra.mxu0 %v11876_v45  ;;  %2865 = vmatprep.mubr.bf16.mxu0 %v10901_v49  ;;  %v10904_v45 = vld [vmem:[%s14422_s3 + $0x214] ss:$8 sps:$4 sm:$0xff]  }
 0x4b8   : > { %10118 = vmatprep.subr.bf16.mxu0 %v11977_v32  ;;  %v10911_v32 = vld [vmem:[%s14424_s4 + $0x88] sm:$0xff]  }
 0x4b9   : > { %10440 = vmatprep.subr.bf16.mxu1 %v10911_v32 }
 0x4ba   : > { %10441 = vmatpush3.bf16.msra.mxu1 %v10911_v32 }
 0x4bb   : > { %10119 = vmatpush3.bf16.msra.mxu0 %v11983_v54  ;;  %v10912_v54 = vld [vmem:[%s14424_s4 + $0x80] sm:$0xff]  }
 0x4bc   : > { %10120 = vmatprep.subr.bf16.mxu0 %v11985_v43  ;;  %10442 = vmatprep.subr.bf16.mxu1 %v10912_v54 }
 0x4be   : > { %10443 = vmatpush3.bf16.msra.mxu1 %v10912_v54 }
 0x4bf   : > { %10121 = vmatpush3.bf16.msra.mxu0 %v11869_v35  ;;  %v10907_v35 = vld [vmem:[%s14422_s3 + $0x224] ss:$8 sps:$4 sm:$0xff]  }
 0x4c0   : > { %10122 = vmatprep.subr.bf16.mxu0 %v11989_v50 }
 0x4c3   : > { %10123 = vmatpush3.bf16.msra.mxu0 %v11993_v52 }
 0x4c6   : > { %2866 = vmatmul.mubr.bf16.vlgmr.msra.gmra.mxu0 %v10899_v5 }
 0x4c7   : > { %2873 = vmatprep.mubr.bf16.mxu0 %v10904_v45 }
 0x4ce   : > { %2874 = vmatmul.mubr.bf16.gmra.mxu0 %v10902_v3 }
 0x4cf   : > { %2881 = vmatprep.mubr.bf16.mxu0 %v10907_v35 }
 0x4d6   : > { %2882 = vmatmul.mubr.bf16.gmra.mxu0 %v10905_v14 }
 0x4d7   : > { %2889 = vmatprep.mubr.bf16.mxu0 %v10910_v40 }
 0x4de   : > { %2890 = vmatmul.mubr.bf16.gmra.mxu0 %v10908_v21 }
 0x546   : > { %v10422_v43 = vpop.f32.mrf.mxu0 }
 0x547   : > { %v2558_v50 = vadd.f32 %v10422_v43, %v12414_v47 }
 0x548   : > { %v2525_v52 = vpop.f32.mrf.mxu0 }
 0x549   : > { %v2556_v15 = vadd.f32 %v2525_v52, %v12416_v22 }
 0x54a   : > { %v10423_v25 = vpop.f32.mrf.mxu0 }
 0x54b   : > { %v2559_v58 = vadd.f32 %v10423_v25, %v12418_v10  ;;  %v11652_v25 = vmov 0.0  }
 0x54c   : > { %v12490_v19 = vpop.f32.mrf.mxu0  ;;  %10452 = vmatprep.subr.bf16.mxu1 %v11652_v25  ;;  %10464 = vmatprep.subr.bf16.mxu0 %v11652_v25 }
 0x54d   : > { %10472 = vmatprep.mubr.msk.bf16.mxu0 %vm11653_vm5, %v11652_v25 }
 0x556   : > { %v10426_v23 = vpop.f32.mrf.mxu0 }
 0x557   : > { %v2562_v20 = vadd.f32 %v10426_v23, %v12422_v48  ;;  %v8792_v23 = vld [vmem:[%s14390_s5] ss:$0 sm:$0xff] }
 0x558   : > { %v2541_v2 = vpop.f32.mrf.mxu0 }
 0x559   : > { %v2560_v17 = vadd.f32 %v2541_v2, %v12424_v60 }
 0x55a   : > { %v10427_v18 = vpop.f32.mrf.mxu0 }
 0x55b   : > { %v2563_v55 = vadd.f32 %v10427_v18, %v12426_v11 }
 0x55c   : > { %v12495_v26 = vpop.f32.mrf.mxu0 }
 0x566   : > { %v10434_v47 = vpop.f32.mrf.mxu0 }
 0x567   : > { %v2778_v53 = vadd.f32 %v10434_v47, %v2558_v50 }
 0x568   : > { %v2745_v27 = vpop.f32.mrf.mxu0 }
 0x569   : > { %v12497_v22 = vadd.f32 %v2745_v27, %v2556_v15 }
 0x56a   : > { %v10435_v62 = vpop.f32.mrf.mxu0 }
 0x56b   : > { %v2779_v10 = vadd.f32 %v10435_v62, %v2559_v58 }
 0x56c   : > { %v12499_v38 = vpop.f32.mrf.mxu0 }
 0x576   : > { %v10438_v0 = vpop.f32.mrf.mxu0 }
 0x577   : > { %v12501_v59 = vadd.f32 %v10438_v0, %v2562_v20  ;;  %v1453_v0 = vadd.f32 %v12281_v33, %v12277_v28 }
 0x578   : > { %v2761_v48 = vpop.f32.mrf.mxu0 }
 0x579   : > { %v12503_v1 = vadd.f32 %v2761_v48, %v2560_v17  ;;  %v1437_v48 = vadd.f32 %v12279_v46, %v12275_v24 }
 0x57a   : > { %v10439_v60 = vpop.f32.mrf.mxu0 }
 0x57b   : > { %v12505_v4 = vadd.f32 %v10439_v60, %v2563_v55 }
 0x57c   : > { %v12507_v11 = vpop.f32.mrf.mxu0 }
 0x586   : > { %v10124_v6 = vpop.f32.mrf.mxu0 }
 0x588   : > { %v10125_v7 = vpop.f32.mrf.mxu0 }
 0x589   : > { %v10126_v30 = vadd.f32 %v10125_v7, %v10124_v6  ;;  %v1681_v7 = vadd.f32 %v12285_v12, %v1453_v0 }
 0x58a   : > { %v10127_v57 = vpop.f32.mrf.mxu0 }
 0x58c   : > { %v10128_v56 = vpop.f32.mrf.mxu0 }
 0x58d   : > { %v10129_v8 = vadd.f32 %v10128_v56, %v10127_v57  ;;  %v1677_v57 = vadd.f32 %v12283_v29, %v1437_v48 }
 0x58e   : > { %v10130_v9 = vpop.f32.mrf.mxu0 }
 0x58f   : > { %v2898_v34 = vpack.c.bf16 %v10129_v8, %v10126_v30  ;;  %v1897_v30 = vadd.f32 %v12293_v51, %v1677_v57 }
 0x590   : > { %v10131_v39 = vpop.f32.mrf.mxu0 }
 0x591   : > { %10444 = vmatprep.mubr.msk.bf16.mxu1 %vm1297_vm4, %v2898_v34  ;;  %v10132_v37 = vadd.f32 %v10131_v39, %v10130_v9  ;;  %v2117_v28 = vadd.f32 %v12407_v31, %v1897_v30  ;;  %v10925_v30 = vld [vmem:[%s14391_s6 + $0x20] sm:$0xff]  }
 0x592   : > { %v10133_v41 = vpop.f32.mrf.mxu0 }
 0x593   : > { %v2337_v12 = vadd.f32 %v12420_v61, %v2117_v28  ;;  %v10931_v28 = vld [vmem:[%s14392_s7 + $0x50] sm:$0xff]  }
 0x594   : > { %v10134_v42 = vpop.f32.mrf.mxu0 }
 0x595   : > { %v10135_v13 = vadd.f32 %v10134_v42, %v10133_v41  ;;  %v2557_v51 = vadd.f32 %v12490_v19, %v2337_v12  ;;  %v10928_v12 = vld [vmem:[%s14391_s6 + $0x38] sm:$0xff]  }
 0x596   : > { %v10136_v49 = vpop.f32.mrf.mxu0 }
 0x597   : > { %v2899_v63 = vpack.c.bf16 %v10135_v13, %v10132_v37 }
 0x598   : > { %v10137_v5 = vpop.f32.mrf.mxu0 }
 0x599   : > { %10445 = vmatmul.mubr.msk.bf16.vlgmr.msra.gmra.mxu1 %vm1297_vm4, %v2899_v63  ;;  %v10138_v35 = vadd.f32 %v10137_v5, %v10136_v49 }
 0x59a   : > { %v10139_v45 = vpop.f32.mrf.mxu0 }
 0x59c   : > { %v10140_v3 = vpop.f32.mrf.mxu0 }
 0x59d   : > { %v10141_v14 = vadd.f32 %v10140_v3, %v10139_v45 }
 0x59e   : > { %v10142_v40 = vpop.f32.mrf.mxu0 }
 0x59f   : > { %v2900_v21 = vpack.c.bf16 %v10141_v14, %v10138_v35 }
 0x5a0   : > { %v10143_v32 = vpop.f32.mrf.mxu0 }
 0x5a1   : > { %10448 = vmatprep.mubr.msk.bf16.mxu1 %vm1297_vm4, %v2900_v21  ;;  %v10144_v50 = vadd.f32 %v10143_v32, %v10142_v40 }
 0x5a2   : > { %v10145_v54 = vpop.f32.mrf.mxu0 }
 0x5a4   : > { %v10146_v43 = vpop.f32.mrf.mxu0 }
 0x5a5   : > { %v10147_v52 = vadd.f32 %v10146_v43, %v10145_v54  ;;  %v10913_v43 = vld [vmem:[%s14391_s6 + $0x8] sm:$0xff]  }
 0x5a7   : > { %v2901_v15 = vpack.c.bf16 %v10147_v52, %v10144_v50  ;;  %v10914_v50 = vld [vmem:[%s14391_s6] sm:$0xff]   ;;  %v10915_v52 = vld [vmem:[%s14392_s7 + $0x38] sm:$0xff]  }
 0x5a9   : > { %10449 = vmatmul.mubr.msk.bf16.gmra.mxu1 %vm1297_vm4, %v2901_v15  ;;  %v10917_v15 = vld [vmem:[%s14392_s7 + $0x18] sm:$0xff]  }
 0x5aa   : > { %10460 = vmatprep.mubr.msk.bf16.mxu1 %vm11653_vm5, %v11652_v25 }
 0x659   : > { %v10446_v58 = vpop.f32.mrf.mxu1 }
 0x65a   : > { %v2998_v20 = vadd.f32 %v10446_v58, %v2778_v53  ;;  %v10916_v58 = vld [vmem:[%s14392_s7 + $0x30] sm:$0xff]  }
 0x65b   : > { %v2965_v2 = vpop.f32.mrf.mxu1 }
 0x65c   : > { %v3013_v17 = vadd.f32 %v8792_v23, %v2998_v20  ;;  %v10919_v20 = vld [vmem:[%s14392_s7 + $0x10] sm:$0xff]  }
 0x65d   : > { %v10447_v18 = vpop.f32.mrf.mxu1 }
 0x65e   : > { %v2999_v55 = vadd.f32 %v10447_v18, %v2779_v10  ;;  %v3029_v47 = vmul.f32 0.2, %v3013_v17  ;;  %vm3021_vm6 = vcmp.ge.f32.partialorder %v3013_v17, 0.0  ;;  %v1901_v10 = vadd.f32 %v12301_v36, %v1681_v7  ;;  %v10922_v18 = vld [vmem:[%s14392_s7] sm:$0xff]  }
 0x65f   : > { %v2968_v56 = vpop.f32.mrf.mxu1 }
 0x660   : > { %v3014_v27 = vadd.f32 %v8792_v23, %v2999_v55  ;;  %v3037_v60 = vsel %vm3021_vm6, %v3013_v17, %v3029_v47  ;;  %v2121_v8 = vadd.f32 %v12412_v44, %v1901_v10  ;;  %v10920_v17 = vld [vmem:[%s14392_s7 + $0x20] sm:$0xff]   ;;  %v10923_v10 = vld [vmem:[%s14391_s6 + $0x10] sm:$0xff]  }
 0x662   : > { %vm3022_vm7 = vcmp.ge.f32.partialorder %v3014_v27, 0.0  ;;  %v3030_v62 = vmul.f32 0.2, %v3014_v27  ;;  %v2341_v46 = vadd.f32 %v12428_v16, %v2121_v8  ;;  %v10926_v8 = vld [vmem:[%s14391_s6 + $0x28] sm:$0xff]  }
 0x664   : > { %v3038_v6 = vsel %vm3022_vm7, %v3014_v27, %v3030_v62  ;;  %v2561_v36 = vadd.f32 %v12495_v26, %v2341_v46  ;;  %v2996_v26 = vadd.f32 %v2965_v2, %v12497_v22  ;;  %v10921_v2 = vld [vmem:[%s14392_s7 + $0x8] sm:$0xff]  }
 0x665   : > { %v12527_v53 = vpack.c.bf16 %v3038_v6, %v3037_v60  ;;  %v10932_v46 = vld [vmem:[%s14392_s7 + $0x48] sm:$0xff]  }
 0x666   : > { %v2781_v41 = vadd.f32 %v12507_v11, %v2561_v36  ;;  %v3011_v3 = vadd.f32 %v8792_v23, %v2996_v26  ;;  %v10935_v26 = vld [vmem:[%s14392_s7 + $0x70] sm:$0xff]  }
 0x668   : > { %v3027_v40 = vmul.f32 0.2, %v3011_v3  ;;  %vm3019_vm13 = vcmp.ge.f32.partialorder %v3011_v3, 0.0 }
 0x669   : > { %v10450_v9 = vpop.f32.mrf.mxu1 }
 0x66a   : > { %v3002_v24 = vadd.f32 %v10450_v9, %v12501_v59  ;;  %v2777_v59 = vadd.f32 %v12499_v38, %v2557_v51  ;;  %v3035_v32 = vsel %vm3019_vm13, %v3011_v3, %v3027_v40  ;;  %v10930_v9 = vld [vmem:[%s14392_s7 + $0x58] sm:$0xff]   ;;  %v10941_v40 = vld [vmem:[%s14392_s7 + $0x80] sm:$0xff]  }
 0x66b   : > { %v2981_v33 = vpop.f32.mrf.mxu1 }
 0x66c   : > { %v3017_v34 = vadd.f32 %v8792_v23, %v3002_v24  ;;  %v3000_v29 = vadd.f32 %v2981_v33, %v12503_v1  ;;  %v2997_v13 = vadd.f32 %v2968_v56, %v2777_v59  ;;  %v10924_v56 = vld [vmem:[%s14391_s6 + $0x18] sm:$0xff]   ;;  %v10927_v24 = vld [vmem:[%s14391_s6 + $0x30] sm:$0xff]   ;;  %v10933_v33 = vld [vmem:[%s14392_s7 + $0x40] sm:$0xff]  }
 0x66d   : > { %v10451_v39 = vpop.f32.mrf.mxu1 }
 0x66e   : > { %v3003_v44 = vadd.f32 %v10451_v39, %v12505_v4  ;;  %v3033_v42 = vmul.f32 0.2, %v3017_v34  ;;  %v3015_v16 = vadd.f32 %v8792_v23, %v3000_v29  ;;  %vm3025_vm8 = vcmp.ge.f32.partialorder %v3017_v34, 0.0 }
 0x66f   : > { %v2984_v31 = vpop.f32.mrf.mxu1  ;;  %v3012_v38 = vadd.f32 %v8792_v23, %v2997_v13  ;;  %v10934_v13 = vld [vmem:[%s14392_s7 + $0x78] sm:$0xff]  }
 0x670   : > { %v3018_v37 = vadd.f32 %v8792_v23, %v3003_v44  ;;  %v3001_v61 = vadd.f32 %v2984_v31, %v2781_v41  ;;  %v3041_v63 = vsel %vm3025_vm8, %v3017_v34, %v3033_v42  ;;  %v3031_v19 = vmul.f32 0.2, %v3015_v16  ;;  %v10929_v34 = vld [vmem:[%s14391_s6 + $0x40] sm:$0xff]  }
 0x671   : > { %vm3023_vm10 = vcmp.ge.f32.partialorder %v3015_v16, 0.0  ;;  %v3028_v14 = vmul.f32 0.2, %v3012_v38  ;;  %vm3020_vm12 = vcmp.ge.f32.partialorder %v3012_v38, 0.0 }
 0x672   : > { %vm3026_vm9 = vcmp.ge.f32.partialorder %v3018_v37, 0.0  ;;  %v3034_v1 = vmul.f32 0.2, %v3018_v37  ;;  %v3016_v49 = vadd.f32 %v8792_v23, %v3001_v61  ;;  %v3039_v35 = vsel %vm3023_vm10, %v3015_v16, %v3031_v19  ;;  %v10918_v23 = vld [vmem:[%s14392_s7 + $0x28] sm:$0xff]  }
 0x673   : > { %v3036_v21 = vsel %vm3020_vm12, %v3012_v38, %v3028_v14  ;;  %v10938_v38 = vld [vmem:[%s14392_s7 + $0x98] sm:$0xff]   ;;  %vm8458_vm10 = vcmask 16384  }
 0x674   : > { %v3042_v5 = vsel %vm3026_vm9, %v3018_v37, %v3034_v1  ;;  %vm3024_vm11 = vcmp.ge.f32.partialorder %v3016_v49, 0.0  ;;  %v3032_v11 = vmul.f32 0.2, %v3016_v49  ;;  %v12560_v54 = vpack.c.bf16 %v3036_v21, %v3035_v32 }
 0x675   : > { %v12544_v4 = vpack.c.bf16 %v3042_v5, %v3041_v63  ;;  %v10936_v63 = vld [vmem:[%s14392_s7 + $0x68] sm:$0xff]   ;;  %v10937_v5 = vld [vmem:[%s14392_s7 + $0x60] sm:$0xff]  }
 0x676   : > { %v3040_v45 = vsel %vm3024_vm11, %v3016_v49, %v3032_v11 }
 0x677   : > { %10453 = vmatpush3.bf16.msra.mxu1 %v12544_v4  ;;  %10465 = vmatpush3.bf16.msra.mxu0 %v12544_v4  ;;  %v12550_v22 = vpack.c.bf16 %v3040_v45, %v3039_v35  ;;  %v10939_v35 = vld [vmem:[%s14392_s7 + $0x90] sm:$0xff]  }
 0x678   : > { %10454 = vmatprep.subr.bf16.mxu1 %v11652_v25  ;;  %10466 = vmatprep.subr.bf16.mxu0 %v11652_v25 }
 0x67b   : > { %10455 = vmatpush3.bf16.msra.mxu1 %v12550_v22  ;;  %10467 = vmatpush3.bf16.msra.mxu0 %v12550_v22 }
 0x67c   : > { %10456 = vmatprep.subr.bf16.mxu1 %v11652_v25  ;;  %10468 = vmatprep.subr.bf16.mxu0 %v11652_v25 }
 0x67f   : > { %10457 = vmatpush3.bf16.msra.mxu1 %v12527_v53  ;;  %10469 = vmatpush3.bf16.msra.mxu0 %v12527_v53 }
 0x680   : > { %10458 = vmatprep.subr.bf16.mxu1 %v11652_v25  ;;  %10470 = vmatprep.subr.bf16.mxu0 %v11652_v25 }
 0x683   : > { %10459 = vmatpush3.bf16.msra.mxu1 %v12560_v54  ;;  %10471 = vmatpush3.bf16.msra.mxu0 %v12560_v54 }
 0x684   : > { %10476 = vmatprep.subr.bf16.mxu1 %v11652_v25  ;;  %10488 = vmatprep.subr.bf16.mxu0 %v11652_v25 }
 0x686   : > { %10473 = vmatmul.mubr.msk.bf16.vlgmr.msra.gmra.mxu0 %vm3054_vm14, %v10913_v43  ;;  %10461 = vmatmul.mubr.msk.bf16.vlgmr.msra.gmra.mxu1 %vm3054_vm14, %v10914_v50 }
 0x687   : > { %10477 = vmatpush3.bf16.msra.mxu1 %v10915_v52  ;;  %10489 = vmatpush3.bf16.msra.mxu0 %v10917_v15  ;;  %v10943_v52 = vld [vmem:[%s14392_s7 + $0xb0] sm:$0xff]   ;;  %v10944_v15 = vld [vmem:[%s14392_s7 + $0xa8] sm:$0xff]  }
 0x688   : > { %10478 = vmatprep.subr.bf16.mxu1 %v11652_v25  ;;  %10490 = vmatprep.subr.bf16.mxu0 %v11652_v25 }
 0x689   : > { %10484 = vmatprep.mubr.msk.bf16.mxu1 %vm11653_vm5, %v11652_v25  ;;  %10496 = vmatprep.mubr.msk.bf16.mxu0 %vm11653_vm5, %v11652_v25 }
 0x68b   : > { %10479 = vmatpush3.bf16.msra.mxu1 %v10916_v58  ;;  %10491 = vmatpush3.bf16.msra.mxu0 %v10919_v20 }
 0x68c   : > { %10480 = vmatprep.subr.bf16.mxu1 %v11652_v25  ;;  %10492 = vmatprep.subr.bf16.mxu0 %v11652_v25 }
 0x68f   : > { %10481 = vmatpush3.bf16.msra.mxu1 %v10918_v23  ;;  %10493 = vmatpush3.bf16.msra.mxu0 %v10921_v2  ;;  %v10945_v23 = vld [vmem:[%s14392_s7 + $0xa0] sm:$0xff]  }
 0x690   : > { %10482 = vmatprep.subr.bf16.mxu1 %v11652_v25  ;;  %10494 = vmatprep.subr.bf16.mxu0 %v11652_v25 }
 0x693   : > { %10483 = vmatpush3.bf16.msra.mxu1 %v10920_v17  ;;  %10495 = vmatpush3.bf16.msra.mxu0 %v10922_v18  ;;  %v10946_v17 = vld [vmem:[%s14392_s7 + $0xd8] sm:$0xff]  }
 0x694   : > { %10500 = vmatprep.subr.bf16.mxu1 %v11652_v25  ;;  %10512 = vmatprep.subr.bf16.mxu0 %v11652_v25 }
 0x746   : > { %v3153_v55 = vpop.f32.mrf.mxu0  ;;  %v3092_v47 = vpop.f32.mrf.mxu1 }
 0x748   : > { %v10474_v27 = vpop.f32.mrf.mxu0  ;;  %v10462_v62 = vpop.f32.mrf.mxu1 }
 0x749   : > { %v10948_v27 = vld [vmem:[%s14392_s7 + $0xc8] sm:$0xff]  }
 0x74a   : > { %v3156_v0 = vpop.f32.mrf.mxu0  ;;  %v3095_v48 = vpop.f32.mrf.mxu1 }
 0x74b   : > { %v3160_v60 = vpack.c.bf16 %v3156_v0, %v3153_v55  ;;  %v3099_v6 = vpack.c.bf16 %v3095_v48, %v3092_v47  ;;  %v10947_v47 = vld [vmem:[%s14392_s7 + $0xd0] sm:$0xff]   ;;  %v10949_v0 = vld [vmem:[%s14392_s7 + $0xc0] sm:$0xff]  }
 0x74c   : > { %v10475_v7 = vpop.f32.mrf.mxu0  ;;  %v10463_v57 = vpop.f32.mrf.mxu1 }
 0x74d   : > { %10485 = vmatmul.mubr.msk.bf16.vlgmr.msra.gmra.mxu1 %vm3054_vm14, %v3160_v60  ;;  %10497 = vmatmul.mubr.msk.bf16.vlgmr.msra.gmra.mxu0 %vm3054_vm14, %v3099_v6  ;;  %v10950_v6 = vld [vmem:[%s14392_s7 + $0xf8] sm:$0xff]  }
 0x74e   : > { %10501 = vmatpush3.bf16.msra.mxu1 %v12544_v4  ;;  %10508 = vmatprep.mubr.msk.bf16.mxu1 %vm11653_vm5, %v11652_v25 }
 0x74f   : > { %10502 = vmatprep.subr.bf16.mxu1 %v11652_v25  ;;  %10520 = vmatprep.mubr.msk.bf16.mxu0 %vm11653_vm5, %v11652_v25 }
 0x750   : > { %10513 = vmatpush3.bf16.msra.mxu0 %v10930_v9 }
 0x751   : > { %10514 = vmatprep.subr.bf16.mxu0 %v11652_v25 }
 0x752   : > { %10503 = vmatpush3.bf16.msra.mxu1 %v12550_v22 }
 0x753   : > { %10504 = vmatprep.subr.bf16.mxu1 %v11652_v25 }
 0x754   : > { %10515 = vmatpush3.bf16.msra.mxu0 %v10931_v28 }
 0x755   : > { %10516 = vmatprep.subr.bf16.mxu0 %v11652_v25 }
 0x756   : > { %10505 = vmatpush3.bf16.msra.mxu1 %v12527_v53 }
 0x757   : > { %10506 = vmatprep.subr.bf16.mxu1 %v11652_v25 }
 0x758   : > { %10517 = vmatpush3.bf16.msra.mxu0 %v10932_v46 }
 0x759   : > { %10518 = vmatprep.subr.bf16.mxu0 %v11652_v25 }
 0x75a   : > { %10507 = vmatpush3.bf16.msra.mxu1 %v12560_v54 }
 0x75b   : > { %10524 = vmatprep.subr.bf16.mxu1 %v11652_v25 }
 0x75c   : > { %10519 = vmatpush3.bf16.msra.mxu0 %v10933_v33 }
 0x75d   : > { %10509 = vmatmul.mubr.msk.bf16.vlgmr.msra.gmra.mxu1 %vm3054_vm14, %v10923_v10  ;;  %10536 = vmatprep.subr.bf16.mxu0 %v11652_v25  ;;  %v10951_v10 = vld [vmem:[%s14392_s7 + $0xf0] sm:$0xff]  }
 0x75e   : > { %10525 = vmatpush3.bf16.msra.mxu1 %v12544_v4  ;;  %10532 = vmatprep.mubr.msk.bf16.mxu1 %vm11653_vm5, %v11652_v25 }
 0x75f   : > { %10526 = vmatprep.subr.bf16.mxu1 %v11652_v25 }
 0x762   : > { %10527 = vmatpush3.bf16.msra.mxu1 %v12550_v22 }
 0x763   : > { %10528 = vmatprep.subr.bf16.mxu1 %v11652_v25 }
 0x766   : > { %10529 = vmatpush3.bf16.msra.mxu1 %v12527_v53 }
 0x767   : > { %10530 = vmatprep.subr.bf16.mxu1 %v11652_v25 }
 0x76a   : > { %10531 = vmatpush3.bf16.msra.mxu1 %v12560_v54 }
 0x76b   : > { %10548 = vmatprep.subr.bf16.mxu1 %v11652_v25 }
 0x76d   : > { %10533 = vmatmul.mubr.msk.bf16.vlgmr.msra.gmra.mxu1 %vm3054_vm14, %v10924_v56  ;;  %v10952_v56 = vld [vmem:[%s14392_s7 + $0xe8] sm:$0xff]  }
 0x76e   : > { %10549 = vmatpush3.bf16.msra.mxu1 %v12544_v4  ;;  %10556 = vmatprep.mubr.msk.bf16.mxu1 %vm11653_vm5, %v11652_v25 }
 0x76f   : > { %10550 = vmatprep.subr.bf16.mxu1 %v11652_v25 }
 0x772   : > { %10551 = vmatpush3.bf16.msra.mxu1 %v12550_v22 }
 0x773   : > { %10552 = vmatprep.subr.bf16.mxu1 %v11652_v25 }
 0x776   : > { %10553 = vmatpush3.bf16.msra.mxu1 %v12527_v53 }
 0x777   : > { %10554 = vmatprep.subr.bf16.mxu1 %v11652_v25 }
 0x77a   : > { %10555 = vmatpush3.bf16.msra.mxu1 %v12560_v54 }
 0x77b   : > { %10572 = vmatprep.subr.bf16.mxu1 %v11652_v25 }
 0x77d   : > { %10557 = vmatmul.mubr.msk.bf16.vlgmr.msra.gmra.mxu1 %vm3054_vm14, %v10925_v30 }
 0x77e   : > { %10573 = vmatpush3.bf16.msra.mxu1 %v12544_v4  ;;  %10580 = vmatprep.mubr.msk.bf16.mxu1 %vm11653_vm5, %v11652_v25 }
 0x77f   : > { %10574 = vmatprep.subr.bf16.mxu1 %v11652_v25 }
 0x782   : > { %10575 = vmatpush3.bf16.msra.mxu1 %v12550_v22 }
 0x783   : > { %10576 = vmatprep.subr.bf16.mxu1 %v11652_v25 }
 0x786   : > { %10577 = vmatpush3.bf16.msra.mxu1 %v12527_v53 }
 0x787   : > { %10578 = vmatprep.subr.bf16.mxu1 %v11652_v25 }
 0x78a   : > { %10579 = vmatpush3.bf16.msra.mxu1 %v12560_v54 }
 0x78b   : > { %10596 = vmatprep.subr.bf16.mxu1 %v11652_v25 }
 0x78d   : > { %10581 = vmatmul.mubr.msk.bf16.vlgmr.msra.gmra.mxu1 %vm3054_vm14, %v10926_v8  ;;  %v10953_v8 = vld [vmem:[%s14392_s7 + $0xe0] sm:$0xff]  }
 0x78e   : > { %10597 = vmatpush3.bf16.msra.mxu1 %v12544_v4  ;;  %10604 = vmatprep.mubr.msk.bf16.mxu1 %vm11653_vm5, %v11652_v25 }
 0x78f   : > { %10598 = vmatprep.subr.bf16.mxu1 %v11652_v25 }
 0x792   : > { %10599 = vmatpush3.bf16.msra.mxu1 %v12550_v22 }
 0x793   : > { %10600 = vmatprep.subr.bf16.mxu1 %v11652_v25 }
 0x796   : > { %10601 = vmatpush3.bf16.msra.mxu1 %v12527_v53 }
 0x797   : > { %10602 = vmatprep.subr.bf16.mxu1 %v11652_v25 }
 0x79a   : > { %10603 = vmatpush3.bf16.msra.mxu1 %v12560_v54 }
 0x79b   : > { %10620 = vmatprep.subr.bf16.mxu1 %v11652_v25 }
 0x79d   : > { %10605 = vmatmul.mubr.msk.bf16.vlgmr.msra.gmra.mxu1 %vm3054_vm14, %v10927_v24  ;;  %v10954_v24 = vld [vmem:[%s14392_s7 + $0x118] sm:$0xff]  }
 0x79e   : > { %10621 = vmatpush3.bf16.msra.mxu1 %v12544_v4  ;;  %10628 = vmatprep.mubr.msk.bf16.mxu1 %vm11653_vm5, %v11652_v25 }
 0x79f   : > { %10622 = vmatprep.subr.bf16.mxu1 %v11652_v25 }
 0x7a2   : > { %10623 = vmatpush3.bf16.msra.mxu1 %v12550_v22 }
 0x7a3   : > { %10624 = vmatprep.subr.bf16.mxu1 %v11652_v25 }
 0x7a6   : > { %10625 = vmatpush3.bf16.msra.mxu1 %v12527_v53 }
 0x7a7   : > { %10626 = vmatprep.subr.bf16.mxu1 %v11652_v25 }
 0x7aa   : > { %10627 = vmatpush3.bf16.msra.mxu1 %v12560_v54 }
 0x7ab   : > { %10644 = vmatprep.subr.bf16.mxu1 %v11652_v25 }
 0x7ad   : > { %10629 = vmatmul.mubr.msk.bf16.vlgmr.msra.gmra.mxu1 %vm3054_vm14, %v10928_v12  ;;  %v10955_v12 = vld [vmem:[%s14392_s7 + $0x110] sm:$0xff]  }
 0x7ae   : > { %10645 = vmatpush3.bf16.msra.mxu1 %v12544_v4  ;;  %10652 = vmatprep.mubr.msk.bf16.mxu1 %vm11653_vm5, %v11652_v25 }
 0x7af   : > { %10646 = vmatprep.subr.bf16.mxu1 %v11652_v25 }
 0x7b2   : > { %10647 = vmatpush3.bf16.msra.mxu1 %v12550_v22  ;;  %v10940_v22 = vld [vmem:[%s14392_s7 + $0x88] sm:$0xff]  }
 0x7b3   : > { %10648 = vmatprep.subr.bf16.mxu1 %v11652_v25 }
 0x7b6   : > { %10649 = vmatpush3.bf16.msra.mxu1 %v12527_v53 }
 0x7b7   : > { %10650 = vmatprep.subr.bf16.mxu1 %v11652_v25 }
 0x7ba   : > { %10651 = vmatpush3.bf16.msra.mxu1 %v12560_v54  ;;  %v10942_v54 = vld [vmem:[%s14392_s7 + $0xb8] sm:$0xff]  }
 0x7bb   : > { %10668 = vmatprep.subr.bf16.mxu1 %v11652_v25 }
 0x7bd   : > { %10653 = vmatmul.mubr.msk.bf16.vlgmr.msra.gmra.mxu1 %vm3054_vm14, %v10929_v34  ;;  %v10956_v34 = vld [vmem:[%s14392_s7 + $0x108] sm:$0xff]  }
 0x7be   : > { %10670 = vmatprep.mubr.msk.bf16.mxu1 %vm11653_vm5, %v11652_v25 }
 0x80d   : > { %v3231_v29 = vpop.f32.mrf.mxu1  ;;  %v3299_v36 = vpop.f32.mrf.mxu0 }
 0x80e   : > { %v12730_v39 = vadd.f32 %v3299_v36, %v3231_v29  ;;  %v10957_v36 = vld [vmem:[%s14392_s7 + $0x100] sm:$0xff]  }
 0x80f   : > { %v10486_v53 = vpop.f32.mrf.mxu1  ;;  %v10498_v51 = vpop.f32.mrf.mxu0 }
 0x811   : > { %v3234_v44 = vpop.f32.mrf.mxu1  ;;  %v3302_v41 = vpop.f32.mrf.mxu0 }
 0x812   : > { %v12732_v31 = vadd.f32 %v3302_v41, %v3234_v44 }
 0x813   : > { %v10487_v59 = vpop.f32.mrf.mxu1  ;;  %v10499_v42 = vpop.f32.mrf.mxu0 }
 0x814   : > { %v10961_v59 = vld [vmem:[%s14395_s10 + $0xf0] ss:$8 sps:$4 sm:$0xff]   ;;  %v10963_v42 = vld [vmem:[%s14395_s10 + $0xf4] ss:$8 sps:$4 sm:$0xff]  }
 0x81d   : > { %v3351_v16 = vpop.f32.mrf.mxu1 }
 0x81f   : > { %v10510_v37 = vpop.f32.mrf.mxu1 }
 0x820   : > { %v10967_v37 = vld [vmem:[%s14395_s10 + $0xe0] ss:$8 sps:$4 sm:$0xff]  }
 0x821   : > { %v3354_v61 = vpop.f32.mrf.mxu1 }
 0x822   : > { %v3358_v1 = vpack.c.bf16 %v3354_v61, %v3351_v16  ;;  %v10969_v16 = vld [vmem:[%s14395_s10 + $0xe4] ss:$8 sps:$4 sm:$0xff]   ;;  %v10975_v61 = vld [vmem:[%s14395_s10 + $0xd4] ss:$8 sps:$4 sm:$0xff]  }
 0x823   : > { %v10511_v49 = vpop.f32.mrf.mxu1 }
 0x824   : > { %10521 = vmatmul.mubr.msk.bf16.vlgmr.msra.gmra.mxu0 %vm3054_vm14, %v3358_v1  ;;  %v10973_v49 = vld [vmem:[%s14395_s10 + $0xd0] ss:$8 sps:$4 sm:$0xff]  }
 0x825   : > { %10537 = vmatpush3.bf16.msra.mxu0 %v10934_v13  ;;  %10544 = vmatprep.mubr.msk.bf16.mxu0 %vm11653_vm5, %v11652_v25 }
 0x826   : > { %10538 = vmatprep.subr.bf16.mxu0 %v11652_v25 }
 0x829   : > { %10539 = vmatpush3.bf16.msra.mxu0 %v10935_v26 }
 0x82a   : > { %10540 = vmatprep.subr.bf16.mxu0 %v11652_v25 }
 0x82d   : > { %v3483_v19 = vpop.f32.mrf.mxu1  ;;  %10541 = vmatpush3.bf16.msra.mxu0 %v10936_v63  ;;  %v10981_v63 = vld [vmem:[%s14395_s10 + $0xc4] ss:$8 sps:$4 sm:$0xff]  }
 0x82e   : > { %10542 = vmatprep.subr.bf16.mxu0 %v11652_v25 }
 0x82f   : > { %v10534_v4 = vpop.f32.mrf.mxu1 }
 0x830   : > { %v10979_v4 = vld [vmem:[%s14395_s10 + $0xc0] ss:$8 sps:$4 sm:$0xff]  }
 0x831   : > { %v3486_v11 = vpop.f32.mrf.mxu1  ;;  %10543 = vmatpush3.bf16.msra.mxu0 %v10937_v5 }
 0x832   : > { %v3490_v45 = vpack.c.bf16 %v3486_v11, %v3483_v19  ;;  %10560 = vmatprep.subr.bf16.mxu0 %v11652_v25  ;;  %v10987_v11 = vld [vmem:[%s14395_s10 + $0xb4] ss:$8 sps:$4 sm:$0xff]  }
 0x833   : > { %v10535_v3 = vpop.f32.mrf.mxu1 }
 0x834   : > { %10545 = vmatmul.mubr.msk.bf16.vlgmr.msra.gmra.mxu0 %vm3054_vm14, %v3490_v45  ;;  %v10991_v45 = vld [vmem:[%s14395_s10 + $0xa0] ss:$8 sps:$4 sm:$0xff]  }
 0x835   : > { %10561 = vmatpush3.bf16.msra.mxu0 %v10938_v38  ;;  %10568 = vmatprep.mubr.msk.bf16.mxu0 %vm11653_vm5, %v11652_v25  ;;  %v10985_v38 = vld [vmem:[%s14395_s10 + $0xb0] ss:$8 sps:$4 sm:$0xff]  }
 0x836   : > { %10562 = vmatprep.subr.bf16.mxu0 %v11652_v25 }
 0x839   : > { %10563 = vmatpush3.bf16.msra.mxu0 %v10939_v35 }
 0x83a   : > { %10564 = vmatprep.subr.bf16.mxu0 %v11652_v25 }
 0x83d   : > { %v3615_v14 = vpop.f32.mrf.mxu1  ;;  %10565 = vmatpush3.bf16.msra.mxu0 %v10940_v22 }
 0x83e   : > { %10566 = vmatprep.subr.bf16.mxu0 %v11652_v25 }
 0x83f   : > { %v10558_v21 = vpop.f32.mrf.mxu1 }
 0x841   : > { %v3618_v32 = vpop.f32.mrf.mxu1  ;;  %10567 = vmatpush3.bf16.msra.mxu0 %v10941_v40 }
 0x842   : > { %v3622_v43 = vpack.c.bf16 %v3618_v32, %v3615_v14  ;;  %10584 = vmatprep.subr.bf16.mxu0 %v11652_v25 }
 0x843   : > { %v10559_v50 = vpop.f32.mrf.mxu1 }
 0x844   : > { %10569 = vmatmul.mubr.msk.bf16.vlgmr.msra.gmra.mxu0 %vm3054_vm14, %v3622_v43 }
 0x845   : > { %10585 = vmatpush3.bf16.msra.mxu0 %v10942_v54  ;;  %10592 = vmatprep.mubr.msk.bf16.mxu0 %vm11653_vm5, %v11652_v25 }
 0x846   : > { %10586 = vmatprep.subr.bf16.mxu0 %v11652_v25 }
 0x849   : > { %10587 = vmatpush3.bf16.msra.mxu0 %v10943_v52 }
 0x84a   : > { %10588 = vmatprep.subr.bf16.mxu0 %v11652_v25 }
 0x84d   : > { %v3747_v58 = vpop.f32.mrf.mxu1  ;;  %10589 = vmatpush3.bf16.msra.mxu0 %v10944_v15 }
 0x84e   : > { %10590 = vmatprep.subr.bf16.mxu0 %v11652_v25 }
 0x84f   : > { %v10582_v20 = vpop.f32.mrf.mxu1 }
 0x851   : > { %v3750_v2 = vpop.f32.mrf.mxu1  ;;  %10591 = vmatpush3.bf16.msra.mxu0 %v10945_v23 }
 0x852   : > { %v3754_v18 = vpack.c.bf16 %v3750_v2, %v3747_v58  ;;  %10608 = vmatprep.subr.bf16.mxu0 %v11652_v25 }
 0x853   : > { %v10583_v55 = vpop.f32.mrf.mxu1 }
 0x854   : > { %10593 = vmatmul.mubr.msk.bf16.vlgmr.msra.gmra.mxu0 %vm3054_vm14, %v3754_v18 }
 0x855   : > { %10609 = vmatpush3.bf16.msra.mxu0 %v10946_v17  ;;  %10616 = vmatprep.mubr.msk.bf16.mxu0 %vm11653_vm5, %v11652_v25 }
 0x856   : > { %10610 = vmatprep.subr.bf16.mxu0 %v11652_v25 }
 0x859   : > { %10611 = vmatpush3.bf16.msra.mxu0 %v10947_v47 }
 0x85a   : > { %10612 = vmatprep.subr.bf16.mxu0 %v11652_v25 }
 0x85d   : > { %v3879_v62 = vpop.f32.mrf.mxu1  ;;  %10613 = vmatpush3.bf16.msra.mxu0 %v10948_v27 }
 0x85e   : > { %10614 = vmatprep.subr.bf16.mxu0 %v11652_v25 }
 0x85f   : > { %v10606_v48 = vpop.f32.mrf.mxu1 }
 0x861   : > { %v3882_v60 = vpop.f32.mrf.mxu1  ;;  %10615 = vmatpush3.bf16.msra.mxu0 %v10949_v0 }
 0x862   : > { %v3886_v7 = vpack.c.bf16 %v3882_v60, %v3879_v62  ;;  %10632 = vmatprep.subr.bf16.mxu0 %v11652_v25 }
 0x863   : > { %v10607_v57 = vpop.f32.mrf.mxu1 }
 0x864   : > { %10617 = vmatmul.mubr.msk.bf16.vlgmr.msra.gmra.mxu0 %vm3054_vm14, %v3886_v7 }
 0x865   : > { %10633 = vmatpush3.bf16.msra.mxu0 %v10950_v6  ;;  %10640 = vmatprep.mubr.msk.bf16.mxu0 %vm11653_vm5, %v11652_v25 }
 0x866   : > { %10634 = vmatprep.subr.bf16.mxu0 %v11652_v25 }
 0x869   : > { %10635 = vmatpush3.bf16.msra.mxu0 %v10951_v10 }
 0x86a   : > { %10636 = vmatprep.subr.bf16.mxu0 %v11652_v25 }
 0x86d   : > { %v4011_v30 = vpop.f32.mrf.mxu1  ;;  %10637 = vmatpush3.bf16.msra.mxu0 %v10952_v56  ;;  %v8936_v56 = vld [vmem:[%s14393_s8] ss:$0 sm:$0xff] }
 0x86e   : > { %10638 = vmatprep.subr.bf16.mxu0 %v11652_v25 }
 0x86f   : > { %v10630_v9 = vpop.f32.mrf.mxu1 }
 0x871   : > { %v4014_v28 = vpop.f32.mrf.mxu1  ;;  %10639 = vmatpush3.bf16.msra.mxu0 %v10953_v8 }
 0x872   : > { %v4018_v46 = vpack.c.bf16 %v4014_v28, %v4011_v30  ;;  %10656 = vmatprep.subr.bf16.mxu0 %v11652_v25 }
 0x873   : > { %v10631_v33 = vpop.f32.mrf.mxu1 }
 0x874   : > { %10641 = vmatmul.mubr.msk.bf16.vlgmr.msra.gmra.mxu0 %vm3054_vm14, %v4018_v46 }
 0x875   : > { %10657 = vmatpush3.bf16.msra.mxu0 %v10954_v24  ;;  %10664 = vmatprep.mubr.msk.bf16.mxu0 %vm11653_vm5, %v11652_v25 }
 0x876   : > { %10658 = vmatprep.subr.bf16.mxu0 %v11652_v25 }
 0x879   : > { %10659 = vmatpush3.bf16.msra.mxu0 %v10955_v12 }
 0x87a   : > { %10660 = vmatprep.subr.bf16.mxu0 %v11652_v25 }
 0x87d   : > { %v4143_v29 = vpop.f32.mrf.mxu1  ;;  %10661 = vmatpush3.bf16.msra.mxu0 %v10956_v34 }
 0x87e   : > { %10662 = vmatprep.subr.bf16.mxu0 %v11652_v25 }
 0x87f   : > { %v10654_v53 = vpop.f32.mrf.mxu1 }
 0x881   : > { %v4146_v51 = vpop.f32.mrf.mxu1  ;;  %10663 = vmatpush3.bf16.msra.mxu0 %v10957_v36 }
 0x882   : > { %v4150_v44 = vpack.c.bf16 %v4146_v51, %v4143_v29  ;;  %4451 = vmatprep.subr.bf16.mxu0 %v10963_v42  ;;  %v8938_v42 = vld [vmem:[%s14394_s9 + $0x2] sm:$0x3] }
 0x883   : > { %v10655_v41 = vpop.f32.mrf.mxu1 }
 0x884   : > { %10665 = vmatmul.mubr.msk.bf16.vlgmr.msra.gmra.mxu0 %vm3054_vm14, %v4150_v44  ;;  %v4246_v41 = vld [vmem:[%s14394_s9] sm:$0x3] }
 0x885   : > { %4452 = vmatpush1.bf16.msra.mxu0 %v10961_v59  ;;  %v10960_v59 = vld [vmem:[%s14395_s10 + $0x74] ss:$8 sps:$4 sm:$0xff]  }
 0x886   : > { %4453 = vmatprep.subr.bf16.mxu0 %v10969_v16  ;;  %v10958_v16 = vld [vmem:[%s14395_s10 + $0x70] ss:$8 sps:$4 sm:$0xff]  }
 0x889   : > { %4454 = vmatpush1.bf16.msra.mxu0 %v10967_v37  ;;  %v10966_v37 = vld [vmem:[%s14395_s10 + $0x64] ss:$8 sps:$4 sm:$0xff]  }
 0x88a   : > { %4455 = vmatprep.subr.bf16.mxu0 %v10975_v61  ;;  %v10964_v61 = vld [vmem:[%s14395_s10 + $0x60] ss:$8 sps:$4 sm:$0xff]  }
 0x88d   : > { %4456 = vmatpush1.bf16.msra.mxu0 %v10973_v49  ;;  %v10978_v49 = vld [vmem:[%s14395_s10 + $0x44] ss:$8 sps:$4 sm:$0xff]  }
 0x88e   : > { %4457 = vmatprep.subr.bf16.mxu0 %v10981_v63  ;;  %v10984_v63 = vld [vmem:[%s14395_s10 + $0x34] ss:$8 sps:$4 sm:$0xff]  }
 0x891   : > { %4458 = vmatpush1.bf16.msra.mxu0 %v10979_v4  ;;  %v10988_v4 = vld [vmem:[%s14395_s10 + $0x20] ss:$8 sps:$4 sm:$0xff]  }
 0x892   : > { %4459 = vmatprep.subr.bf16.mxu0 %v10987_v11  ;;  %v10994_v11 = vld [vmem:[%s14395_s10 + $0x10] ss:$8 sps:$4 sm:$0xff]  }
 0x895   : > { %4460 = vmatpush1.bf16.msra.mxu0 %v10985_v38  ;;  %v11002_v38 = vld [vmem:[%s14395_s10 + $0x4] ss:$8 sps:$4 sm:$0xff]  }
 0x8e4   : > { %v3429_v13 = vpop.f32.mrf.mxu0 }
 0x8e5   : > { %v3436_v1 = vadd.f32 %v3429_v13, %v12730_v39  ;;  %v10972_v13 = vld [vmem:[%s14395_s10 + $0x54] ss:$8 sps:$4 sm:$0xff]  }
 0x8e6   : > { %v10522_v26 = vpop.f32.mrf.mxu0 }
 0x8e7   : > { %v10976_v26 = vld [vmem:[%s14395_s10 + $0x40] ss:$8 sps:$4 sm:$0xff]  }
 0x8e8   : > { %v3432_v19 = vpop.f32.mrf.mxu0 }
 0x8e9   : > { %v3437_v5 = vadd.f32 %v3432_v19, %v12732_v31  ;;  %v10993_v31 = vld [vmem:[%s14395_s10 + $0xa4] ss:$8 sps:$4 sm:$0xff]   ;;  %v10982_v19 = vld [vmem:[%s14395_s10 + $0x30] ss:$8 sps:$4 sm:$0xff]  }
 0x8ea   : > { %v10523_v39 = vpop.f32.mrf.mxu0  ;;  %4461 = vmatprep.subr.bf16.mxu0 %v10993_v31  ;;  %v11000_v31 = vld [vmem:[%s14395_s10] ss:$8 sps:$4 sm:$0xff]  }
 0x8eb   : > { %4462 = vmatpush1.bf16.msra.mxu0 %v10991_v45  ;;  %v10996_v39 = vld [vmem:[%s14395_s10 + $0x14] ss:$8 sps:$4 sm:$0xff]  }
 0x8ec   : > { %v10999_v45 = vld [vmem:[%s14395_s10 + $0x94] ss:$8 sps:$4 sm:$0xff]  }
 0x8ed   : > { %4463 = vmatprep.subr.bf16.mxu0 %v10999_v45 }
 0x8f4   : > { %v3561_v3 = vpop.f32.mrf.mxu0 }
 0x8f5   : > { %v3568_v35 = vadd.f32 %v3561_v3, %v3436_v1  ;;  %v10970_v1 = vld [vmem:[%s14395_s10 + $0x50] ss:$8 sps:$4 sm:$0xff]  }
 0x8f6   : > { %v10546_v22 = vpop.f32.mrf.mxu0  ;;  %v10997_v3 = vld [vmem:[%s14395_s10 + $0x90] ss:$8 sps:$4 sm:$0xff]  }
 0x8f7   : > { %4464 = vmatpush1.bf16.msra.mxu0 %v10997_v3  ;;  %v11005_v22 = vld [vmem:[%s14395_s10 + $0x84] ss:$8 sps:$4 sm:$0xff]  }
 0x8f8   : > { %v3564_v14 = vpop.f32.mrf.mxu0  ;;  %4465 = vmatprep.subr.bf16.mxu0 %v11005_v22 }
 0x8f9   : > { %v3569_v40 = vadd.f32 %v3564_v14, %v3437_v5  ;;  %v10990_v5 = vld [vmem:[%s14395_s10 + $0x24] ss:$8 sps:$4 sm:$0xff]   ;;  %v11003_v14 = vld [vmem:[%s14395_s10 + $0x80] ss:$8 sps:$4 sm:$0xff]  }
 0x8fa   : > { %v10547_v21 = vpop.f32.mrf.mxu0 }
 0x8fb   : > { %4466 = vmatpush1.bf16.msra.mxu0 %v11003_v14 }
 0x8fc   : > { %10680 = vmatprep.subr.bf16.mxu0 %v11652_v25 }
 0x904   : > { %v3693_v32 = vpop.f32.mrf.mxu0 }
 0x905   : > { %v3700_v0 = vadd.f32 %v3693_v32, %v3568_v35  ;;  %v11654_v35 = vmov 0   ;;  %v11006_v32 = vld [vmem:[%s14395_s10 + $0x170] ss:$8 sps:$4 sm:$0xff]  }
 0x906   : > { %v10570_v54 = vpop.f32.mrf.mxu0  ;;  %4483 = vmatprep.mubr.bf16.mxu0 %v11654_v35  ;;  %10767 = vset.pattern.permute.xlu0 %v11654_v35 }
 0x908   : > { %v3696_v43 = vpop.f32.mrf.mxu0 }
 0x909   : > { %v3701_v60 = vadd.f32 %v3696_v43, %v3569_v40  ;;  %v11008_v40 = vld [vmem:[%s14395_s10 + $0x174] ss:$8 sps:$4 sm:$0xff]   ;;  %v11011_v43 = vld [vmem:[%s14395_s10 + $0x164] ss:$8 sps:$4 sm:$0xff]  }
 0x90a   : > { %v10571_v50 = vpop.f32.mrf.mxu0 }
 0x914   : > { %v3825_v52 = vpop.f32.mrf.mxu0 }
 0x915   : > { %v3832_v48 = vadd.f32 %v3825_v52, %v3700_v0  ;;  %v11026_v0 = vld [vmem:[%s14395_s10 + $0x134] ss:$8 sps:$4 sm:$0xff]  }
 0x916   : > { %v10594_v15 = vpop.f32.mrf.mxu0 }
 0x917   : > { %v11009_v15 = vld [vmem:[%s14395_s10 + $0x160] ss:$8 sps:$4 sm:$0xff]  }
 0x918   : > { %v3828_v58 = vpop.f32.mrf.mxu0 }
 0x919   : > { %v3833_v7 = vadd.f32 %v3828_v58, %v3701_v60  ;;  %v11014_v58 = vld [vmem:[%s14395_s10 + $0x154] ss:$8 sps:$4 sm:$0xff]  }
 0x91a   : > { %v10595_v23 = vpop.f32.mrf.mxu0  ;;  %v11017_v60 = vld [vmem:[%s14395_s10 + $0x1f4] ss:$8 sps:$4 sm:$0xff]  }
 0x924   : > { %v3957_v20 = vpop.f32.mrf.mxu0 }
 0x925   : > { %v3964_v6 = vadd.f32 %v3957_v20, %v3832_v48  ;;  %v8988_v48 = vld [vmem:[%s14394_s9 + $0x4] sm:$0x3] }
 0x926   : > { %v10618_v2 = vpop.f32.mrf.mxu0 }
 0x928   : > { %v3960_v17 = vpop.f32.mrf.mxu0 }
 0x929   : > { %v3965_v30 = vadd.f32 %v3960_v17, %v3833_v7  ;;  %v11012_v17 = vld [vmem:[%s14395_s10 + $0x150] ss:$8 sps:$4 sm:$0xff]   ;;  %v9022_v7 = vld [vmem:[%s14394_s9 + $0x6] sm:$0x3] }
 0x92a   : > { %v10619_v18 = vpop.f32.mrf.mxu0 }
 0x934   : > { %v4089_v55 = vpop.f32.mrf.mxu0 }
 0x935   : > { %v4096_v57 = vadd.f32 %v4089_v55, %v3964_v6  ;;  %v11020_v55 = vld [vmem:[%s14395_s10 + $0x144] ss:$8 sps:$4 sm:$0xff]   ;;  %v11024_v6 = vld [vmem:[%s14395_s10 + $0x130] ss:$8 sps:$4 sm:$0xff]  }
 0x936   : > { %v10642_v47 = vpop.f32.mrf.mxu0 }
 0x938   : > { %v4092_v27 = vpop.f32.mrf.mxu0 }
 0x939   : > { %v4097_v28 = vadd.f32 %v4092_v27, %v3965_v30  ;;  %v11018_v27 = vld [vmem:[%s14395_s10 + $0x140] ss:$8 sps:$4 sm:$0xff]   ;;  %v11029_v30 = vld [vmem:[%s14395_s10 + $0x1d4] ss:$8 sps:$4 sm:$0xff]  }
 0x93a   : > { %v10643_v62 = vpop.f32.mrf.mxu0 }
 0x944   : > { %v4221_v10 = vpop.f32.mrf.mxu0 }
 0x945   : > { %v4228_v8 = vadd.f32 %v4221_v10, %v4096_v57  ;;  %v11015_v57 = vld [vmem:[%s14395_s10 + $0x1f0] ss:$8 sps:$4 sm:$0xff]   ;;  %v11023_v10 = vld [vmem:[%s14395_s10 + $0x1e4] ss:$8 sps:$4 sm:$0xff]  }
 0x946   : > { %v10666_v9 = vpop.f32.mrf.mxu0 }
 0x947   : > { %v4237_v24 = vadd.f32 %v8936_v56, %v4228_v8  ;;  %v11027_v8 = vld [vmem:[%s14395_s10 + $0x1d0] ss:$8 sps:$4 sm:$0xff]   ;;  %v11030_v9 = vld [vmem:[%s14395_s10 + $0x120] ss:$8 sps:$4 sm:$0xff]  }
 0x948   : > { %v4224_v46 = vpop.f32.mrf.mxu0 }
 0x949   : > { %v4229_v33 = vadd.f32 %v4224_v46, %v4097_v28  ;;  %v4241_v34 = vmul.f32 0.2, %v4237_v24  ;;  %vm4239_vm15 = vcmp.ge.f32.partialorder %v4237_v24, 0.0  ;;  %v11032_v28 = vld [vmem:[%s14395_s10 + $0x124] ss:$8 sps:$4 sm:$0xff]  }
 0x94a   : > { %v10667_v12 = vpop.f32.mrf.mxu0  ;;  %v11035_v46 = vld [vmem:[%s14395_s10 + $0x1c4] ss:$8 sps:$4 sm:$0xff]  }
 0x94b   : > { %v4238_v29 = vadd.f32 %v8936_v56, %v4229_v33  ;;  %v4243_v53 = vsel %vm4239_vm15, %v4237_v24, %v4241_v34  ;;  %v11021_v56 = vld [vmem:[%s14395_s10 + $0x1e0] ss:$8 sps:$4 sm:$0xff]   ;;  %v11038_v33 = vld [vmem:[%s14395_s10 + $0x114] ss:$8 sps:$4 sm:$0xff]   ;;  %v11036_v34 = vld [vmem:[%s14395_s10 + $0x110] ss:$8 sps:$4 sm:$0xff]  }
 0x94c   : > { %v11033_v24 = vld [vmem:[%s14395_s10 + $0x1c0] ss:$8 sps:$4 sm:$0xff]   ;;  %v11041_v12 = vld [vmem:[%s14395_s10 + $0x1b4] ss:$8 sps:$4 sm:$0xff]  }
 0x94d   : > { %vm4240_vm1 = vcmp.ge.f32.partialorder %v4238_v29, 0.0  ;;  %v4242_v36 = vmul.f32 0.2, %v4238_v29 }
 0x94f   : > { %v4244_v51 = vsel %vm4240_vm1, %v4238_v29, %v4242_v36  ;;  %v11039_v29 = vld [vmem:[%s14395_s10 + $0x1b0] ss:$8 sps:$4 sm:$0xff]   ;;  %v11044_v36 = vld [vmem:[%s14395_s10 + $0x104] ss:$8 sps:$4 sm:$0xff]  }
 0x950   : > { %v12889_v44 = vpack.c.bf16 %v4244_v51, %v4243_v53  ;;  %v11047_v53 = vld [vmem:[%s14395_s10 + $0x1a4] ss:$8 sps:$4 sm:$0xff]   ;;  %v11042_v51 = vld [vmem:[%s14395_s10 + $0x100] ss:$8 sps:$4 sm:$0xff]  }
 0x952   : > { %10669 = vmatpush3.bf16.msra.mxu1 %v12889_v44 }
 0x953   : > { %10674 = vmatprep.subr.bf16.mxu1 %v11652_v25 }
 0x955   : > { %10671 = vmatmul.mubr.msk.bf16.vlgmr.msra.gmra.mxu1 %vm4247_vm2, %v4246_v41  ;;  %v11045_v41 = vld [vmem:[%s14395_s10 + $0x1a0] ss:$8 sps:$4 sm:$0xff]  }
 0x956   : > { %10675 = vmatpush3.bf16.msra.mxu1 %v12889_v44  ;;  %10676 = vmatprep.mubr.msk.bf16.mxu1 %vm11653_vm5, %v11652_v25 }
 0x957   : > { %4572 = vmatprep.subr.bf16.mxu1 %v10960_v59  ;;  %v11050_v59 = vld [vmem:[%s14395_s10 + $0x194] ss:$8 sps:$4 sm:$0xff]  }
 0x95d   : > { %10677 = vmatmul.mubr.msk.bf16.vlgmr.msra.gmra.mxu1 %vm4247_vm2, %v8938_v42  ;;  %v11048_v42 = vld [vmem:[%s14395_s10 + $0x190] ss:$8 sps:$4 sm:$0xff]  }
 0x95e   : > { %4573 = vmatpush1.bf16.msra.mxu1 %v10958_v16  ;;  %4604 = vmatprep.mubr.bf16.mxu1 %v11654_v35  ;;  %v11053_v16 = vld [vmem:[%s14395_s10 + $0x184] ss:$8 sps:$4 sm:$0xff]  }
 0x95f   : > { %4574 = vmatprep.subr.bf16.mxu1 %v10966_v37  ;;  %v11051_v37 = vld [vmem:[%s14395_s10 + $0x180] ss:$8 sps:$4 sm:$0xff]  }
 0x962   : > { %4575 = vmatpush1.bf16.msra.mxu1 %v10964_v61 }
 0x963   : > { %4576 = vmatprep.subr.bf16.mxu1 %v10972_v13 }
 0x966   : > { %4577 = vmatpush1.bf16.msra.mxu1 %v10970_v1 }
 0x967   : > { %4578 = vmatprep.subr.bf16.mxu1 %v10978_v49 }
 0x96a   : > { %4579 = vmatpush1.bf16.msra.mxu1 %v10976_v26 }
 0x96b   : > { %4580 = vmatprep.subr.bf16.mxu1 %v10984_v63 }
 0x96e   : > { %4581 = vmatpush1.bf16.msra.mxu1 %v10982_v19 }
 0x96f   : > { %4582 = vmatprep.subr.bf16.mxu1 %v10990_v5 }
 0x972   : > { %4583 = vmatpush1.bf16.msra.mxu1 %v10988_v4 }
 0x973   : > { %4584 = vmatprep.subr.bf16.mxu1 %v10996_v39 }
 0x976   : > { %4585 = vmatpush1.bf16.msra.mxu1 %v10994_v11 }
 0x977   : > { %4586 = vmatprep.subr.bf16.mxu1 %v11002_v38 }
 0x97a   : > { %4587 = vmatpush1.bf16.msra.mxu1 %v11000_v31  ;;  %v11056_v31 = vld [vmem:[%s14395_s10 + $0x274] ss:$8 sps:$4 sm:$0xff]  }
 0x97b   : > { %4756 = vmatprep.subr.bf16.mxu1 %v11008_v40  ;;  %v9056_v40 = vld [vmem:[%s14394_s9 + $0x8] sm:$0x3] }
 0xa15   : > { %v4285_v21 = vpop.f32.mrf.mxu1 }
 0xa16   : > { %v4291_v54 = vpack.c.bf16 %v4285_v21, %v4285_v21 }
 0xa17   : > { %v10672_v50 = vpop.f32.mrf.mxu1 }
 0xa18   : > { %4605 = vmatmul.mubr.bf16.vlgmr.msra.gmra.mxu1 %v4291_v54  ;;  %v11065_v54 = vld [vmem:[%s14395_s10 + $0x2f4] ss:$8 sps:$4 sm:$0xff]  }
 0xa19   : > { %v4288_v52 = vpop.f32.mrf.mxu1  ;;  %4757 = vmatpush1.bf16.msra.mxu1 %v11006_v32  ;;  %4788 = vmatprep.mubr.bf16.mxu1 %v11654_v35  ;;  %v11054_v32 = vld [vmem:[%s14395_s10 + $0x270] ss:$8 sps:$4 sm:$0xff]  }
 0xa1a   : > { %4758 = vmatprep.subr.bf16.mxu1 %v11011_v43  ;;  %v11059_v43 = vld [vmem:[%s14395_s10 + $0x264] ss:$8 sps:$4 sm:$0xff]  }
 0xa1b   : > { %v10673_v23 = vpop.f32.mrf.mxu1 }
 0xa1d   : > { %v4347_v20 = vpop.f32.mrf.mxu1  ;;  %4759 = vmatpush1.bf16.msra.mxu1 %v11009_v15  ;;  %v11057_v15 = vld [vmem:[%s14395_s10 + $0x260] ss:$8 sps:$4 sm:$0xff]  }
 0xa1e   : > { %v4353_v2 = vpack.c.bf16 %v4347_v20, %v4347_v20  ;;  %4760 = vmatprep.subr.bf16.mxu1 %v11014_v58  ;;  %v11062_v58 = vld [vmem:[%s14395_s10 + $0x254] ss:$8 sps:$4 sm:$0xff]   ;;  %v9090_v20 = vld [vmem:[%s14394_s9 + $0xa] sm:$0x3] }
 0xa1f   : > { %v10678_v18 = vpop.f32.mrf.mxu1 }
 0xa20   : > { %4484 = vmatmul.mubr.bf16.vlgmr.msra.gmra.mxu0 %v4353_v2  ;;  %v11063_v2 = vld [vmem:[%s14395_s10 + $0x2f0] ss:$8 sps:$4 sm:$0xff]   ;;  %v11071_v18 = vld [vmem:[%s14395_s10 + $0x2e4] ss:$8 sps:$4 sm:$0xff]  }
 0xa21   : > { %10681 = vmatpush3.bf16.msra.mxu0 %v12889_v44  ;;  %v4350_v47 = vpop.f32.mrf.mxu1  ;;  %10682 = vmatprep.mubr.msk.bf16.mxu0 %vm11653_vm5, %v11652_v25 }
 0xa22   : > { %10686 = vmatprep.subr.bf16.mxu0 %v11652_v25  ;;  %4761 = vmatpush1.bf16.msra.mxu1 %v11012_v17  ;;  %v11060_v17 = vld [vmem:[%s14395_s10 + $0x250] ss:$8 sps:$4 sm:$0xff]   ;;  %v11069_v47 = vld [vmem:[%s14395_s10 + $0x2e0] ss:$8 sps:$4 sm:$0xff]  }
 0xa23   : > { %v10679_v62 = vpop.f32.mrf.mxu1  ;;  %4762 = vmatprep.subr.bf16.mxu1 %v11020_v55  ;;  %v11068_v55 = vld [vmem:[%s14395_s10 + $0x244] ss:$8 sps:$4 sm:$0xff]  }
 0xa24   : > { %v11077_v62 = vld [vmem:[%s14395_s10 + $0x2d4] ss:$8 sps:$4 sm:$0xff]  }
 0xa26   : > { %4763 = vmatpush1.bf16.msra.mxu1 %v11018_v27  ;;  %v11066_v27 = vld [vmem:[%s14395_s10 + $0x240] ss:$8 sps:$4 sm:$0xff]  }
 0xa27   : > { %4764 = vmatprep.subr.bf16.mxu1 %v11026_v0  ;;  %v11074_v0 = vld [vmem:[%s14395_s10 + $0x234] ss:$8 sps:$4 sm:$0xff]  }
 0xa28   : > { %10683 = vmatmul.mubr.msk.bf16.vlgmr.msra.gmra.mxu0 %vm4247_vm2, %v8988_v48  ;;  %v11075_v48 = vld [vmem:[%s14395_s10 + $0x2d0] ss:$8 sps:$4 sm:$0xff]  }
 0xa29   : > { %10687 = vmatpush3.bf16.msra.mxu0 %v12889_v44  ;;  %10688 = vmatprep.mubr.msk.bf16.mxu0 %vm11653_vm5, %v11652_v25 }
 0xa2a   : > { %4942 = vmatprep.subr.bf16.mxu0 %v11017_v60  ;;  %4765 = vmatpush1.bf16.msra.mxu1 %v11024_v6  ;;  %v11072_v60 = vld [vmem:[%s14395_s10 + $0x230] ss:$8 sps:$4 sm:$0xff]   ;;  %v11083_v6 = vld [vmem:[%s14395_s10 + $0x2c4] ss:$8 sps:$4 sm:$0xff]  }
 0xa2b   : > { %4766 = vmatprep.subr.bf16.mxu1 %v11032_v28  ;;  %v11092_v28 = vld [vmem:[%s14395_s10 + $0x204] ss:$8 sps:$4 sm:$0xff]  }
 0xa2e   : > { %4767 = vmatpush1.bf16.msra.mxu1 %v11030_v9  ;;  %v11087_v9 = vld [vmem:[%s14395_s10 + $0x2b0] ss:$8 sps:$4 sm:$0xff]  }
 0xa2f   : > { %4768 = vmatprep.subr.bf16.mxu1 %v11038_v33  ;;  %v11093_v33 = vld [vmem:[%s14395_s10 + $0x2a0] ss:$8 sps:$4 sm:$0xff]  }
 0xa30   : > { %10689 = vmatmul.mubr.msk.bf16.vlgmr.msra.gmra.mxu0 %vm4247_vm2, %v9022_v7  ;;  %v11080_v7 = vld [vmem:[%s14395_s10 + $0x224] ss:$8 sps:$4 sm:$0xff]  }
 0xa31   : > { %4943 = vmatpush1.bf16.msra.mxu0 %v11015_v57  ;;  %4974 = vmatprep.mubr.bf16.mxu0 %v11654_v35  ;;  %v11081_v57 = vld [vmem:[%s14395_s10 + $0x2c0] ss:$8 sps:$4 sm:$0xff]  }
 0xa32   : > { %4944 = vmatprep.subr.bf16.mxu0 %v11023_v10  ;;  %4769 = vmatpush1.bf16.msra.mxu1 %v11036_v34  ;;  %v11078_v10 = vld [vmem:[%s14395_s10 + $0x220] ss:$8 sps:$4 sm:$0xff]   ;;  %v11096_v34 = vld [vmem:[%s14395_s10 + $0x290] ss:$8 sps:$4 sm:$0xff]  }
 0xa33   : > { %4770 = vmatprep.subr.bf16.mxu1 %v11044_v36  ;;  %v11099_v36 = vld [vmem:[%s14395_s10 + $0x280] ss:$8 sps:$4 sm:$0xff]  }
 0xa35   : > { %4945 = vmatpush1.bf16.msra.mxu0 %v11021_v56  ;;  %v11086_v56 = vld [vmem:[%s14395_s10 + $0x214] ss:$8 sps:$4 sm:$0xff]  }
 0xa36   : > { %4946 = vmatprep.subr.bf16.mxu0 %v11029_v30  ;;  %4771 = vmatpush1.bf16.msra.mxu1 %v11042_v51  ;;  %v11089_v30 = vld [vmem:[%s14395_s10 + $0x2b4] ss:$8 sps:$4 sm:$0xff]  }
 0xa37   : > { %10692 = vmatprep.subr.bf16.mxu1 %v11652_v25 }
 0xa39   : > { %4947 = vmatpush1.bf16.msra.mxu0 %v11027_v8  ;;  %v11084_v8 = vld [vmem:[%s14395_s10 + $0x210] ss:$8 sps:$4 sm:$0xff]  }
 0xa3a   : > { %4948 = vmatprep.subr.bf16.mxu0 %v11035_v46  ;;  %v11090_v46 = vld [vmem:[%s14395_s10 + $0x200] ss:$8 sps:$4 sm:$0xff]  }
 0xa3d   : > { %4949 = vmatpush1.bf16.msra.mxu0 %v11033_v24  ;;  %v11095_v24 = vld [vmem:[%s14395_s10 + $0x2a4] ss:$8 sps:$4 sm:$0xff]  }
 0xa3e   : > { %4950 = vmatprep.subr.bf16.mxu0 %v11041_v12  ;;  %v11098_v12 = vld [vmem:[%s14395_s10 + $0x294] ss:$8 sps:$4 sm:$0xff]  }
 0xa41   : > { %4951 = vmatpush1.bf16.msra.mxu0 %v11039_v29  ;;  %v11101_v29 = vld [vmem:[%s14395_s10 + $0x284] ss:$8 sps:$4 sm:$0xff]  }
 0xa42   : > { %4952 = vmatprep.subr.bf16.mxu0 %v11047_v53 }
 0xa45   : > { %4953 = vmatpush1.bf16.msra.mxu0 %v11045_v41 }
 0xa46   : > { %4954 = vmatprep.subr.bf16.mxu0 %v11050_v59 }
 0xa49   : > { %4955 = vmatpush1.bf16.msra.mxu0 %v11048_v42 }
 0xa4a   : > { %4956 = vmatprep.subr.bf16.mxu0 %v11053_v16 }
 0xa4d   : > { %4957 = vmatpush1.bf16.msra.mxu0 %v11051_v37 }
 0xa4e   : > { %10698 = vmatprep.subr.bf16.mxu0 %v11652_v25 }
 0xad8   : > { %v4606_v61 = vpop.f32.mrf.mxu1 }
 0xada   : > { %v4608_v13 = vpop.f32.mrf.mxu1 }
 0xadc   : > { %v4610_v1 = vpop.f32.mrf.mxu1 }
 0xade   : > { %v4611_v49 = vpop.f32.mrf.mxu1 }
 0xadf   : > { %v11104_v49 = vld [vmem:[%s14395_s10 + $0x374] ss:$8 sps:$4 sm:$0xff]  }
 0xae0   : > { %v4485_v26 = vpop.f32.mrf.mxu0 }
 0xae1   : > { %v13083_v63 = vadd.f32 %v4606_v61, %v4485_v26 }
 0xae2   : > { %v4487_v19 = vpop.f32.mrf.mxu0 }
 0xae3   : > { %v13085_v5 = vadd.f32 %v4608_v13, %v4487_v19 }
 0xae4   : > { %v4489_v4 = vpop.f32.mrf.mxu0 }
 0xae6   : > { %v4490_v39 = vpop.f32.mrf.mxu0 }
 0xae8   : > { %v4652_v11 = vpop.f32.mrf.mxu0 }
 0xae9   : > { %v4658_v38 = vpack.c.bf16 %v4652_v11, %v4652_v11 }
 0xaea   : > { %v10684_v45 = vpop.f32.mrf.mxu0 }
 0xaeb   : > { %4789 = vmatmul.mubr.bf16.vlgmr.msra.gmra.mxu1 %v4658_v38 }
 0xaec   : > { %10693 = vmatpush3.bf16.msra.mxu1 %v12889_v44  ;;  %v4655_v3 = vpop.f32.mrf.mxu0  ;;  %10694 = vmatprep.mubr.msk.bf16.mxu1 %vm11653_vm5, %v11652_v25 }
 0xaed   : > { %5128 = vmatprep.subr.bf16.mxu1 %v11056_v31  ;;  %v9124_v31 = vld [vmem:[%s14394_s9 + $0xc] sm:$0x3]  ;;  %v11102_v3 = vld [vmem:[%s14395_s10 + $0x370] ss:$8 sps:$4 sm:$0xff]  }
 0xaee   : > { %v10685_v22 = vpop.f32.mrf.mxu0 }
 0xaef   : > { %v11113_v22 = vld [vmem:[%s14395_s10 + $0x3f4] ss:$8 sps:$4 sm:$0xff]  }
 0xaf0   : > { %v4838_v14 = vpop.f32.mrf.mxu0 }
 0xaf1   : > { %v4844_v21 = vpack.c.bf16 %v4838_v14, %v4838_v14  ;;  %v11107_v14 = vld [vmem:[%s14395_s10 + $0x364] ss:$8 sps:$4 sm:$0xff]  }
 0xaf2   : > { %v10690_v50 = vpop.f32.mrf.mxu0 }
 0xaf3   : > { %4975 = vmatmul.mubr.bf16.vlgmr.msra.gmra.mxu0 %v4844_v21  ;;  %10695 = vmatmul.mubr.msk.bf16.vlgmr.msra.gmra.mxu1 %vm4247_vm2, %v9056_v40  ;;  %v9158_v50 = vld [vmem:[%s14394_s9 + $0xe] sm:$0x3] }
 0xaf4   : > { %10699 = vmatpush3.bf16.msra.mxu0 %v12889_v44  ;;  %10700 = vmatprep.mubr.msk.bf16.mxu0 %vm11653_vm5, %v11652_v25  ;;  %v4841_v52 = vpop.f32.mrf.mxu0 }
 0xaf5   : > { %5129 = vmatpush1.bf16.msra.mxu1 %v11054_v32  ;;  %5314 = vmatprep.subr.bf16.mxu0 %v11065_v54  ;;  %v11105_v32 = vld [vmem:[%s14395_s10 + $0x360] ss:$8 sps:$4 sm:$0xff]   ;;  %v11110_v54 = vld [vmem:[%s14395_s10 + $0x354] ss:$8 sps:$4 sm:$0xff]   ;;  %v11111_v52 = vld [vmem:[%s14395_s10 + $0x3f0] ss:$8 sps:$4 sm:$0xff]  }
 0xaf6   : > { %5130 = vmatprep.subr.bf16.mxu1 %v11059_v43  ;;  %v10691_v23 = vpop.f32.mrf.mxu0  ;;  %5160 = vmatprep.mubr.bf16.mxu1 %v11654_v35 }
 0xaf7   : > { %v11116_v23 = vld [vmem:[%s14395_s10 + $0x344] ss:$8 sps:$4 sm:$0xff]  }
 0xaf9   : > { %5131 = vmatpush1.bf16.msra.mxu1 %v11057_v15  ;;  %v11108_v15 = vld [vmem:[%s14395_s10 + $0x350] ss:$8 sps:$4 sm:$0xff]  }
 0xafa   : > { %5132 = vmatprep.subr.bf16.mxu1 %v11062_v58  ;;  %v11119_v58 = vld [vmem:[%s14395_s10 + $0x3e4] ss:$8 sps:$4 sm:$0xff]  }
 0xafb   : > { %10701 = vmatmul.mubr.msk.bf16.vlgmr.msra.gmra.mxu0 %vm4247_vm2, %v9090_v20  ;;  %v11117_v20 = vld [vmem:[%s14395_s10 + $0x3e0] ss:$8 sps:$4 sm:$0xff]  }
 0xafc   : > { %5315 = vmatpush1.bf16.msra.mxu0 %v11063_v2  ;;  %5346 = vmatprep.mubr.bf16.mxu0 %v11654_v35  ;;  %v11114_v2 = vld [vmem:[%s14395_s10 + $0x340] ss:$8 sps:$4 sm:$0xff]  }
 0xafd   : > { %5133 = vmatpush1.bf16.msra.mxu1 %v11060_v17  ;;  %5316 = vmatprep.subr.bf16.mxu0 %v11071_v18  ;;  %v11125_v17 = vld [vmem:[%s14395_s10 + $0x3d4] ss:$8 sps:$4 sm:$0xff]  }
 0xafe   : > { %5134 = vmatprep.subr.bf16.mxu1 %v11068_v55  ;;  %v11122_v18 = vld [vmem:[%s14395_s10 + $0x334] ss:$8 sps:$4 sm:$0xff]   ;;  %v11123_v55 = vld [vmem:[%s14395_s10 + $0x3d0] ss:$8 sps:$4 sm:$0xff]  }
 0xb00   : > { %5317 = vmatpush1.bf16.msra.mxu0 %v11069_v47  ;;  %v11120_v47 = vld [vmem:[%s14395_s10 + $0x330] ss:$8 sps:$4 sm:$0xff]  }
 0xb01   : > { %5135 = vmatpush1.bf16.msra.mxu1 %v11066_v27  ;;  %5318 = vmatprep.subr.bf16.mxu0 %v11077_v62  ;;  %v11131_v27 = vld [vmem:[%s14395_s10 + $0x3c4] ss:$8 sps:$4 sm:$0xff]  }
 0xb02   : > { %5136 = vmatprep.subr.bf16.mxu1 %v11074_v0  ;;  %v11128_v62 = vld [vmem:[%s14395_s10 + $0x324] ss:$8 sps:$4 sm:$0xff]   ;;  %v11129_v0 = vld [vmem:[%s14395_s10 + $0x3c0] ss:$8 sps:$4 sm:$0xff]  }
 0xb04   : > { %5319 = vmatpush1.bf16.msra.mxu0 %v11075_v48  ;;  %v11126_v48 = vld [vmem:[%s14395_s10 + $0x320] ss:$8 sps:$4 sm:$0xff]  }
 0xb05   : > { %5137 = vmatpush1.bf16.msra.mxu1 %v11072_v60  ;;  %5320 = vmatprep.subr.bf16.mxu0 %v11083_v6  ;;  %v11134_v60 = vld [vmem:[%s14395_s10 + $0x314] ss:$8 sps:$4 sm:$0xff]   ;;  %v11132_v6 = vld [vmem:[%s14395_s10 + $0x310] ss:$8 sps:$4 sm:$0xff]  }
 0xb06   : > { %5138 = vmatprep.subr.bf16.mxu1 %v11080_v7  ;;  %v11137_v7 = vld [vmem:[%s14395_s10 + $0x3b4] ss:$8 sps:$4 sm:$0xff]  }
 0xb08   : > { %5321 = vmatpush1.bf16.msra.mxu0 %v11081_v57  ;;  %v11135_v57 = vld [vmem:[%s14395_s10 + $0x3b0] ss:$8 sps:$4 sm:$0xff]  }
 0xb09   : > { %5139 = vmatpush1.bf16.msra.mxu1 %v11078_v10  ;;  %5322 = vmatprep.subr.bf16.mxu0 %v11089_v30  ;;  %v11140_v10 = vld [vmem:[%s14395_s10 + $0x304] ss:$8 sps:$4 sm:$0xff]   ;;  %v11141_v30 = vld [vmem:[%s14395_s10 + $0x3a0] ss:$8 sps:$4 sm:$0xff]  }
 0xb0a   : > { %5140 = vmatprep.subr.bf16.mxu1 %v11086_v56  ;;  %v11138_v56 = vld [vmem:[%s14395_s10 + $0x300] ss:$8 sps:$4 sm:$0xff]  }
 0xb0c   : > { %5323 = vmatpush1.bf16.msra.mxu0 %v11087_v9  ;;  %v11146_v9 = vld [vmem:[%s14395_s10 + $0x394] ss:$8 sps:$4 sm:$0xff]  }
 0xb0d   : > { %5141 = vmatpush1.bf16.msra.mxu1 %v11084_v8  ;;  %5324 = vmatprep.subr.bf16.mxu0 %v11095_v24  ;;  %v11143_v8 = vld [vmem:[%s14395_s10 + $0x3a4] ss:$8 sps:$4 sm:$0xff]   ;;  %v11147_v24 = vld [vmem:[%s14395_s10 + $0x380] ss:$8 sps:$4 sm:$0xff]  }
 0xb0e   : > { %5142 = vmatprep.subr.bf16.mxu1 %v11092_v28  ;;  %v11144_v28 = vld [vmem:[%s14395_s10 + $0x390] ss:$8 sps:$4 sm:$0xff]  }
 0xb10   : > { %5325 = vmatpush1.bf16.msra.mxu0 %v11093_v33 }
 0xb11   : > { %5143 = vmatpush1.bf16.msra.mxu1 %v11090_v46  ;;  %5326 = vmatprep.subr.bf16.mxu0 %v11098_v12  ;;  %v11149_v46 = vld [vmem:[%s14395_s10 + $0x384] ss:$8 sps:$4 sm:$0xff]  }
 0xb12   : > { %10704 = vmatprep.subr.bf16.mxu1 %v11652_v25 }
 0xb14   : > { %5327 = vmatpush1.bf16.msra.mxu0 %v11096_v34 }
 0xb15   : > { %5328 = vmatprep.subr.bf16.mxu0 %v11101_v29 }
 0xb18   : > { %5329 = vmatpush1.bf16.msra.mxu0 %v11099_v36 }
 0xb19   : > { %10710 = vmatprep.subr.bf16.mxu0 %v11652_v25 }
 0xbab   : > { %v4790_v53 = vpop.f32.mrf.mxu1 }
 0xbac   : > { %v4797_v51 = vadd.f32 %v4790_v53, %v13083_v63 }
 0xbad   : > { %v4792_v41 = vpop.f32.mrf.mxu1 }
 0xbae   : > { %v4798_v59 = vadd.f32 %v4792_v41, %v13085_v5 }
 0xbaf   : > { %v4794_v42 = vpop.f32.mrf.mxu1 }
 0xbb1   : > { %v4795_v16 = vpop.f32.mrf.mxu1 }
 0xbb2   : > { %v11152_v16 = vld [vmem:[%s14395_s10 + $0x474] ss:$8 sps:$4 sm:$0xff]  }
 0xbb3   : > { %v4976_v37 = vpop.f32.mrf.mxu0  ;;  %v5024_v61 = vpop.f32.mrf.mxu1 }
 0xbb4   : > { %v13203_v13 = vadd.f32 %v4976_v37, %v4797_v51  ;;  %v5030_v1 = vpack.c.bf16 %v5024_v61, %v5024_v61 }
 0xbb5   : > { %v4978_v26 = vpop.f32.mrf.mxu0  ;;  %v10696_v19 = vpop.f32.mrf.mxu1 }
 0xbb6   : > { %v13208_v4 = vadd.f32 %v4978_v26, %v4798_v59  ;;  %5161 = vmatmul.mubr.bf16.vlgmr.msra.gmra.mxu1 %v5030_v1 }
 0xbb7   : > { %10705 = vmatpush3.bf16.msra.mxu1 %v12889_v44  ;;  %v4980_v63 = vpop.f32.mrf.mxu0  ;;  %v5027_v5 = vpop.f32.mrf.mxu1  ;;  %10706 = vmatprep.mubr.msk.bf16.mxu1 %vm11653_vm5, %v11652_v25 }
 0xbb8   : > { %5500 = vmatprep.subr.bf16.mxu1 %v11104_v49  ;;  %v9192_v63 = vld [vmem:[%s14394_s9 + $0x10] sm:$0x3] }
 0xbb9   : > { %v4981_v39 = vpop.f32.mrf.mxu0  ;;  %v10697_v11 = vpop.f32.mrf.mxu1  ;;  %v11150_v5 = vld [vmem:[%s14395_s10 + $0x470] ss:$8 sps:$4 sm:$0xff]  }
 0xbbb   : > { %v5210_v38 = vpop.f32.mrf.mxu0 }
 0xbbc   : > { %v5216_v45 = vpack.c.bf16 %v5210_v38, %v5210_v38 }
 0xbbd   : > { %v10702_v40 = vpop.f32.mrf.mxu0 }
 0xbbe   : > { %5347 = vmatmul.mubr.bf16.vlgmr.msra.gmra.mxu0 %v5216_v45  ;;  %10707 = vmatmul.mubr.msk.bf16.vlgmr.msra.gmra.mxu1 %vm4247_vm2, %v9124_v31  ;;  %v11158_v31 = vld [vmem:[%s14395_s10 + $0x454] ss:$8 sps:$4 sm:$0xff]  }
 0xbbf   : > { %10711 = vmatpush3.bf16.msra.mxu0 %v12889_v44  ;;  %10712 = vmatprep.mubr.msk.bf16.mxu0 %vm11653_vm5, %v11652_v25  ;;  %v5213_v21 = vpop.f32.mrf.mxu0  ;;  %v11164_v40 = vld [vmem:[%s14395_s10 + $0x434] ss:$8 sps:$4 sm:$0xff]  }
 0xbc0   : > { %5501 = vmatpush1.bf16.msra.mxu1 %v11102_v3  ;;  %5686 = vmatprep.subr.bf16.mxu0 %v11113_v22  ;;  %v11156_v3 = vld [vmem:[%s14395_s10 + $0x450] ss:$8 sps:$4 sm:$0xff]   ;;  %v11161_v22 = vld [vmem:[%s14395_s10 + $0x444] ss:$8 sps:$4 sm:$0xff]  }
 0xbc1   : > { %5502 = vmatprep.subr.bf16.mxu1 %v11107_v14  ;;  %v10703_v43 = vpop.f32.mrf.mxu0  ;;  %5532 = vmatprep.mubr.bf16.mxu1 %v11654_v35  ;;  %v11159_v14 = vld [vmem:[%s14395_s10 + $0x440] ss:$8 sps:$4 sm:$0xff]   ;;  %v11162_v21 = vld [vmem:[%s14395_s10 + $0x430] ss:$8 sps:$4 sm:$0xff]  }
 0xbc2   : > { %v11170_v43 = vld [vmem:[%s14395_s10 + $0x414] ss:$8 sps:$4 sm:$0xff]  }
 0xbc4   : > { %5503 = vmatpush1.bf16.msra.mxu1 %v11105_v32  ;;  %v11167_v32 = vld [vmem:[%s14395_s10 + $0x424] ss:$8 sps:$4 sm:$0xff]  }
 0xbc5   : > { %5504 = vmatprep.subr.bf16.mxu1 %v11110_v54  ;;  %v11165_v54 = vld [vmem:[%s14395_s10 + $0x420] ss:$8 sps:$4 sm:$0xff]  }
 0xbc6   : > { %10713 = vmatmul.mubr.msk.bf16.vlgmr.msra.gmra.mxu0 %vm4247_vm2, %v9158_v50  ;;  %v11168_v50 = vld [vmem:[%s14395_s10 + $0x410] ss:$8 sps:$4 sm:$0xff]  }
 0xbc7   : > { %5687 = vmatpush1.bf16.msra.mxu0 %v11111_v52  ;;  %5718 = vmatprep.mubr.bf16.mxu0 %v11654_v35  ;;  %v11171_v52 = vld [vmem:[%s14395_s10 + $0x400] ss:$8 sps:$4 sm:$0xff]  }
 0xbc8   : > { %5505 = vmatpush1.bf16.msra.mxu1 %v11108_v15  ;;  %5688 = vmatprep.subr.bf16.mxu0 %v11119_v58  ;;  %v11173_v15 = vld [vmem:[%s14395_s10 + $0x404] ss:$8 sps:$4 sm:$0xff]  }
 0xbc9   : > { %5506 = vmatprep.subr.bf16.mxu1 %v11116_v23 }
 0xbcb   : > { %5689 = vmatpush1.bf16.msra.mxu0 %v11117_v20 }
 0xbcc   : > { %5507 = vmatpush1.bf16.msra.mxu1 %v11114_v2  ;;  %5690 = vmatprep.subr.bf16.mxu0 %v11125_v17 }
 0xbcd   : > { %5508 = vmatprep.subr.bf16.mxu1 %v11122_v18 }
 0xbcf   : > { %5691 = vmatpush1.bf16.msra.mxu0 %v11123_v55 }
 0xbd0   : > { %5509 = vmatpush1.bf16.msra.mxu1 %v11120_v47  ;;  %5692 = vmatprep.subr.bf16.mxu0 %v11131_v27 }
 0xbd1   : > { %5510 = vmatprep.subr.bf16.mxu1 %v11128_v62 }
 0xbd3   : > { %5693 = vmatpush1.bf16.msra.mxu0 %v11129_v0 }
 0xbd4   : > { %5511 = vmatpush1.bf16.msra.mxu1 %v11126_v48  ;;  %5694 = vmatprep.subr.bf16.mxu0 %v11137_v7 }
 0xbd5   : > { %5512 = vmatprep.subr.bf16.mxu1 %v11134_v60 }
 0xbd7   : > { %5695 = vmatpush1.bf16.msra.mxu0 %v11135_v57 }
 0xbd8   : > { %5513 = vmatpush1.bf16.msra.mxu1 %v11132_v6  ;;  %5696 = vmatprep.subr.bf16.mxu0 %v11143_v8  ;;  %v11185_v8 = vld [vmem:[%s14398_s13 + $0x2cc] ss:$16 sps:$4 sm:$0xff]  }
 0xbd9   : > { %5514 = vmatprep.subr.bf16.mxu1 %v11140_v10 }
 0xbdb   : > { %5697 = vmatpush1.bf16.msra.mxu0 %v11141_v30  ;;  %v11179_v30 = vld [vmem:[%s14398_s13 + $0x2ec] ss:$16 sps:$4 sm:$0xff]  }
 0xbdc   : > { %5515 = vmatpush1.bf16.msra.mxu1 %v11138_v56  ;;  %5698 = vmatprep.subr.bf16.mxu0 %v11146_v9  ;;  %v11177_v56 = vld [vmem:[%s14398_s13 + $0x2e8] ss:$16 sps:$4 sm:$0xff]  }
 0xbdd   : > { %10716 = vmatprep.subr.bf16.mxu1 %v11652_v25  ;;  %v11183_v9 = vld [vmem:[%s14398_s13 + $0x2c8] ss:$16 sps:$4 sm:$0xff]  }
 0xbdf   : > { %5699 = vmatpush1.bf16.msra.mxu0 %v11144_v28  ;;  %v11191_v28 = vld [vmem:[%s14398_s13 + $0x2ac] ss:$16 sps:$4 sm:$0xff]  }
 0xbe0   : > { %5700 = vmatprep.subr.bf16.mxu0 %v11149_v46  ;;  %v11197_v46 = vld [vmem:[%s14398_s13 + $0x28c] ss:$16 sps:$4 sm:$0xff]  }
 0xbe3   : > { %5701 = vmatpush1.bf16.msra.mxu0 %v11147_v24  ;;  %v11189_v24 = vld [vmem:[%s14398_s13 + $0x2a8] ss:$16 sps:$4 sm:$0xff]  }
 0xc76   : > { %v5162_v33 = vpop.f32.mrf.mxu1 }
 0xc77   : > { %v5169_v12 = vadd.f32 %v5162_v33, %v13203_v13  ;;  %v11195_v33 = vld [vmem:[%s14398_s13 + $0x288] ss:$16 sps:$4 sm:$0xff]  }
 0xc78   : > { %v5164_v34 = vpop.f32.mrf.mxu1 }
 0xc79   : > { %v5170_v29 = vadd.f32 %v5164_v34, %v13208_v4  ;;  %v11201_v34 = vld [vmem:[%s14398_s13 + $0x268] ss:$16 sps:$4 sm:$0xff]  }
 0xc7a   : > { %v5166_v36 = vpop.f32.mrf.mxu1 }
 0xc7b   : > { %v11207_v36 = vld [vmem:[%s14398_s13 + $0x248] ss:$16 sps:$4 sm:$0xff]  }
 0xc7c   : > { %v5167_v53 = vpop.f32.mrf.mxu1 }
 0xc7d   : > { %v11215_v53 = vld [vmem:[%s14398_s13 + $0x22c] ss:$16 sps:$4 sm:$0xff]  }
 0xc7e   : > { %v5348_v51 = vpop.f32.mrf.mxu0  ;;  %v5396_v41 = vpop.f32.mrf.mxu1 }
 0xc7f   : > { %v5355_v59 = vadd.f32 %v5348_v51, %v5169_v12  ;;  %v5402_v42 = vpack.c.bf16 %v5396_v41, %v5396_v41  ;;  %v11203_v12 = vld [vmem:[%s14398_s13 + $0x26c] ss:$16 sps:$4 sm:$0xff]   ;;  %v11213_v51 = vld [vmem:[%s14398_s13 + $0x228] ss:$16 sps:$4 sm:$0xff]  }
 0xc80   : > { %v5350_v37 = vpop.f32.mrf.mxu0  ;;  %v10708_v61 = vpop.f32.mrf.mxu1  ;;  %v11221_v41 = vld [vmem:[%s14398_s13 + $0x20c] ss:$16 sps:$4 sm:$0xff]  }
 0xc81   : > { %v5356_v1 = vadd.f32 %v5350_v37, %v5170_v29  ;;  %5533 = vmatmul.mubr.bf16.vlgmr.msra.gmra.mxu1 %v5402_v42  ;;  %v11209_v29 = vld [vmem:[%s14398_s13 + $0x24c] ss:$16 sps:$4 sm:$0xff]   ;;  %v11231_v61 = vld [vmem:[%s14398_s13 + $0x3c8] ss:$16 sps:$4 sm:$0xff]  }
 0xc82   : > { %10717 = vmatpush3.bf16.msra.mxu1 %v12889_v44  ;;  %v5352_v13 = vpop.f32.mrf.mxu0  ;;  %v5399_v49 = vpop.f32.mrf.mxu1  ;;  %10718 = vmatprep.mubr.msk.bf16.mxu1 %vm11653_vm5, %v11652_v25  ;;  %v11155_v44 = vld [vmem:[%s14395_s10 + $0x464] ss:$8 sps:$4 sm:$0xff]   ;;  %v11153_v25 = vld [vmem:[%s14395_s10 + $0x460] ss:$8 sps:$4 sm:$0xff]   ;;  %vm5938_vm5 = vcmask 31744  }
 0xc83   : > { %5872 = vmatprep.subr.bf16.mxu1 %v11152_v16  ;;  %v11227_v42 = vld [vmem:[%s14398_s13 + $0x3ec] ss:$16 sps:$4 sm:$0xff]   ;;  %v11225_v16 = vld [vmem:[%s14398_s13 + $0x3e8] ss:$16 sps:$4 sm:$0xff]  }
 0xc84   : > { %v5353_v26 = vpop.f32.mrf.mxu0  ;;  %v10709_v19 = vpop.f32.mrf.mxu1  ;;  %v11233_v37 = vld [vmem:[%s14398_s13 + $0x3cc] ss:$16 sps:$4 sm:$0xff]   ;;  %v11237_v13 = vld [vmem:[%s14398_s13 + $0x3a8] ss:$16 sps:$4 sm:$0xff]  }
 0xc85   : > { %v11245_v49 = vld [vmem:[%s14398_s13 + $0x38c] ss:$16 sps:$4 sm:$0xff]   ;;  %v11243_v26 = vld [vmem:[%s14398_s13 + $0x388] ss:$16 sps:$4 sm:$0xff]  }
 0xc86   : > { %v5582_v4 = vpop.f32.mrf.mxu0  ;;  %v11251_v19 = vld [vmem:[%s14398_s13 + $0x36c] ss:$16 sps:$4 sm:$0xff]  }
 0xc87   : > { %v5588_v39 = vpack.c.bf16 %v5582_v4, %v5582_v4  ;;  %v11249_v4 = vld [vmem:[%s14398_s13 + $0x368] ss:$16 sps:$4 sm:$0xff]  }
 0xc88   : > { %v10714_v11 = vpop.f32.mrf.mxu0 }
 0xc89   : > { %5719 = vmatmul.mubr.bf16.vlgmr.msra.gmra.mxu0 %v5588_v39  ;;  %10719 = vmatmul.mubr.msk.bf16.vlgmr.msra.gmra.mxu1 %vm4247_vm2, %v9192_v63  ;;  %v5917_v63 = vlaneseq }
 0xc8a   : > { %5873 = vmatpush1.bf16.msra.mxu1 %v11150_v5  ;;  %v5585_v38 = vpop.f32.mrf.mxu0  ;;  %5904 = vmatprep.mubr.bf16.mxu1 %v11654_v35 }
 0xc8b   : > { %5874 = vmatprep.subr.bf16.mxu1 %v11155_v44  ;;  %5980 = vmatprep.mubr.bf16.mxu0 %v11654_v35  ;;  %v13461_v5 = vshrl.u32 %v5917_v63, 7  ;;  %v5915_v44 = vld [vmem:[%s14396_s11] sm:$0x3]  ;;  %v11275_v63 = vld [vmem:[%s14398_s13 + $0xec] ss:$16 sps:$4 sm:$0xff]  }
 0xc8c   : > { %v10715_v45 = vpop.f32.mrf.mxu0 }
 0xc8d   : > { %v13464_v39 = vsub.s32 0, %v13461_v5  ;;  %v5923_v11 = vsub.s32 1, %v13461_v5 }
 0xc8e   : > { %5875 = vmatpush1.bf16.msra.mxu1 %v11153_v25 }
 0xc8f   : > { %5876 = vmatprep.subr.bf16.mxu1 %v11158_v31  ;;  %v5920_v25 = vrot.slane %v5915_v44, %v13464_v39  ;;  %v5924_v45 = vrot.slane %v5915_v44, %v5923_v11 }
 0xc92   : > { %5877 = vmatpush1.bf16.msra.mxu1 %v11156_v3 }
 0xc93   : > { %5878 = vmatprep.subr.bf16.mxu1 %v11161_v22 }
 0xc96   : > { %5879 = vmatpush1.bf16.msra.mxu1 %v11159_v14 }
 0xc97   : > { %5880 = vmatprep.subr.bf16.mxu1 %v11164_v40 }
 0xc9a   : > { %5881 = vmatpush1.bf16.msra.mxu1 %v11162_v21 }
 0xc9b   : > { %5882 = vmatprep.subr.bf16.mxu1 %v11167_v32 }
 0xc9e   : > { %5883 = vmatpush1.bf16.msra.mxu1 %v11165_v54 }
 0xc9f   : > { %5884 = vmatprep.subr.bf16.mxu1 %v11170_v43 }
 0xca2   : > { %5885 = vmatpush1.bf16.msra.mxu1 %v11168_v50 }
 0xca3   : > { %5886 = vmatprep.subr.bf16.mxu1 %v11173_v15 }
 0xca6   : > { %5887 = vmatpush1.bf16.msra.mxu1 %v11171_v52 }
 0xca7   : > { %6529 = vmatprep.subr.bf16.mxu1 %v11179_v30  ;;  %v11218_v30 = vld [vmem:[%s14398_s13 + $0x204] ss:$16 sps:$4 sm:$0xff]  }
 0xd41   : > { %v5534_v58 = vpop.f32.mrf.mxu1 }
 0xd42   : > { %v5541_v23 = vadd.f32 %v5534_v58, %v5355_v59  ;;  %v11219_v59 = vld [vmem:[%s14398_s13 + $0x208] ss:$16 sps:$4 sm:$0xff]  }
 0xd43   : > { %v5536_v20 = vpop.f32.mrf.mxu1 }
 0xd44   : > { %v5542_v2 = vadd.f32 %v5536_v20, %v5356_v1  ;;  %v11239_v1 = vld [vmem:[%s14398_s13 + $0x3ac] ss:$16 sps:$4 sm:$0xff]   ;;  %v5937_v20 = vld [vmem:[%s14397_s12] sm:$0x1] }
 0xd45   : > { %v5538_v17 = vpop.f32.mrf.mxu1 }
 0xd46   : > { %v9228_v17 = vld [vmem:[%s14397_s12 + $0x1] sm:$0x1] }
 0xd47   : > { %v5539_v18 = vpop.f32.mrf.mxu1 }
 0xd48   : > { %v11174_v18 = vld [vmem:[%s14398_s13 + $0x2e0] ss:$16 sps:$4 sm:$0xff]  }
 0xd49   : > { %v5720_v55 = vpop.f32.mrf.mxu0  ;;  %v5768_v47 = vpop.f32.mrf.mxu1 }
 0xd4a   : > { %v13379_v27 = vadd.f32 %v5720_v55, %v5541_v23  ;;  %v5774_v62 = vpack.c.bf16 %v5768_v47, %v5768_v47  ;;  %v11182_v55 = vld [vmem:[%s14398_s13 + $0x2c4] ss:$16 sps:$4 sm:$0xff]   ;;  %v11180_v47 = vld [vmem:[%s14398_s13 + $0x2c0] ss:$16 sps:$4 sm:$0xff]  }
 0xd4b   : > { %v5722_v0 = vpop.f32.mrf.mxu0  ;;  %v10720_v48 = vpop.f32.mrf.mxu1 }
 0xd4c   : > { %v13381_v60 = vadd.f32 %v5722_v0, %v5542_v2  ;;  %5905 = vmatmul.mubr.bf16.vlgmr.msra.gmra.mxu1 %v5774_v62  ;;  %v11176_v2 = vld [vmem:[%s14398_s13 + $0x2e4] ss:$16 sps:$4 sm:$0xff]   ;;  %v11186_v62 = vld [vmem:[%s14398_s13 + $0x2a0] ss:$16 sps:$4 sm:$0xff]  }
 0xd4d   : > { %v5771_v6 = vpop.f32.mrf.mxu1  ;;  %v5724_v7 = vpop.f32.mrf.mxu0  ;;  %6530 = vmatpush1.bf16.msra.mxu1 %v11177_v56  ;;  %v11194_v0 = vld [vmem:[%s14398_s13 + $0x284] ss:$16 sps:$4 sm:$0xff]   ;;  %v11192_v48 = vld [vmem:[%s14398_s13 + $0x280] ss:$16 sps:$4 sm:$0xff]  }
 0xd4e   : > { %6531 = vmatprep.subr.bf16.mxu1 %v11185_v8  ;;  %v11198_v6 = vld [vmem:[%s14398_s13 + $0x260] ss:$16 sps:$4 sm:$0xff]   ;;  %v11206_v7 = vld [vmem:[%s14398_s13 + $0x244] ss:$16 sps:$4 sm:$0xff]  }
 0xd4f   : > { %v10721_v57 = vpop.f32.mrf.mxu1  ;;  %v5725_v10 = vpop.f32.mrf.mxu0  ;;  %v11210_v56 = vld [vmem:[%s14398_s13 + $0x220] ss:$16 sps:$4 sm:$0xff]  }
 0xd50   : > { %v11204_v57 = vld [vmem:[%s14398_s13 + $0x240] ss:$16 sps:$4 sm:$0xff]   ;;  %v11212_v10 = vld [vmem:[%s14398_s13 + $0x224] ss:$16 sps:$4 sm:$0xff]  }
 0xd51   : > { %6532 = vmatpush1.bf16.msra.mxu1 %v11183_v9  ;;  %v11216_v8 = vld [vmem:[%s14398_s13 + $0x200] ss:$16 sps:$4 sm:$0xff]   ;;  %v11224_v9 = vld [vmem:[%s14398_s13 + $0x3e4] ss:$16 sps:$4 sm:$0xff]  }
 0xd52   : > { %6533 = vmatprep.subr.bf16.mxu1 %v11191_v28  ;;  %v11222_v28 = vld [vmem:[%s14398_s13 + $0x3e0] ss:$16 sps:$4 sm:$0xff]  }
 0xd55   : > { %6534 = vmatpush1.bf16.msra.mxu1 %v11189_v24  ;;  %v11230_v24 = vld [vmem:[%s14398_s13 + $0x3c4] ss:$16 sps:$4 sm:$0xff]  }
 0xd56   : > { %6535 = vmatprep.subr.bf16.mxu1 %v11197_v46  ;;  %v11228_v46 = vld [vmem:[%s14398_s13 + $0x3c0] ss:$16 sps:$4 sm:$0xff]  }
 0xd59   : > { %6536 = vmatpush1.bf16.msra.mxu1 %v11195_v33  ;;  %v11236_v33 = vld [vmem:[%s14398_s13 + $0x3a4] ss:$16 sps:$4 sm:$0xff]  }
 0xd5a   : > { %6537 = vmatprep.subr.bf16.mxu1 %v11203_v12  ;;  %v11234_v12 = vld [vmem:[%s14398_s13 + $0x3a0] ss:$16 sps:$4 sm:$0xff]  }
 0xd5d   : > { %6538 = vmatpush1.bf16.msra.mxu1 %v11201_v34  ;;  %v11242_v34 = vld [vmem:[%s14398_s13 + $0x384] ss:$16 sps:$4 sm:$0xff]  }
 0xd5e   : > { %6539 = vmatprep.subr.bf16.mxu1 %v11209_v29  ;;  %v11240_v29 = vld [vmem:[%s14398_s13 + $0x380] ss:$16 sps:$4 sm:$0xff]  }
 0xd61   : > { %6540 = vmatpush1.bf16.msra.mxu1 %v11207_v36  ;;  %v11248_v36 = vld [vmem:[%s14398_s13 + $0x364] ss:$16 sps:$4 sm:$0xff]  }
 0xd62   : > { %6541 = vmatprep.subr.bf16.mxu1 %v11215_v53  ;;  %v11246_v53 = vld [vmem:[%s14398_s13 + $0x360] ss:$16 sps:$4 sm:$0xff]  }
 0xd65   : > { %6542 = vmatpush1.bf16.msra.mxu1 %v11213_v51  ;;  %v11254_v51 = vld [vmem:[%s14398_s13 + $0x344] ss:$16 sps:$4 sm:$0xff]  }
 0xd66   : > { %6543 = vmatprep.subr.bf16.mxu1 %v11221_v41  ;;  %v11257_v41 = vld [vmem:[%s14398_s13 + $0x34c] ss:$16 sps:$4 sm:$0xff]  }
 0xd69   : > { %6544 = vmatpush1.bf16.msra.mxu1 %v11219_v59  ;;  %v11252_v59 = vld [vmem:[%s14398_s13 + $0x340] ss:$16 sps:$4 sm:$0xff]  }
 0xd6a   : > { %6545 = vmatprep.subr.bf16.mxu1 %v11227_v42  ;;  %v11255_v42 = vld [vmem:[%s14398_s13 + $0x348] ss:$16 sps:$4 sm:$0xff]  }
 0xd6d   : > { %6546 = vmatpush2.bf16.msra.mxu1 %v11225_v16  ;;  %v11258_v16 = vld [vmem:[%s14398_s13 + $0x320] ss:$16 sps:$4 sm:$0xff]  }
 0xd6e   : > { %6547 = vmatprep.subr.bf16.mxu1 %v11233_v37  ;;  %v11260_v37 = vld [vmem:[%s14398_s13 + $0x324] ss:$16 sps:$4 sm:$0xff]  }
 0xd71   : > { %6548 = vmatpush2.bf16.msra.mxu1 %v11231_v61  ;;  %v11261_v61 = vld [vmem:[%s14398_s13 + $0x328] ss:$16 sps:$4 sm:$0xff]  }
 0xd72   : > { %6549 = vmatprep.subr.bf16.mxu1 %v11239_v1  ;;  %v11263_v1 = vld [vmem:[%s14398_s13 + $0x32c] ss:$16 sps:$4 sm:$0xff]  }
 0xd75   : > { %6550 = vmatpush2.bf16.msra.mxu1 %v11237_v13  ;;  %v11266_v13 = vld [vmem:[%s14398_s13 + $0x304] ss:$16 sps:$4 sm:$0xff]  }
 0xd76   : > { %6551 = vmatprep.subr.bf16.mxu1 %v11245_v49  ;;  %v11269_v49 = vld [vmem:[%s14398_s13 + $0x30c] ss:$16 sps:$4 sm:$0xff]  }
 0xd79   : > { %6552 = vmatpush2.bf16.msra.mxu1 %v11243_v26  ;;  %v11264_v26 = vld [vmem:[%s14398_s13 + $0x300] ss:$16 sps:$4 sm:$0xff]  }
 0xd7a   : > { %6553 = vmatprep.subr.bf16.mxu1 %v11251_v19  ;;  %v11267_v19 = vld [vmem:[%s14398_s13 + $0x308] ss:$16 sps:$4 sm:$0xff]  }
 0xd7d   : > { %6554 = vmatpush2.bf16.msra.mxu1 %v11249_v4  ;;  %v11272_v4 = vld [vmem:[%s14398_s13 + $0xe4] ss:$16 sps:$4 sm:$0xff]  }
 0xd7e   : > { %6555 = vmatprep.subr.bf16.mxu1 %v11257_v41  ;;  %v11326_v41 = vld [vmem:[%s14398_s13 + $0x1c4] ss:$16 sps:$4 sm:$0xff]  }
 0xd81   : > { %6556 = vmatpush2.bf16.msra.mxu1 %v11255_v42  ;;  %v11324_v42 = vld [vmem:[%s14398_s13 + $0x1c0] ss:$16 sps:$4 sm:$0xff]  }
 0xd82   : > { %6557 = vmatprep.subr.bf16.mxu1 %v11263_v1  ;;  %v11330_v1 = vld [vmem:[%s14398_s13 + $0x1a0] ss:$16 sps:$4 sm:$0xff]  }
 0xd85   : > { %6558 = vmatpush2.bf16.msra.mxu1 %v11261_v61  ;;  %v11335_v61 = vld [vmem:[%s14398_s13 + $0x1ac] ss:$16 sps:$4 sm:$0xff]  }
 0xd86   : > { %6559 = vmatprep.subr.bf16.mxu1 %v11269_v49  ;;  %v11338_v49 = vld [vmem:[%s14398_s13 + $0x184] ss:$16 sps:$4 sm:$0xff]  }
 0xd89   : > { %6560 = vmatpush2.bf16.msra.mxu1 %v11267_v19  ;;  %v11336_v19 = vld [vmem:[%s14398_s13 + $0x180] ss:$16 sps:$4 sm:$0xff]  }
 0xd8a   : > { %6931 = vmatprep.subr.bf16.mxu1 %v11275_v63  ;;  %v11344_v63 = vld [vmem:[%s14398_s13 + $0x164] ss:$16 sps:$4 sm:$0xff]  }
 0xe0c   : > { %v5906_v38 = vpop.f32.mrf.mxu1 }
 0xe0d   : > { %v5913_v31 = vadd.f32 %v5906_v38, %v13379_v27  ;;  %v11188_v27 = vld [vmem:[%s14398_s13 + $0x2a4] ss:$16 sps:$4 sm:$0xff]  }
 0xe0e   : > { %v5908_v3 = vpop.f32.mrf.mxu1 }
 0xe0f   : > { %v5927_v22 = vadd.f32 %v5920_v25, %v5913_v31  ;;  %v5914_v14 = vadd.f32 %v5908_v3, %v13381_v60  ;;  %v11200_v60 = vld [vmem:[%s14398_s13 + $0x264] ss:$16 sps:$4 sm:$0xff]  }
 0xe10   : > { %v5910_v40 = vpop.f32.mrf.mxu1 }
 0xe11   : > { %vm5929_vm3 = vcmp.ge.f32.partialorder %v5927_v22, 0.0  ;;  %v5931_v21 = vmul.f32 0.2, %v5927_v22  ;;  %v5928_v32 = vadd.f32 %v5924_v45, %v5914_v14  ;;  %v11270_v14 = vld [vmem:[%s14398_s13 + $0xe0] ss:$16 sps:$4 sm:$0xff]  }
 0xe12   : > { %v5911_v54 = vpop.f32.mrf.mxu1  ;;  %v11273_v40 = vld [vmem:[%s14398_s13 + $0xe8] ss:$16 sps:$4 sm:$0xff]  }
 0xe13   : > { %vm5930_vm4 = vcmp.ge.f32.partialorder %v5928_v32, 0.0  ;;  %v5932_v43 = vmul.f32 0.2, %v5928_v32  ;;  %v5933_v50 = vsel %vm5929_vm3, %v5927_v22, %v5931_v21  ;;  %v11281_v54 = vld [vmem:[%s14398_s13 + $0xcc] ss:$16 sps:$4 sm:$0xff]  }
 0xe14   : > { %v5935_v52 = vpack.c.bf16 %v5933_v50, %v5933_v50 }
 0xe15   : > { %v5934_v15 = vsel %vm5930_vm4, %v5928_v32, %v5932_v43  ;;  %v11278_v32 = vld [vmem:[%s14398_s13 + $0xc4] ss:$16 sps:$4 sm:$0xff]  }
 0xe16   : > { %v13475_v58 = vpack.c.bf16 %v5934_v15, %v5934_v15  ;;  %v13480_v23 = vsel %vm764_vm0, %v5935_v52, 0  ;;  %v11276_v15 = vld [vmem:[%s14398_s13 + $0xc0] ss:$16 sps:$4 sm:$0xff]  }
 0xe18   : > { %9226 = vmatprep.subr.msk.bf16.mxu0 %vm764_vm0, %v13475_v58 }
 0xe19   : > { %5963 = vmatpush1.bf16.msra.mxu0 %v13480_v23 }
 0xe1a   : > { %9229 = vmatprep.subr.msk.bf16.mxu0 %vm764_vm0, %v13475_v58 }
 0xe1c   : > { %9227 = vmatmul.mubr.msk.bf16.vlgmr.msra.gmra.mxu0 %vm5938_vm5, %v5937_v20  ;;  %v11279_v20 = vld [vmem:[%s14398_s13 + $0xc8] ss:$16 sps:$4 sm:$0xff]  }
 0xe1d   : > { %6075 = vmatpush1.bf16.msra.mxu0 %v13480_v23  ;;  %6092 = vmatprep.mubr.bf16.mxu0 %v11654_v35 }
 0xe1e   : > { %6488 = vmatprep.subr.bf16.mxu0 %v11176_v2  ;;  %v11284_v2 = vld [vmem:[%s14398_s13 + $0xa4] ss:$16 sps:$4 sm:$0xff]  }
 0xe24   : > { %9230 = vmatmul.mubr.msk.bf16.vlgmr.msra.gmra.mxu0 %vm5938_vm5, %v9228_v17  ;;  %v11287_v17 = vld [vmem:[%s14398_s13 + $0xac] ss:$16 sps:$4 sm:$0xff]  }
 0xe25   : > { %6489 = vmatpush1.bf16.msra.mxu0 %v11174_v18  ;;  %v11282_v18 = vld [vmem:[%s14398_s13 + $0xa0] ss:$16 sps:$4 sm:$0xff]  }
 0xe26   : > { %6490 = vmatprep.subr.bf16.mxu0 %v11182_v55  ;;  %v11285_v55 = vld [vmem:[%s14398_s13 + $0xa8] ss:$16 sps:$4 sm:$0xff]  }
 0xe29   : > { %6491 = vmatpush1.bf16.msra.mxu0 %v11180_v47  ;;  %v11290_v47 = vld [vmem:[%s14398_s13 + $0x84] ss:$16 sps:$4 sm:$0xff]  }
 0xe2a   : > { %6492 = vmatprep.subr.bf16.mxu0 %v11188_v27  ;;  %v11293_v27 = vld [vmem:[%s14398_s13 + $0x8c] ss:$16 sps:$4 sm:$0xff]  }
 0xe2d   : > { %6493 = vmatpush1.bf16.msra.mxu0 %v11186_v62  ;;  %v11288_v62 = vld [vmem:[%s14398_s13 + $0x80] ss:$16 sps:$4 sm:$0xff]  }
 0xe2e   : > { %6494 = vmatprep.subr.bf16.mxu0 %v11194_v0  ;;  %v11291_v0 = vld [vmem:[%s14398_s13 + $0x88] ss:$16 sps:$4 sm:$0xff]  }
 0xe31   : > { %6495 = vmatpush1.bf16.msra.mxu0 %v11192_v48  ;;  %v11296_v48 = vld [vmem:[%s14398_s13 + $0x64] ss:$16 sps:$4 sm:$0xff]  }
 0xe32   : > { %6496 = vmatprep.subr.bf16.mxu0 %v11200_v60  ;;  %v11299_v60 = vld [vmem:[%s14398_s13 + $0x6c] ss:$16 sps:$4 sm:$0xff]  }
 0xe35   : > { %6497 = vmatpush1.bf16.msra.mxu0 %v11198_v6  ;;  %v11294_v6 = vld [vmem:[%s14398_s13 + $0x60] ss:$16 sps:$4 sm:$0xff]  }
 0xe36   : > { %6498 = vmatprep.subr.bf16.mxu0 %v11206_v7  ;;  %v11297_v7 = vld [vmem:[%s14398_s13 + $0x68] ss:$16 sps:$4 sm:$0xff]  }
 0xe39   : > { %6499 = vmatpush1.bf16.msra.mxu0 %v11204_v57  ;;  %v11302_v57 = vld [vmem:[%s14398_s13 + $0x44] ss:$16 sps:$4 sm:$0xff]  }
 0xe3a   : > { %6500 = vmatprep.subr.bf16.mxu0 %v11212_v10  ;;  %v11305_v10 = vld [vmem:[%s14398_s13 + $0x4c] ss:$16 sps:$4 sm:$0xff]  }
 0xe3d   : > { %6501 = vmatpush1.bf16.msra.mxu0 %v11210_v56  ;;  %v11300_v56 = vld [vmem:[%s14398_s13 + $0x40] ss:$16 sps:$4 sm:$0xff]  }
 0xe3e   : > { %6502 = vmatprep.subr.bf16.mxu0 %v11218_v30  ;;  %v11303_v30 = vld [vmem:[%s14398_s13 + $0x48] ss:$16 sps:$4 sm:$0xff]  }
 0xe41   : > { %6503 = vmatpush1.bf16.msra.mxu0 %v11216_v8  ;;  %v11308_v8 = vld [vmem:[%s14398_s13 + $0x24] ss:$16 sps:$4 sm:$0xff]  }
 0xe42   : > { %6504 = vmatprep.subr.bf16.mxu0 %v11224_v9  ;;  %v11311_v9 = vld [vmem:[%s14398_s13 + $0x2c] ss:$16 sps:$4 sm:$0xff]  }
 0xe45   : > { %6505 = vmatpush2.bf16.msra.mxu0 %v11222_v28  ;;  %v11306_v28 = vld [vmem:[%s14398_s13 + $0x20] ss:$16 sps:$4 sm:$0xff]  }
 0xe46   : > { %6506 = vmatprep.subr.bf16.mxu0 %v11230_v24  ;;  %v11309_v24 = vld [vmem:[%s14398_s13 + $0x28] ss:$16 sps:$4 sm:$0xff]  }
 0xe49   : > { %6507 = vmatpush2.bf16.msra.mxu0 %v11228_v46  ;;  %v11314_v46 = vld [vmem:[%s14398_s13 + $0x4] ss:$16 sps:$4 sm:$0xff]  }
 0xe4a   : > { %6508 = vmatprep.subr.bf16.mxu0 %v11236_v33  ;;  %v11317_v33 = vld [vmem:[%s14398_s13 + $0xc] ss:$16 sps:$4 sm:$0xff]  }
 0xe4d   : > { %6509 = vmatpush2.bf16.msra.mxu0 %v11234_v12  ;;  %v11312_v12 = vld [vmem:[%s14398_s13] ss:$16 sps:$4 sm:$0xff]  }
 0xe4e   : > { %6510 = vmatprep.subr.bf16.mxu0 %v11242_v34  ;;  %v11315_v34 = vld [vmem:[%s14398_s13 + $0x8] ss:$16 sps:$4 sm:$0xff]  }
 0xe51   : > { %6511 = vmatpush2.bf16.msra.mxu0 %v11240_v29  ;;  %v11320_v29 = vld [vmem:[%s14398_s13 + $0x1e4] ss:$16 sps:$4 sm:$0xff]  }
 0xe52   : > { %6512 = vmatprep.subr.bf16.mxu0 %v11248_v36  ;;  %v11323_v36 = vld [vmem:[%s14398_s13 + $0x1ec] ss:$16 sps:$4 sm:$0xff]  }
 0xe55   : > { %6513 = vmatpush2.bf16.msra.mxu0 %v11246_v53  ;;  %v11318_v53 = vld [vmem:[%s14398_s13 + $0x1e0] ss:$16 sps:$4 sm:$0xff]  }
 0xe56   : > { %6514 = vmatprep.subr.bf16.mxu0 %v11254_v51  ;;  %v11321_v51 = vld [vmem:[%s14398_s13 + $0x1e8] ss:$16 sps:$4 sm:$0xff]  }
 0xe59   : > { %6515 = vmatpush2.bf16.msra.mxu0 %v11252_v59  ;;  %v11329_v59 = vld [vmem:[%s14398_s13 + $0x1cc] ss:$16 sps:$4 sm:$0xff]  }
 0xe5a   : > { %6516 = vmatprep.subr.bf16.mxu0 %v11260_v37  ;;  %v11332_v37 = vld [vmem:[%s14398_s13 + $0x1a4] ss:$16 sps:$4 sm:$0xff]  }
 0xe5d   : > { %6517 = vmatpush2.bf16.msra.mxu0 %v11258_v16  ;;  %v11327_v16 = vld [vmem:[%s14398_s13 + $0x1c8] ss:$16 sps:$4 sm:$0xff]  }
 0xe5e   : > { %6518 = vmatprep.subr.bf16.mxu0 %v11266_v13  ;;  %v11333_v13 = vld [vmem:[%s14398_s13 + $0x1a8] ss:$16 sps:$4 sm:$0xff]  }
 0xe61   : > { %6519 = vmatpush2.bf16.msra.mxu0 %v11264_v26  ;;  %v11341_v26 = vld [vmem:[%s14398_s13 + $0x18c] ss:$16 sps:$4 sm:$0xff]  }
 0xe62   : > { %6890 = vmatprep.subr.bf16.mxu0 %v11272_v4  ;;  %v11339_v4 = vld [vmem:[%s14398_s13 + $0x188] ss:$16 sps:$4 sm:$0xff]  }
 0xedc   : > { %v13615_v44 = vpop.f32.mrf.mxu0 }
 0xede   : > { %v5984_v25 = vpop.f32.mrf.mxu0 }
 0xedf   : > { %v5990_v52 = vpack.c.bf16 %v5984_v25, %v5984_v25  ;;  %v11347_v25 = vld [vmem:[%s14398_s13 + $0x16c] ss:$16 sps:$4 sm:$0xff]  }
 0xee0   : > { %v5986_v38 = vpop.f32.mrf.mxu0 }
 0xee1   : > { %v11342_v38 = vld [vmem:[%s14398_s13 + $0x160] ss:$16 sps:$4 sm:$0xff]  }
 0xee2   : > { %v5987_v31 = vpop.f32.mrf.mxu0 }
 0xee3   : > { %v11345_v31 = vld [vmem:[%s14398_s13 + $0x168] ss:$16 sps:$4 sm:$0xff]  }
 0xee4   : > { %v6094_v45 = vpop.f32.mrf.mxu0 }
 0xee5   : > { %v6101_v21 = vpack.c.bf16 %v6094_v45, %v6094_v45  ;;  %v11350_v45 = vld [vmem:[%s14398_s13 + $0x144] ss:$16 sps:$4 sm:$0xff]  }
 0xee6   : > { %v6096_v3 = vpop.f32.mrf.mxu0 }
 0xee7   : > { %v6102_v22 = vpack.c.bf16 %v6096_v3, %v6096_v3  ;;  %v11353_v3 = vld [vmem:[%s14398_s13 + $0x14c] ss:$16 sps:$4 sm:$0xff]  }
 0xee8   : > { %v6098_v43 = vpop.f32.mrf.mxu0 }
 0xee9   : > { %6520 = vmatprep.mubr.bf16.mxu0 %v6102_v22  ;;  %6561 = vmatprep.mubr.bf16.mxu1 %v6102_v22  ;;  %v11348_v22 = vld [vmem:[%s14398_s13 + $0x140] ss:$16 sps:$4 sm:$0xff]   ;;  %v11362_v43 = vld [vmem:[%s14398_s13 + $0x104] ss:$16 sps:$4 sm:$0xff]  }
 0xeea   : > { %6521 = vmatmul.mubr.bf16.vlgmr.msra.gmra.mxu0 %v6101_v21  ;;  %6562 = vmatmul.mubr.bf16.vlgmr.msra.gmra.mxu1 %v6101_v21  ;;  %v6099_v50 = vpop.f32.mrf.mxu0  ;;  %v11359_v21 = vld [vmem:[%s14398_s13 + $0x12c] ss:$16 sps:$4 sm:$0xff]  }
 0xeeb   : > { %6891 = vmatpush1.bf16.msra.mxu0 %v11270_v14  ;;  %6932 = vmatpush1.bf16.msra.mxu1 %v11273_v40  ;;  %v11351_v14 = vld [vmem:[%s14398_s13 + $0x148] ss:$16 sps:$4 sm:$0xff]   ;;  %v11356_v40 = vld [vmem:[%s14398_s13 + $0x124] ss:$16 sps:$4 sm:$0xff]   ;;  %v11365_v50 = vld [vmem:[%s14398_s13 + $0x10c] ss:$16 sps:$4 sm:$0xff]  }
 0xeec   : > { %6892 = vmatprep.subr.bf16.mxu0 %v11278_v32  ;;  %6933 = vmatprep.subr.bf16.mxu1 %v11281_v54  ;;  %v11354_v32 = vld [vmem:[%s14398_s13 + $0x120] ss:$16 sps:$4 sm:$0xff]   ;;  %v11357_v54 = vld [vmem:[%s14398_s13 + $0x128] ss:$16 sps:$4 sm:$0xff]  }
 0xeed   : > { %6922 = vmatprep.mubr.bf16.mxu0 %v5990_v52  ;;  %6963 = vmatprep.mubr.bf16.mxu1 %v5990_v52  ;;  %v11360_v52 = vld [vmem:[%s14398_s13 + $0x100] ss:$16 sps:$4 sm:$0xff]  }
 0xeef   : > { %6893 = vmatpush1.bf16.msra.mxu0 %v11276_v15  ;;  %6934 = vmatpush1.bf16.msra.mxu1 %v11279_v20  ;;  %v11363_v15 = vld [vmem:[%s14398_s13 + $0x108] ss:$16 sps:$4 sm:$0xff]   ;;  %v5989_v20 = vpack.c.bf16 %v13615_v44, %v13615_v44  ;;  %v9423_v44 = vld [vmem:[%s14397_s12 + $0x2] sm:$0x1] }
 0xef0   : > { %6894 = vmatprep.subr.bf16.mxu0 %v11284_v2  ;;  %6935 = vmatprep.subr.bf16.mxu1 %v11287_v17  ;;  %v11368_v2 = vld [vmem:[%s14398_s13 + $0x4e4] ss:$16 sps:$4 sm:$0xff]   ;;  %v11366_v17 = vld [vmem:[%s14398_s13 + $0x4e0] ss:$16 sps:$4 sm:$0xff]  }
 0xef3   : > { %6895 = vmatpush1.bf16.msra.mxu0 %v11282_v18  ;;  %6936 = vmatpush1.bf16.msra.mxu1 %v11285_v55  ;;  %v11371_v18 = vld [vmem:[%s14398_s13 + $0x4c4] ss:$16 sps:$4 sm:$0xff]   ;;  %v11414_v55 = vld [vmem:[%s14398_s13 + $0x4e8] ss:$16 sps:$4 sm:$0xff]  }
 0xef4   : > { %6896 = vmatprep.subr.bf16.mxu0 %v11290_v47  ;;  %6937 = vmatprep.subr.bf16.mxu1 %v11293_v27  ;;  %v11416_v47 = vld [vmem:[%s14398_s13 + $0x4ec] ss:$16 sps:$4 sm:$0xff]  }
 0xef5   : > { %v11419_v27 = vld [vmem:[%s14398_s13 + $0x4cc] ss:$16 sps:$4 sm:$0xff]  }
 0xef7   : > { %6897 = vmatpush1.bf16.msra.mxu0 %v11288_v62  ;;  %6938 = vmatpush1.bf16.msra.mxu1 %v11291_v0  ;;  %v11369_v62 = vld [vmem:[%s14398_s13 + $0x4c0] ss:$16 sps:$4 sm:$0xff]   ;;  %v11417_v0 = vld [vmem:[%s14398_s13 + $0x4c8] ss:$16 sps:$4 sm:$0xff]  }
 0xef8   : > { %6898 = vmatprep.subr.bf16.mxu0 %v11296_v48  ;;  %6939 = vmatprep.subr.bf16.mxu1 %v11299_v60  ;;  %v11374_v48 = vld [vmem:[%s14398_s13 + $0x4a4] ss:$16 sps:$4 sm:$0xff]   ;;  %v11422_v60 = vld [vmem:[%s14398_s13 + $0x4ac] ss:$16 sps:$4 sm:$0xff]  }
 0xefb   : > { %6899 = vmatpush1.bf16.msra.mxu0 %v11294_v6  ;;  %6940 = vmatpush1.bf16.msra.mxu1 %v11297_v7  ;;  %v11372_v6 = vld [vmem:[%s14398_s13 + $0x4a0] ss:$16 sps:$4 sm:$0xff]   ;;  %v11420_v7 = vld [vmem:[%s14398_s13 + $0x4a8] ss:$16 sps:$4 sm:$0xff]  }
 0xefc   : > { %6900 = vmatprep.subr.bf16.mxu0 %v11302_v57  ;;  %6941 = vmatprep.subr.bf16.mxu1 %v11305_v10  ;;  %v11377_v57 = vld [vmem:[%s14398_s13 + $0x484] ss:$16 sps:$4 sm:$0xff]   ;;  %v11425_v10 = vld [vmem:[%s14398_s13 + $0x48c] ss:$16 sps:$4 sm:$0xff]  }
 0xeff   : > { %6901 = vmatpush1.bf16.msra.mxu0 %v11300_v56  ;;  %6942 = vmatpush1.bf16.msra.mxu1 %v11303_v30  ;;  %v11375_v56 = vld [vmem:[%s14398_s13 + $0x480] ss:$16 sps:$4 sm:$0xff]   ;;  %v11423_v30 = vld [vmem:[%s14398_s13 + $0x488] ss:$16 sps:$4 sm:$0xff]  }
 0xf00   : > { %6902 = vmatprep.subr.bf16.mxu0 %v11308_v8  ;;  %6943 = vmatprep.subr.bf16.mxu1 %v11311_v9  ;;  %v11380_v8 = vld [vmem:[%s14398_s13 + $0x464] ss:$16 sps:$4 sm:$0xff]   ;;  %v11428_v9 = vld [vmem:[%s14398_s13 + $0x46c] ss:$16 sps:$4 sm:$0xff]  }
 0xf03   : > { %6903 = vmatpush1.bf16.msra.mxu0 %v11306_v28  ;;  %6944 = vmatpush1.bf16.msra.mxu1 %v11309_v24  ;;  %v11378_v28 = vld [vmem:[%s14398_s13 + $0x460] ss:$16 sps:$4 sm:$0xff]   ;;  %v11426_v24 = vld [vmem:[%s14398_s13 + $0x468] ss:$16 sps:$4 sm:$0xff]  }
 0xf04   : > { %6904 = vmatprep.subr.bf16.mxu0 %v11314_v46  ;;  %6945 = vmatprep.subr.bf16.mxu1 %v11317_v33  ;;  %v11383_v46 = vld [vmem:[%s14398_s13 + $0x444] ss:$16 sps:$4 sm:$0xff]   ;;  %v11431_v33 = vld [vmem:[%s14398_s13 + $0x44c] ss:$16 sps:$4 sm:$0xff]  }
 0xf07   : > { %6905 = vmatpush1.bf16.msra.mxu0 %v11312_v12  ;;  %6946 = vmatpush1.bf16.msra.mxu1 %v11315_v34  ;;  %v11381_v12 = vld [vmem:[%s14398_s13 + $0x440] ss:$16 sps:$4 sm:$0xff]   ;;  %v11429_v34 = vld [vmem:[%s14398_s13 + $0x448] ss:$16 sps:$4 sm:$0xff]  }
 0xf08   : > { %6906 = vmatprep.subr.bf16.mxu0 %v11320_v29  ;;  %6947 = vmatprep.subr.bf16.mxu1 %v11323_v36  ;;  %v11386_v29 = vld [vmem:[%s14398_s13 + $0x424] ss:$16 sps:$4 sm:$0xff]   ;;  %v11434_v36 = vld [vmem:[%s14398_s13 + $0x42c] ss:$16 sps:$4 sm:$0xff]  }
 0xf0b   : > { %6907 = vmatpush2.bf16.msra.mxu0 %v11318_v53  ;;  %6948 = vmatpush2.bf16.msra.mxu1 %v11321_v51  ;;  %v11384_v53 = vld [vmem:[%s14398_s13 + $0x420] ss:$16 sps:$4 sm:$0xff]   ;;  %v11432_v51 = vld [vmem:[%s14398_s13 + $0x428] ss:$16 sps:$4 sm:$0xff]  }
 0xf0c   : > { %6908 = vmatprep.subr.bf16.mxu0 %v11326_v41  ;;  %6949 = vmatprep.subr.bf16.mxu1 %v11329_v59  ;;  %v11389_v41 = vld [vmem:[%s14398_s13 + $0x404] ss:$16 sps:$4 sm:$0xff]   ;;  %v11437_v59 = vld [vmem:[%s14398_s13 + $0x40c] ss:$16 sps:$4 sm:$0xff]  }
 0xf0f   : > { %6909 = vmatpush2.bf16.msra.mxu0 %v11324_v42  ;;  %6950 = vmatpush2.bf16.msra.mxu1 %v11327_v16  ;;  %v11387_v42 = vld [vmem:[%s14398_s13 + $0x400] ss:$16 sps:$4 sm:$0xff]   ;;  %v11435_v16 = vld [vmem:[%s14398_s13 + $0x408] ss:$16 sps:$4 sm:$0xff]  }
 0xf10   : > { %6910 = vmatprep.subr.bf16.mxu0 %v11332_v37  ;;  %6951 = vmatprep.subr.bf16.mxu1 %v11335_v61  ;;  %v11392_v37 = vld [vmem:[%s14398_s13 + $0x5e4] ss:$16 sps:$4 sm:$0xff]   ;;  %v11440_v61 = vld [vmem:[%s14398_s13 + $0x5ec] ss:$16 sps:$4 sm:$0xff]  }
 0xf13   : > { %6911 = vmatpush2.bf16.msra.mxu0 %v11330_v1  ;;  %6952 = vmatpush2.bf16.msra.mxu1 %v11333_v13  ;;  %v11390_v1 = vld [vmem:[%s14398_s13 + $0x5e0] ss:$16 sps:$4 sm:$0xff]   ;;  %v11438_v13 = vld [vmem:[%s14398_s13 + $0x5e8] ss:$16 sps:$4 sm:$0xff]  }
 0xf14   : > { %6912 = vmatprep.subr.bf16.mxu0 %v11338_v49  ;;  %6953 = vmatprep.subr.bf16.mxu1 %v11341_v26  ;;  %v11395_v49 = vld [vmem:[%s14398_s13 + $0x5c4] ss:$16 sps:$4 sm:$0xff]   ;;  %v11443_v26 = vld [vmem:[%s14398_s13 + $0x5cc] ss:$16 sps:$4 sm:$0xff]  }
 0xf17   : > { %6913 = vmatpush2.bf16.msra.mxu0 %v11336_v19  ;;  %6954 = vmatpush2.bf16.msra.mxu1 %v11339_v4  ;;  %v11393_v19 = vld [vmem:[%s14398_s13 + $0x5c0] ss:$16 sps:$4 sm:$0xff]   ;;  %v11441_v4 = vld [vmem:[%s14398_s13 + $0x5c8] ss:$16 sps:$4 sm:$0xff]  }
 0xf18   : > { %6914 = vmatprep.subr.bf16.mxu0 %v11344_v63  ;;  %6955 = vmatprep.subr.bf16.mxu1 %v11347_v25  ;;  %v11398_v63 = vld [vmem:[%s14398_s13 + $0x5a4] ss:$16 sps:$4 sm:$0xff]   ;;  %v11446_v25 = vld [vmem:[%s14398_s13 + $0x5ac] ss:$16 sps:$4 sm:$0xff]  }
 0xf1b   : > { %6915 = vmatpush2.bf16.msra.mxu0 %v11342_v38  ;;  %6956 = vmatpush2.bf16.msra.mxu1 %v11345_v31  ;;  %v11396_v38 = vld [vmem:[%s14398_s13 + $0x5a0] ss:$16 sps:$4 sm:$0xff]   ;;  %v11444_v31 = vld [vmem:[%s14398_s13 + $0x5a8] ss:$16 sps:$4 sm:$0xff]  }
 0xf1c   : > { %6916 = vmatprep.subr.bf16.mxu0 %v11350_v45  ;;  %6957 = vmatprep.subr.bf16.mxu1 %v11353_v3  ;;  %v11401_v45 = vld [vmem:[%s14398_s13 + $0x584] ss:$16 sps:$4 sm:$0xff]   ;;  %v11449_v3 = vld [vmem:[%s14398_s13 + $0x58c] ss:$16 sps:$4 sm:$0xff]  }
 0xf1f   : > { %6917 = vmatpush2.bf16.msra.mxu0 %v11348_v22  ;;  %6958 = vmatpush2.bf16.msra.mxu1 %v11351_v14  ;;  %v11399_v22 = vld [vmem:[%s14398_s13 + $0x580] ss:$16 sps:$4 sm:$0xff]   ;;  %v11447_v14 = vld [vmem:[%s14398_s13 + $0x588] ss:$16 sps:$4 sm:$0xff]  }
 0xf20   : > { %6918 = vmatprep.subr.bf16.mxu0 %v11356_v40  ;;  %6959 = vmatprep.subr.bf16.mxu1 %v11359_v21  ;;  %v11404_v40 = vld [vmem:[%s14398_s13 + $0x564] ss:$16 sps:$4 sm:$0xff]   ;;  %v11452_v21 = vld [vmem:[%s14398_s13 + $0x56c] ss:$16 sps:$4 sm:$0xff]  }
 0xf23   : > { %6919 = vmatpush2.bf16.msra.mxu0 %v11354_v32  ;;  %6960 = vmatpush2.bf16.msra.mxu1 %v11357_v54  ;;  %v11402_v32 = vld [vmem:[%s14398_s13 + $0x560] ss:$16 sps:$4 sm:$0xff]   ;;  %v11450_v54 = vld [vmem:[%s14398_s13 + $0x568] ss:$16 sps:$4 sm:$0xff]  }
 0xf24   : > { %6920 = vmatprep.subr.bf16.mxu0 %v11362_v43  ;;  %6961 = vmatprep.subr.bf16.mxu1 %v11365_v50  ;;  %v11407_v43 = vld [vmem:[%s14398_s13 + $0x544] ss:$16 sps:$4 sm:$0xff]   ;;  %v11405_v50 = vld [vmem:[%s14398_s13 + $0x540] ss:$16 sps:$4 sm:$0xff]  }
 0xf27   : > { %6921 = vmatpush2.bf16.msra.mxu0 %v11360_v52  ;;  %6962 = vmatpush2.bf16.msra.mxu1 %v11363_v15  ;;  %v11410_v52 = vld [vmem:[%s14398_s13 + $0x524] ss:$16 sps:$4 sm:$0xff]   ;;  %v11408_v15 = vld [vmem:[%s14398_s13 + $0x520] ss:$16 sps:$4 sm:$0xff]  }
 0xf28   : > { %9424 = vmatprep.subr.msk.bf16.mxu0 %vm764_vm0, %v13475_v58  ;;  %7446 = vmatprep.subr.bf16.mxu1 %v11416_v47  ;;  %v11461_v47 = vld [vmem:[%s14398_s13 + $0x50c] ss:$16 sps:$4 sm:$0xff]  }
 0xf2a   : > { %6923 = vmatmul.mubr.bf16.vlgmr.msra.gmra.mxu0 %v5989_v20  ;;  %6964 = vmatmul.mubr.bf16.vlgmr.msra.gmra.mxu1 %v5989_v20  ;;  %v11413_v20 = vld [vmem:[%s14398_s13 + $0x504] ss:$16 sps:$4 sm:$0xff]  }
 0xf2b   : > { %6992 = vmatpush1.bf16.msra.mxu0 %v13480_v23  ;;  %7009 = vmatprep.mubr.bf16.mxu0 %v11654_v35 }
 0xf2c   : > { %7405 = vmatprep.subr.bf16.mxu0 %v11368_v2  ;;  %7447 = vmatpush1.bf16.msra.mxu1 %v11414_v55  ;;  %v11411_v2 = vld [vmem:[%s14398_s13 + $0x500] ss:$16 sps:$4 sm:$0xff]   ;;  %v11456_v55 = vld [vmem:[%s14398_s13 + $0x528] ss:$16 sps:$4 sm:$0xff]  }
 0xf2d   : > { %7448 = vmatprep.subr.bf16.mxu1 %v11419_v27  ;;  %v11459_v27 = vld [vmem:[%s14398_s13 + $0x508] ss:$16 sps:$4 sm:$0xff]  }
 0xf30   : > { %7449 = vmatpush1.bf16.msra.mxu1 %v11417_v0 }
 0xf31   : > { %7450 = vmatprep.subr.bf16.mxu1 %v11422_v60 }
 0xf32   : > { %9425 = vmatmul.mubr.msk.bf16.vlgmr.msra.gmra.mxu0 %vm5938_vm5, %v9423_v44  ;;  %v11453_v44 = vld [vmem:[%s14398_s13 + $0x548] ss:$16 sps:$4 sm:$0xff]  }
 0xf33   : > { %7406 = vmatpush1.bf16.msra.mxu0 %v11366_v17  ;;  %v11455_v17 = vld [vmem:[%s14398_s13 + $0x54c] ss:$16 sps:$4 sm:$0xff]  }
 0xf34   : > { %7407 = vmatprep.subr.bf16.mxu0 %v11371_v18  ;;  %7451 = vmatpush1.bf16.msra.mxu1 %v11420_v7  ;;  %v11458_v18 = vld [vmem:[%s14398_s13 + $0x52c] ss:$16 sps:$4 sm:$0xff]  }
 0xf35   : > { %7452 = vmatprep.subr.bf16.mxu1 %v11425_v10 }
 0xf37   : > { %7408 = vmatpush1.bf16.msra.mxu0 %v11369_v62 }
 0xf38   : > { %7409 = vmatprep.subr.bf16.mxu0 %v11374_v48  ;;  %7453 = vmatpush1.bf16.msra.mxu1 %v11423_v30 }
 0xf39   : > { %7454 = vmatprep.subr.bf16.mxu1 %v11428_v9 }
 0xf3b   : > { %7410 = vmatpush1.bf16.msra.mxu0 %v11372_v6 }
 0xf3c   : > { %7411 = vmatprep.subr.bf16.mxu0 %v11377_v57  ;;  %7455 = vmatpush1.bf16.msra.mxu1 %v11426_v24 }
 0xf3d   : > { %7456 = vmatprep.subr.bf16.mxu1 %v11431_v33 }
 0xf3f   : > { %7412 = vmatpush1.bf16.msra.mxu0 %v11375_v56 }
 0xf40   : > { %7413 = vmatprep.subr.bf16.mxu0 %v11380_v8  ;;  %7457 = vmatpush1.bf16.msra.mxu1 %v11429_v34 }
 0xf41   : > { %7458 = vmatprep.subr.bf16.mxu1 %v11434_v36 }
 0xf43   : > { %7414 = vmatpush1.bf16.msra.mxu0 %v11378_v28 }
 0xf44   : > { %7415 = vmatprep.subr.bf16.mxu0 %v11383_v46  ;;  %7459 = vmatpush1.bf16.msra.mxu1 %v11432_v51 }
 0xf45   : > { %7460 = vmatprep.subr.bf16.mxu1 %v11437_v59 }
 0xf47   : > { %7416 = vmatpush1.bf16.msra.mxu0 %v11381_v12 }
 0xf48   : > { %7417 = vmatprep.subr.bf16.mxu0 %v11386_v29  ;;  %7461 = vmatpush1.bf16.msra.mxu1 %v11435_v16  ;;  %v11462_v16 = vld [vmem:[%s14398_s13 + $0x6e0] ss:$16 sps:$4 sm:$0xff]  }
 0xf49   : > { %7462 = vmatprep.subr.bf16.mxu1 %v11440_v61  ;;  %v11470_v61 = vld [vmem:[%s14398_s13 + $0x6c4] ss:$16 sps:$4 sm:$0xff]  }
 0xf4b   : > { %7418 = vmatpush1.bf16.msra.mxu0 %v11384_v53 }
 0xf4c   : > { %7419 = vmatprep.subr.bf16.mxu0 %v11389_v41  ;;  %7463 = vmatpush2.bf16.msra.mxu1 %v11438_v13  ;;  %v11468_v13 = vld [vmem:[%s14398_s13 + $0x6c0] ss:$16 sps:$4 sm:$0xff]  }
 0xf4d   : > { %7464 = vmatprep.subr.bf16.mxu1 %v11443_v26  ;;  %v9554_v26 = vld [vmem:[%s14397_s12 + $0x3] sm:$0x1] }
 0xf4f   : > { %7420 = vmatpush1.bf16.msra.mxu0 %v11387_v42 }
 0xf50   : > { %7421 = vmatprep.subr.bf16.mxu0 %v11392_v37  ;;  %7465 = vmatpush2.bf16.msra.mxu1 %v11441_v4  ;;  %v11467_v37 = vld [vmem:[%s14398_s13 + $0x6ec] ss:$16 sps:$4 sm:$0xff]   ;;  %v11482_v4 = vld [vmem:[%s14398_s13 + $0x684] ss:$16 sps:$4 sm:$0xff]  }
 0xf51   : > { %7466 = vmatprep.subr.bf16.mxu1 %v11446_v25  ;;  %v11479_v25 = vld [vmem:[%s14398_s13 + $0x6ac] ss:$16 sps:$4 sm:$0xff]  }
 0xf53   : > { %7422 = vmatpush2.bf16.msra.mxu0 %v11390_v1 }
 0xf54   : > { %7423 = vmatprep.subr.bf16.mxu0 %v11395_v49  ;;  %7467 = vmatpush2.bf16.msra.mxu1 %v11444_v31  ;;  %v11476_v49 = vld [vmem:[%s14398_s13 + $0x6a4] ss:$16 sps:$4 sm:$0xff]  }
 0xf55   : > { %7468 = vmatprep.subr.bf16.mxu1 %v11449_v3  ;;  %v11488_v31 = vld [vmem:[%s14398_s13 + $0x664] ss:$16 sps:$4 sm:$0xff]   ;;  %v11485_v3 = vld [vmem:[%s14398_s13 + $0x68c] ss:$16 sps:$4 sm:$0xff]  }
 0xf57   : > { %7424 = vmatpush2.bf16.msra.mxu0 %v11393_v19  ;;  %v11474_v19 = vld [vmem:[%s14398_s13 + $0x6a0] ss:$16 sps:$4 sm:$0xff]  }
 0xf58   : > { %7425 = vmatprep.subr.bf16.mxu0 %v11398_v63  ;;  %7469 = vmatpush2.bf16.msra.mxu1 %v11447_v14  ;;  %v11471_v63 = vld [vmem:[%s14398_s13 + $0x6c8] ss:$16 sps:$4 sm:$0xff]   ;;  %v11494_v14 = vld [vmem:[%s14398_s13 + $0x644] ss:$16 sps:$4 sm:$0xff]  }
 0xf59   : > { %7470 = vmatprep.subr.bf16.mxu1 %v11452_v21  ;;  %v11491_v21 = vld [vmem:[%s14398_s13 + $0x66c] ss:$16 sps:$4 sm:$0xff]  }
 0xf5b   : > { %7426 = vmatpush2.bf16.msra.mxu0 %v11396_v38  ;;  %v11480_v38 = vld [vmem:[%s14398_s13 + $0x680] ss:$16 sps:$4 sm:$0xff]  }
 0xf5c   : > { %7427 = vmatprep.subr.bf16.mxu0 %v11401_v45  ;;  %7471 = vmatpush2.bf16.msra.mxu1 %v11450_v54  ;;  %v11477_v45 = vld [vmem:[%s14398_s13 + $0x6a8] ss:$16 sps:$4 sm:$0xff]   ;;  %v11500_v54 = vld [vmem:[%s14398_s13 + $0x624] ss:$16 sps:$4 sm:$0xff]  }
 0xf5d   : > { %7472 = vmatprep.subr.bf16.mxu1 %v11455_v17  ;;  %v11504_v17 = vld [vmem:[%s14398_s13 + $0x600] ss:$16 sps:$4 sm:$0xff]  }
 0xf5f   : > { %7428 = vmatpush2.bf16.msra.mxu0 %v11399_v22  ;;  %v11486_v22 = vld [vmem:[%s14398_s13 + $0x660] ss:$16 sps:$4 sm:$0xff]  }
 0xf60   : > { %7429 = vmatprep.subr.bf16.mxu0 %v11404_v40  ;;  %7473 = vmatpush2.bf16.msra.mxu1 %v11453_v44  ;;  %v11483_v40 = vld [vmem:[%s14398_s13 + $0x688] ss:$16 sps:$4 sm:$0xff]   ;;  %v11512_v44 = vld [vmem:[%s14398_s13 + $0x7e4] ss:$16 sps:$4 sm:$0xff]  }
 0xf61   : > { %7474 = vmatprep.subr.bf16.mxu1 %v11458_v18  ;;  %v11501_v18 = vld [vmem:[%s14398_s13 + $0x628] ss:$16 sps:$4 sm:$0xff]  }
 0xf63   : > { %7430 = vmatpush2.bf16.msra.mxu0 %v11402_v32  ;;  %v11492_v32 = vld [vmem:[%s14398_s13 + $0x640] ss:$16 sps:$4 sm:$0xff]  }
 0xf64   : > { %7431 = vmatprep.subr.bf16.mxu0 %v11407_v43  ;;  %7475 = vmatpush2.bf16.msra.mxu1 %v11456_v55  ;;  %v11489_v43 = vld [vmem:[%s14398_s13 + $0x668] ss:$16 sps:$4 sm:$0xff]   ;;  %v11509_v55 = vld [vmem:[%s14398_s13 + $0x60c] ss:$16 sps:$4 sm:$0xff]  }
 0xf65   : > { %7476 = vmatprep.subr.bf16.mxu1 %v11461_v47  ;;  %v11510_v47 = vld [vmem:[%s14398_s13 + $0x7e0] ss:$16 sps:$4 sm:$0xff]  }
 0xf67   : > { %7432 = vmatpush2.bf16.msra.mxu0 %v11405_v50  ;;  %v11497_v50 = vld [vmem:[%s14398_s13 + $0x64c] ss:$16 sps:$4 sm:$0xff]  }
 0xf68   : > { %7433 = vmatprep.subr.bf16.mxu0 %v11410_v52  ;;  %7477 = vmatpush2.bf16.msra.mxu1 %v11459_v27  ;;  %v11498_v52 = vld [vmem:[%s14398_s13 + $0x620] ss:$16 sps:$4 sm:$0xff]   ;;  %v11518_v27 = vld [vmem:[%s14398_s13 + $0x7c4] ss:$16 sps:$4 sm:$0xff]  }
 0xf6b   : > { %7434 = vmatpush2.bf16.msra.mxu0 %v11408_v15  ;;  %v11506_v15 = vld [vmem:[%s14398_s13 + $0x604] ss:$16 sps:$4 sm:$0xff]  }
 0xf6c   : > { %7435 = vmatprep.subr.bf16.mxu0 %v11413_v20  ;;  %v11495_v20 = vld [vmem:[%s14398_s13 + $0x648] ss:$16 sps:$4 sm:$0xff]  }
 0xf6f   : > { %7436 = vmatpush2.bf16.msra.mxu0 %v11411_v2  ;;  %v11503_v2 = vld [vmem:[%s14398_s13 + $0x62c] ss:$16 sps:$4 sm:$0xff]  }
 0xf70   : > { %9555 = vmatprep.subr.msk.bf16.mxu0 %vm764_vm0, %v13475_v58  ;;  %v11464_v58 = vld [vmem:[%s14398_s13 + $0x6e4] ss:$16 sps:$4 sm:$0xff]  }
 0xf71   : > { %7924 = vmatprep.subr.bf16.mxu1 %v11464_v58  ;;  %v11507_v58 = vld [vmem:[%s14398_s13 + $0x608] ss:$16 sps:$4 sm:$0xff]  }
 0xfaa   : > { %v6522_v62 = vpop.f32.mrf.mxu0  ;;  %v6563_v0 = vpop.f32.mrf.mxu1 }
 0xfac   : > { %v6524_v48 = vpop.f32.mrf.mxu0  ;;  %v6565_v60 = vpop.f32.mrf.mxu1 }
 0xfae   : > { %v6526_v6 = vpop.f32.mrf.mxu0  ;;  %v6567_v7 = vpop.f32.mrf.mxu1 }
 0xfaf   : > { %v11521_v6 = vld [vmem:[%s14398_s13 + $0x7cc] ss:$16 sps:$4 sm:$0xff]   ;;  %v11522_v7 = vld [vmem:[%s14398_s13 + $0x7a0] ss:$16 sps:$4 sm:$0xff]  }
 0xfb0   : > { %v6527_v57 = vpop.f32.mrf.mxu0  ;;  %v6568_v10 = vpop.f32.mrf.mxu1 }
 0xfb1   : > { %v11530_v57 = vld [vmem:[%s14398_s13 + $0x784] ss:$16 sps:$4 sm:$0xff]   ;;  %v11519_v10 = vld [vmem:[%s14398_s13 + $0x7c8] ss:$16 sps:$4 sm:$0xff]  }
 0xfea   : > { %v6924_v56 = vpop.f32.mrf.mxu0  ;;  %v6965_v30 = vpop.f32.mrf.mxu1 }
 0xfeb   : > { %v14010_v8 = vadd.f32 %v6924_v56, %v6522_v62  ;;  %v14012_v9 = vadd.f32 %v6965_v30, %v6563_v0  ;;  %v11515_v62 = vld [vmem:[%s14398_s13 + $0x7ec] ss:$16 sps:$4 sm:$0xff]   ;;  %v11516_v0 = vld [vmem:[%s14398_s13 + $0x7c0] ss:$16 sps:$4 sm:$0xff]  }
 0xfec   : > { %v6926_v28 = vpop.f32.mrf.mxu0  ;;  %v6967_v24 = vpop.f32.mrf.mxu1  ;;  %v11527_v56 = vld [vmem:[%s14398_s13 + $0x7ac] ss:$16 sps:$4 sm:$0xff]   ;;  %v11528_v30 = vld [vmem:[%s14398_s13 + $0x780] ss:$16 sps:$4 sm:$0xff]  }
 0xfed   : > { %v14014_v46 = vadd.f32 %v6926_v28, %v6524_v48  ;;  %v14016_v33 = vadd.f32 %v6967_v24, %v6565_v60  ;;  %v11524_v48 = vld [vmem:[%s14398_s13 + $0x7a4] ss:$16 sps:$4 sm:$0xff]   ;;  %v11513_v60 = vld [vmem:[%s14398_s13 + $0x7e8] ss:$16 sps:$4 sm:$0xff]  }
 0xfee   : > { %v6928_v12 = vpop.f32.mrf.mxu0  ;;  %v6969_v34 = vpop.f32.mrf.mxu1  ;;  %v11536_v28 = vld [vmem:[%s14398_s13 + $0x764] ss:$16 sps:$4 sm:$0xff]   ;;  %v11525_v24 = vld [vmem:[%s14398_s13 + $0x7a8] ss:$16 sps:$4 sm:$0xff]  }
 0xfef   : > { %v11533_v12 = vld [vmem:[%s14398_s13 + $0x78c] ss:$16 sps:$4 sm:$0xff]   ;;  %v11534_v34 = vld [vmem:[%s14398_s13 + $0x760] ss:$16 sps:$4 sm:$0xff]  }
 0xff0   : > { %v6929_v29 = vpop.f32.mrf.mxu0  ;;  %v6970_v36 = vpop.f32.mrf.mxu1 }
 0xff1   : > { %v11531_v29 = vld [vmem:[%s14398_s13 + $0x788] ss:$16 sps:$4 sm:$0xff]   ;;  %v11539_v36 = vld [vmem:[%s14398_s13 + $0x76c] ss:$16 sps:$4 sm:$0xff]  }
 0xff2   : > { %v7011_v53 = vpop.f32.mrf.mxu0 }
 0xff3   : > { %v7018_v59 = vpack.c.bf16 %v7011_v53, %v7011_v53  ;;  %v11537_v53 = vld [vmem:[%s14398_s13 + $0x768] ss:$16 sps:$4 sm:$0xff]  }
 0xff4   : > { %v7013_v51 = vpop.f32.mrf.mxu0 }
 0xff5   : > { %v7019_v41 = vpack.c.bf16 %v7013_v51, %v7013_v51  ;;  %v11542_v51 = vld [vmem:[%s14398_s13 + $0x744] ss:$16 sps:$4 sm:$0xff]  }
 0xff6   : > { %v7015_v42 = vpop.f32.mrf.mxu0 }
 0xff7   : > { %7437 = vmatprep.mubr.bf16.mxu0 %v7019_v41  ;;  %7478 = vmatprep.mubr.bf16.mxu1 %v7019_v41  ;;  %v11545_v41 = vld [vmem:[%s14398_s13 + $0x74c] ss:$16 sps:$4 sm:$0xff]   ;;  %v11543_v42 = vld [vmem:[%s14398_s13 + $0x748] ss:$16 sps:$4 sm:$0xff]  }
 0xff8   : > { %7438 = vmatmul.mubr.bf16.vlgmr.msra.gmra.mxu0 %v7018_v59  ;;  %7479 = vmatmul.mubr.bf16.vlgmr.msra.gmra.mxu1 %v7018_v59  ;;  %v7016_v1 = vpop.f32.mrf.mxu0  ;;  %v11540_v59 = vld [vmem:[%s14398_s13 + $0x740] ss:$16 sps:$4 sm:$0xff]  }
 0xff9   : > { %7511 = vmatpush1.bf16.msra.mxu0 %v13480_v23  ;;  %7528 = vmatprep.mubr.bf16.mxu0 %v11654_v35  ;;  %v11465_v23 = vld [vmem:[%s14398_s13 + $0x6e8] ss:$16 sps:$4 sm:$0xff]   ;;  %v11473_v35 = vld [vmem:[%s14398_s13 + $0x6cc] ss:$16 sps:$4 sm:$0xff]  }
 0xffa   : > { %7965 = vmatprep.subr.bf16.mxu0 %v11467_v37  ;;  %7925 = vmatpush1.bf16.msra.mxu1 %v11462_v16  ;;  %v11548_v16 = vld [vmem:[%s14398_s13 + $0x724] ss:$16 sps:$4 sm:$0xff]   ;;  %v11551_v37 = vld [vmem:[%s14398_s13 + $0x72c] ss:$16 sps:$4 sm:$0xff]   ;;  %v11549_v1 = vld [vmem:[%s14398_s13 + $0x728] ss:$16 sps:$4 sm:$0xff]  }
 0xffb   : > { %7926 = vmatprep.subr.bf16.mxu1 %v11470_v61  ;;  %v11546_v61 = vld [vmem:[%s14398_s13 + $0x720] ss:$16 sps:$4 sm:$0xff]  }
 0xffe   : > { %7927 = vmatpush1.bf16.msra.mxu1 %v11468_v13  ;;  %v11554_v13 = vld [vmem:[%s14398_s13 + $0x704] ss:$16 sps:$4 sm:$0xff]  }
 0xfff   : > { %7928 = vmatprep.subr.bf16.mxu1 %v11476_v49  ;;  %v11557_v49 = vld [vmem:[%s14398_s13 + $0x70c] ss:$16 sps:$4 sm:$0xff]  }
0x1000   : > { %9556 = vmatmul.mubr.msk.bf16.vlgmr.msra.gmra.mxu0 %vm5938_vm5, %v9554_v26  ;;  %v11552_v26 = vld [vmem:[%s14398_s13 + $0x700] ss:$16 sps:$4 sm:$0xff]  }
0x1001   : > { %7966 = vmatpush1.bf16.msra.mxu0 %v11465_v23  ;;  %v11555_v23 = vld [vmem:[%s14398_s13 + $0x708] ss:$16 sps:$4 sm:$0xff]  }
0x1002   : > { %7967 = vmatprep.subr.bf16.mxu0 %v11473_v35  ;;  %7929 = vmatpush1.bf16.msra.mxu1 %v11474_v19  ;;  %v8052_v35 = vld [vmem:[#allocation2] sm:$0x1]  ;;  %v11558_v19 = vld [vmem:[%s14401_s16 + $0x78] sm:$0xff]  }
0x1003   : > { %7930 = vmatprep.subr.bf16.mxu1 %v11482_v4  ;;  %v11559_v4 = vld [vmem:[%s14401_s16 + $0xf8] sm:$0xff]  }
0x1005   : > { %7968 = vmatpush1.bf16.msra.mxu0 %v11471_v63  ;;  %v8053_v63 = vunpack.c.l.bf16 %v8052_v35 }
0x1006   : > { %7969 = vmatprep.subr.bf16.mxu0 %v11479_v25  ;;  %7931 = vmatpush1.bf16.msra.mxu1 %v11480_v38 }
0x1007   : > { %7932 = vmatprep.subr.bf16.mxu1 %v11488_v31  ;;  %8060 = vperm.xlu0 %10767, %v8053_v63  }
0x1009   : > { %7970 = vmatpush1.bf16.msra.mxu0 %v11477_v45 }
0x100a   : > { %7971 = vmatprep.subr.bf16.mxu0 %v11485_v3  ;;  %7933 = vmatpush1.bf16.msra.mxu1 %v11486_v22 }
0x100b   : > { %7934 = vmatprep.subr.bf16.mxu1 %v11494_v14 }
0x100d   : > { %7972 = vmatpush1.bf16.msra.mxu0 %v11483_v40 }
0x100e   : > { %7973 = vmatprep.subr.bf16.mxu0 %v11491_v21  ;;  %7935 = vmatpush1.bf16.msra.mxu1 %v11492_v32 }
0x100f   : > { %7936 = vmatprep.subr.bf16.mxu1 %v11500_v54 }
0x1011   : > { %7974 = vmatpush1.bf16.msra.mxu0 %v11489_v43 }
0x1012   : > { %7975 = vmatprep.subr.bf16.mxu0 %v11497_v50  ;;  %7937 = vmatpush1.bf16.msra.mxu1 %v11498_v52 }
0x1013   : > { %7938 = vmatprep.subr.bf16.mxu1 %v11506_v15 }
0x1015   : > { %7976 = vmatpush1.bf16.msra.mxu0 %v11495_v20 }
0x1016   : > { %7977 = vmatprep.subr.bf16.mxu0 %v11503_v2  ;;  %7939 = vmatpush1.bf16.msra.mxu1 %v11504_v17  ;;  %v11563_v2 = vld [vmem:[%s14401_s16 + $0xf0] sm:$0xff]  }
0x1017   : > { %7940 = vmatprep.subr.bf16.mxu1 %v11512_v44  ;;  %v11564_v44 = vld [vmem:[%s14401_s16 + $0x30] sm:$0xff]  }
0x1019   : > { %7978 = vmatpush1.bf16.msra.mxu0 %v11501_v18  ;;  %v11565_v18 = vld [vmem:[%s14401_s16 + $0xb0] sm:$0xff]  }
0x101a   : > { %7979 = vmatprep.subr.bf16.mxu0 %v11509_v55  ;;  %7941 = vmatpush2.bf16.msra.mxu1 %v11510_v47  ;;  %v11566_v55 = vld [vmem:[%s14401_s16 + $0x68] sm:$0xff]  }
0x101b   : > { %7942 = vmatprep.subr.bf16.mxu1 %v11518_v27  ;;  %v11567_v47 = vld [vmem:[%s14401_s16 + $0xe8] sm:$0xff]  }
0x101c   : > { %v11568_v27 = vld [vmem:[%s14401_s16 + $0x28] sm:$0xff]  }
0x101d   : > { %7980 = vmatpush1.bf16.msra.mxu0 %v11507_v58  ;;  %v11569_v58 = vld [vmem:[%s14401_s16 + $0xa8] sm:$0xff]  }
0x101e   : > { %7981 = vmatprep.subr.bf16.mxu0 %v11515_v62  ;;  %7943 = vmatpush2.bf16.msra.mxu1 %v11516_v0  ;;  %v11570_v62 = vld [vmem:[%s14401_s16 + $0x60] sm:$0xff]  }
0x101f   : > { %7944 = vmatprep.subr.bf16.mxu1 %v11524_v48  ;;  %v11571_v0 = vld [vmem:[%s14401_s16 + $0xe0] sm:$0xff]  }
0x1020   : > { %v11572_v48 = vld [vmem:[%s14401_s16 + $0x20] sm:$0xff]  }
0x1021   : > { %7982 = vmatpush2.bf16.msra.mxu0 %v11513_v60  ;;  %v11573_v60 = vld [vmem:[%s14401_s16 + $0xa0] sm:$0xff]  }
0x1022   : > { %7983 = vmatprep.subr.bf16.mxu0 %v11521_v6  ;;  %7945 = vmatpush2.bf16.msra.mxu1 %v11522_v7  ;;  %v11574_v6 = vld [vmem:[%s14401_s16 + $0x58] sm:$0xff]  }
0x1023   : > { %7946 = vmatprep.subr.bf16.mxu1 %v11530_v57  ;;  %v11575_v7 = vld [vmem:[%s14401_s16 + $0xd8] sm:$0xff]  }
0x1024   : > { %v11576_v57 = vld [vmem:[%s14401_s16 + $0x18] sm:$0xff]  }
0x1025   : > { %7984 = vmatpush2.bf16.msra.mxu0 %v11519_v10  ;;  %v11577_v10 = vld [vmem:[%s14401_s16 + $0x98] sm:$0xff]  }
0x1026   : > { %7985 = vmatprep.subr.bf16.mxu0 %v11527_v56  ;;  %7947 = vmatpush2.bf16.msra.mxu1 %v11528_v30  ;;  %v11578_v56 = vld [vmem:[%s14401_s16 + $0x50] sm:$0xff]  }
0x1027   : > { %7948 = vmatprep.subr.bf16.mxu1 %v11536_v28  ;;  %v11579_v30 = vld [vmem:[%s14401_s16 + $0xd0] sm:$0xff]  }
0x1028   : > { %v11580_v28 = vld [vmem:[%s14401_s16 + $0x10] sm:$0xff]  }
0x1029   : > { %7986 = vmatpush2.bf16.msra.mxu0 %v11525_v24  ;;  %v11581_v24 = vld [vmem:[%s14401_s16 + $0x90] sm:$0xff]  }
0x102a   : > { %7987 = vmatprep.subr.bf16.mxu0 %v11533_v12  ;;  %7949 = vmatpush2.bf16.msra.mxu1 %v11534_v34  ;;  %v11582_v12 = vld [vmem:[%s14401_s16 + $0x48] sm:$0xff]  }
0x102b   : > { %7950 = vmatprep.subr.bf16.mxu1 %v11542_v51  ;;  %v11583_v34 = vld [vmem:[%s14401_s16 + $0xc8] sm:$0xff]   ;;  %v11587_v51 = vld [vmem:[%s14401_s16 + $0xc0] sm:$0xff]  }
0x102d   : > { %7988 = vmatpush2.bf16.msra.mxu0 %v11531_v29  ;;  %v11584_v29 = vld [vmem:[%s14401_s16 + $0x8] sm:$0xff]  }
0x102e   : > { %7989 = vmatprep.subr.bf16.mxu0 %v11539_v36  ;;  %7951 = vmatpush2.bf16.msra.mxu1 %v11540_v59  ;;  %v11585_v36 = vld [vmem:[%s14401_s16 + $0x88] sm:$0xff]   ;;  %v11589_v59 = vld [vmem:[%s14401_s16 + $0x80] sm:$0xff]  }
0x102f   : > { %7952 = vmatprep.subr.bf16.mxu1 %v11548_v16  ;;  %v8010_v16 = vld [vmem:[%s14399_s14] sm:$0xf] }
0x1031   : > { %7990 = vmatpush2.bf16.msra.mxu0 %v11537_v53  ;;  %v11586_v53 = vld [vmem:[%s14401_s16 + $0x40] sm:$0xff]  }
0x1032   : > { %7991 = vmatprep.subr.bf16.mxu0 %v11545_v41  ;;  %7953 = vmatpush2.bf16.msra.mxu1 %v11546_v61  ;;  %v11588_v41 = vld [vmem:[%s14401_s16] sm:$0xff]   ;;  %v8015_v61 = vrot.slane %v8010_v16, %v13464_v39 }
0x1033   : > { %7954 = vmatprep.subr.bf16.mxu1 %v11554_v13 }
0x1035   : > { %7992 = vmatpush2.bf16.msra.mxu0 %v11543_v42  ;;  %v8022_v42 = vsub.s32 2, %v13461_v5 }
0x1036   : > { %7993 = vmatprep.subr.bf16.mxu0 %v11551_v37  ;;  %7955 = vmatpush2.bf16.msra.mxu1 %v11552_v26  ;;  %v8026_v37 = vsub.s32 3, %v13461_v5 }
0x1037   : > { %10262 = vmatprep.subr.bf16.mxu1 %v11558_v19  ;;  %v8019_v19 = vrot.slane %v8010_v16, %v5923_v11 }
0x1038   : > { %v8027_v63 = vrot.slane %v8010_v16, %v8026_v37 }
0x1039   : > { %7994 = vmatpush2.bf16.msra.mxu0 %v11549_v1  ;;  %v8023_v1 = vrot.slane %v8010_v16, %v8022_v42 }
0x103a   : > { %7995 = vmatprep.subr.bf16.mxu0 %v11557_v49 }
0x103d   : > { %7996 = vmatpush2.bf16.msra.mxu0 %v11555_v23 }
0x103e   : > { %10284 = vmatprep.subr.bf16.mxu0 %v11559_v4 }
0x10b8   : > { %v7439_v25 = vpop.f32.mrf.mxu0  ;;  %v7480_v38 = vpop.f32.mrf.mxu1 }
0x10b9   : > { %v14220_v31 = vadd.f32 %v7439_v25, %v14010_v8  ;;  %v14223_v45 = vadd.f32 %v7480_v38, %v14012_v9  ;;  %v11560_v8 = vld [vmem:[%s14401_s16 + $0x38] sm:$0xff]  }
0x10ba   : > { %v7441_v3 = vpop.f32.mrf.mxu0  ;;  %v7482_v22 = vpop.f32.mrf.mxu1  ;;  %v11561_v9 = vld [vmem:[%s14401_s16 + $0xb8] sm:$0xff]  }
0x10bb   : > { %v14226_v14 = vadd.f32 %v7441_v3, %v14014_v46  ;;  %v14229_v40 = vadd.f32 %v7482_v22, %v14016_v33  ;;  %v11562_v33 = vld [vmem:[%s14401_s16 + $0x70] sm:$0xff]  }
0x10bc   : > { %v7443_v21 = vpop.f32.mrf.mxu0  ;;  %v7484_v32 = vpop.f32.mrf.mxu1 }
0x10be   : > { %v7444_v54 = vpop.f32.mrf.mxu0  ;;  %v7485_v43 = vpop.f32.mrf.mxu1 }
0x10bf   : > { %v11655_v54 = vmov 1983009808  }
0x10c0   : > { %v7530_v50 = vpop.f32.mrf.mxu0  ;;  %v8077_v43 = vunpack.c.l.s4 %v11655_v54 }
0x10c1   : > { %v7537_v46 = vpack.c.bf16 %v7530_v50, %v7530_v50 }
0x10c2   : > { %v7532_v52 = vpop.f32.mrf.mxu0 }
0x10c3   : > { %v7538_v15 = vpack.c.bf16 %v7532_v52, %v7532_v52 }
0x10c4   : > { %v7534_v20 = vpop.f32.mrf.mxu0 }
0x10c5   : > { %7956 = vmatprep.mubr.bf16.mxu1 %v7538_v15  ;;  %7997 = vmatprep.mubr.bf16.mxu0 %v7538_v15 }
0x10c6   : > { %7957 = vmatmul.mubr.bf16.vlgmr.msra.gmra.mxu1 %v7537_v46  ;;  %7998 = vmatmul.mubr.bf16.vlgmr.msra.gmra.mxu0 %v7537_v46  ;;  %v7535_v17 = vpop.f32.mrf.mxu0 }
0x10c7   : > { %10263 = vmatpush3.bf16.msra.mxu1 %v11560_v8  ;;  %10285 = vmatpush3.bf16.msra.mxu0 %v11561_v9  ;;  %v11656_v8 = vmov 269488144  }
0x10c8   : > { %10264 = vmatprep.subr.bf16.mxu1 %v11562_v33  ;;  %10286 = vmatprep.subr.bf16.mxu0 %v11563_v2  ;;  %v8064_v9 = vunpack.c.l.s4 %v11656_v8  ;;  %v8078_v2 = vunpack.c.0.s8 %v8077_v43 }
0x10cb   : > { %10265 = vmatpush3.bf16.msra.mxu1 %v11564_v44  ;;  %10287 = vmatpush3.bf16.msra.mxu0 %v11565_v18  ;;  %v8065_v18 = vunpack.c.0.s8 %v8064_v9 }
0x10cc   : > { %10266 = vmatprep.subr.bf16.mxu1 %v11566_v55  ;;  %10288 = vmatprep.subr.bf16.mxu0 %v11567_v47 }
0x10cf   : > { %10267 = vmatpush3.bf16.msra.mxu1 %v11568_v27  ;;  %10289 = vmatpush3.bf16.msra.mxu0 %v11569_v58 }
0x10d0   : > { %10268 = vmatprep.subr.bf16.mxu1 %v11570_v62  ;;  %10290 = vmatprep.subr.bf16.mxu0 %v11571_v0  ;;  %v8081_v0 = vsub.s32 %v8078_v2, %v13461_v5 }
0x10d3   : > { %10269 = vmatpush3.bf16.msra.mxu1 %v11572_v48  ;;  %10291 = vmatpush3.bf16.msra.mxu0 %v11573_v60 }
0x10d4   : > { %10270 = vmatprep.subr.bf16.mxu1 %v11574_v6  ;;  %10292 = vmatprep.subr.bf16.mxu0 %v11575_v7  ;;  %v8068_v6 = vsub.s32 %v8065_v18, %v13461_v5  ;;  %v8061_v7 = vpop.permute.xlu0 %8060 }
0x10d7   : > { %10271 = vmatpush3.bf16.msra.mxu1 %v11576_v57  ;;  %10293 = vmatpush3.bf16.msra.mxu0 %v11577_v10 }
0x10d8   : > { %10272 = vmatprep.subr.bf16.mxu1 %v11578_v56  ;;  %10294 = vmatprep.subr.bf16.mxu0 %v11579_v30  ;;  %v8069_v30 = vrot.slane %v8061_v7, %v8068_v6 }
0x10db   : > { %10273 = vmatpush3.bf16.msra.mxu1 %v11580_v28  ;;  %10295 = vmatpush3.bf16.msra.mxu0 %v11581_v24  ;;  %v8104_v24 = vsub.s32 4, %v13461_v5 }
0x10dc   : > { %10274 = vmatprep.subr.bf16.mxu1 %v11582_v12  ;;  %10296 = vmatprep.subr.bf16.mxu0 %v11583_v34  ;;  %v8108_v34 = vsub.s32 6, %v13461_v5 }
0x10df   : > { %10275 = vmatpush3.bf16.msra.mxu1 %v11584_v29  ;;  %10297 = vmatpush3.bf16.msra.mxu0 %v11585_v36 }
0x10e0   : > { %10276 = vmatprep.subr.bf16.mxu1 %v11586_v53  ;;  %10298 = vmatprep.subr.bf16.mxu0 %v11587_v51 }
0x10e3   : > { %10277 = vmatpush3.bf16.msra.mxu1 %v11588_v41  ;;  %10299 = vmatpush3.bf16.msra.mxu0 %v11589_v59 }
0x1186   : > { %v7958_v13 = vpop.f32.mrf.mxu1  ;;  %v7999_v49 = vpop.f32.mrf.mxu0 }
0x1187   : > { %v8006_v26 = vadd.f32 %v7958_v13, %v14220_v31  ;;  %v8008_v23 = vadd.f32 %v7999_v49, %v14223_v45 }
0x1188   : > { %v7960_v35 = vpop.f32.mrf.mxu1  ;;  %v8001_v4 = vpop.f32.mrf.mxu0 }
0x1189   : > { %v8032_v25 = vadd.f32 %v8015_v61, %v8006_v26  ;;  %v8034_v38 = vadd.f32 %v8023_v1, %v8008_v23  ;;  %v8007_v3 = vadd.f32 %v7960_v35, %v14226_v14  ;;  %v8009_v22 = vadd.f32 %v8001_v4, %v14229_v40 }
0x118a   : > { %v7962_v21 = vpop.f32.mrf.mxu1  ;;  %v8003_v32 = vpop.f32.mrf.mxu0 }
0x118b   : > { %vm8036_vm0 = vcmp.ge.f32.partialorder %v8032_v25, 0.0  ;;  %v8040_v31 = vmul.f32 0.2, %v8032_v25  ;;  %vm8038_vm6 = vcmp.ge.f32.partialorder %v8034_v38, 0.0  ;;  %v8042_v45 = vmul.f32 0.2, %v8034_v38 }
0x118c   : > { %v8033_v50 = vadd.f32 %v8019_v19, %v8007_v3  ;;  %v8035_v52 = vadd.f32 %v8027_v63, %v8009_v22  ;;  %v7963_v15 = vpop.f32.mrf.mxu1  ;;  %v8004_v11 = vpop.f32.mrf.mxu0 }
0x118d   : > { %v8044_v46 = vsel %vm8036_vm0, %v8032_v25, %v8040_v31  ;;  %v8046_v20 = vsel %vm8038_vm6, %v8034_v38, %v8042_v45 }
0x118e   : > { %vm8037_vm7 = vcmp.ge.f32.partialorder %v8033_v50, 0.0  ;;  %v8041_v14 = vmul.f32 0.2, %v8033_v50  ;;  %v8048_v33 = vpack.c.bf16 %v8044_v46, %v8044_v46  ;;  %vm8039_vm8 = vcmp.ge.f32.partialorder %v8035_v52, 0.0 }
0x118f   : > { %v8043_v40 = vmul.f32 0.2, %v8035_v52  ;;  %v8050_v17 = vpack.c.bf16 %v8046_v20, %v8046_v20 }
0x1190   : > { %v8045_v44 = vsel %vm8037_vm7, %v8033_v50, %v8041_v14  ;;  %v8054_v58 = vunpack.c.l.bf16 %v8048_v33 }
0x1191   : > { %v8049_v55 = vpack.c.bf16 %v8045_v44, %v8045_v44  ;;  %v8047_v47 = vsel %vm8039_vm8, %v8035_v52, %v8043_v40  ;;  %v8056_v48 = vunpack.c.l.bf16 %v8050_v17 }
0x1192   : > { %v8051_v27 = vpack.c.bf16 %v8047_v47, %v8047_v47 }
0x1193   : > { %v8055_v62 = vunpack.c.l.bf16 %v8049_v55 }
0x1194   : > { %v8057_v60 = vunpack.c.l.bf16 %v8051_v27 }
0x1195   : > { %v8074_v57 = vcombine.low %v8054_v58, %v8055_v62 }
0x1196   : > { %v8075_v10 = vcombine.low %v8056_v48, %v8057_v60 }
0x1197   : > { %v8082_v56 = vrot.slane %v8074_v57, %v8081_v0 }
0x1198   : > { %v8089_v28 = vrot.slane %v8075_v10, %v8081_v0 }
0x119a   : > { %v8090_v12 = vcombine.low %v8082_v56, %v8089_v28 }
0x119c   : > { %v8092_v29 = vmul.f32 %v8090_v12, %v8069_v30 }
0x119e   : > { %v8097_v36 = vrot.slane %v8092_v29, %v13464_v39  ;;  %v8105_v53 = vrot.slane %v8092_v29, %v8104_v24  ;;  %v8101_v51 = vrot.slane %v8092_v29, %v8022_v42  ;;  %v8109_v41 = vrot.slane %v8092_v29, %v8108_v34  ;;  %v8182_v39 = vld [vmem:[%s14402_s17] sm:$0x1] }
0x11a0   : > { %v8114_v59 = vpack.c.bf16 %v8097_v36, %v8097_v36  ;;  %v8116_v16 = vpack.c.bf16 %v8105_v53, %v8105_v53  ;;  %v8115_v37 = vpack.c.bf16 %v8101_v51, %v8101_v51  ;;  %v8117_v61 = vpack.c.bf16 %v8109_v41, %v8109_v41 }
0x11a2   : > { %8407 = vmatprep.mubr.bf16.mxu1 %v8115_v37  ;;  %8447 = vmatprep.mubr.bf16.mxu0 %v8117_v61 }
0x11a3   : > { %8408 = vmatmul.mubr.bf16.vlgmr.msra.gmra.mxu1 %v8114_v59  ;;  %8448 = vmatmul.mubr.bf16.vlgmr.msra.gmra.mxu0 %v8116_v16 }
0x1263   : > { %v10278_v1 = vpop.f32.mrf.mxu1  ;;  %v10300_v13 = vpop.f32.mrf.mxu0 }
0x1265   : > { %v10279_v49 = vpop.f32.mrf.mxu1  ;;  %v10301_v5 = vpop.f32.mrf.mxu0 }
0x1266   : > { %v10280_v42 = vadd.f32 %v10279_v49, %v10278_v1  ;;  %v10302_v19 = vadd.f32 %v10301_v5, %v10300_v13 }
0x1267   : > { %v10281_v26 = vpop.f32.mrf.mxu1  ;;  %v10303_v23 = vpop.f32.mrf.mxu0 }
0x1268   : > { %v8410_v35 = vadd.f32 %v10280_v42, %v8182_v39 }
0x1269   : > { %v10282_v4 = vpop.f32.mrf.mxu1  ;;  %v10304_v63 = vpop.f32.mrf.mxu0 }
0x126a   : > { %v8450_v25 = vadd.f32 %v10302_v19, %v8410_v35 }
0x126c   : > { %vm8455_vm9 = vcmp.ge.f32.partialorder %v8450_v25, 0.0  ;;  %v8456_v38 = vmul.f32 0.2, %v8450_v25 }
0x126e   : > { %v8457_v3 = vsel %vm8455_vm9, %v8450_v25, %v8456_v38 }
0x126f   : > { %8459 = vst.msk [vmem:[%s569_s20] sm:$0x1] %vm8458_vm10, %v8457_v3 }
0x1270   : > { %11603 = shalt.err (!%p11600_p3)
}
0x1271   : > { %s11604_s26 = scalar_lea.hbm %s14350_s28, 16  ;;  %s11608_s20 = scalar_lea.hbm %s14403_s18, 32 }
0x1272   : > { %p11605_p4 = scmp.ne.s32.totalorder %s14350_s28, %s11604_s26  ;;  %p11609_p9 = scmp.lt.s32.totalorder %s14350_s28, %s14403_s18 }
0x1273   : > { %p11610_p10 = scmp.lt.s32.totalorder %s11608_s20, %s11604_s26 }
0x1274   : > { %p11606_p7 = pnand %p11605_p4, %p11794_p5 }
0x1275   : > { %p11611_p11 = por %p11610_p10, %p11609_p9 }
0x1276   : > { %p11607_p8 = pneg %p11606_p7 }
0x1278   : > { %p11612_p12 = pnand %p11611_p11, %p11607_p8 }
0x127a   : > { %11615 = shalt.err (!%p11612_p12)
}
0x127b   : > { %10723 = dma.vmem_to_hbm [thread:$0]  (%p11794_p5), %s8474_s2, 16, %s14350_s28, %s8461_s1  }
0x127c PF: > { %p10729_p13 = scmp.ge.s32.totalorder %s11650_s19, 2  ;;  %s8485_s15 = sand.u32 1, %s11638_s29  }
0x127d   : > { %s8486_s21 = scalar_lea.sflag [#allocation4], %s8485_s15 }
0x127e   : > { %p10726_p0 = pnand %p10729_p13, %p11798_p6 }
0x1280   : > { %p10727_p1 = pneg %p10726_p0 }
0x1282   : > { %11633 = dma.done.wait (%p10727_p1), %s8486_s21, 16  }
0x1283   : > { %11635 = vsyncadd (%p10727_p1), %s8486_s21, 4294967280  ;;  %s14426_s19 = sld [smem:[#allocation7_spill]]  ;;  %s14429_s29 = smov %s11642_s30 }
0x1284   : > { %s14427_s25 = sld [smem:[#allocation6_spill]] }
0x1285   : > { %s14428_s0 = sld [smem:[#allocation8_spill]] }
0x1289   : > { %p30_p2 = scmp.ge.s32.totalorder %s14426_s19, 4  }
0x128a   : > { %s14430_s30 = smov %s14427_s25 }
0x128b   :  { %32 = sbr.rel (!%p30_p2) target bundleno = 9 (0x9), region = 181 }
0x1290   :  { %8490 = vsyncpa [#allocation4], 1 }
0x1291   :  { %8492 = vsyncpa [#allocation4 + $0x1], 1 }

</bundles_post_ra>
